<compile_context>
chip_gen: v7x
topology: tpu7x:2x2x1
jax: 0.10.0
libtpu: 0.0.40
codegen_flags: <defaults>
</compile_context>

<pallas_src>
import jax
import jax.numpy as jnp
from jax.experimental import pallas as pl
from jax.experimental.pallas import tpu as pltpu

_SUBLANE = 8  # f32 sublane multiple


def _fused_mlp_kernel(x_ref, w1_ref, b1_ref, w2_ref, b2_ref,
                      w3_ref, b3_ref, w4_ref, b4_ref, o_ref):
    """Entire 4-layer MLP in one kernel invocation (everything in VMEM)."""
    h = jnp.dot(x_ref[...], w1_ref[...], preferred_element_type=jnp.float32)
    h = jnp.maximum(h + b1_ref[...], 0.0)

    h = jnp.dot(h, w2_ref[...], preferred_element_type=jnp.float32)
    h = jnp.maximum(h + b2_ref[...], 0.0)

    h = jnp.dot(h, w3_ref[...], preferred_element_type=jnp.float32)
    h = jnp.maximum(h + b3_ref[...], 0.0)

    out = jnp.dot(h, w4_ref[...], preferred_element_type=jnp.float32)
    out = out + b4_ref[...]
    o_ref[...] = out.astype(o_ref.dtype)


def fused_mlp(x2d, params):
    """x2d: (M, inchannel) f32; params: w{i} as (in, out), b{i} as (1, out)."""
    M, K = x2d.shape
    assert params["w1"].shape[0] == K
    n_out = params["w4"].shape[1]

    # Pad batch up to the sublane multiple so stores are unmasked.
    Mp = max(_SUBLANE, ((M + _SUBLANE - 1) // _SUBLANE) * _SUBLANE)
    if Mp != M:
        x2d = jnp.pad(x2d, ((0, Mp - M), (0, 0)))

    vmem_specs = [pl.BlockSpec(memory_space=pltpu.MemorySpace.VMEM)
                  for _ in range(9)]

    out = pl.pallas_call(
        _fused_mlp_kernel,
        out_shape=jax.ShapeDtypeStruct((Mp, n_out), x2d.dtype),
        in_specs=vmem_specs,
        out_specs=pl.BlockSpec(memory_space=pltpu.MemorySpace.VMEM),
        compiler_params=pltpu.CompilerParams(
            # ~6.7 MiB of weights/activations — well under 32 MiB scoped VMEM
            # even on v7x (64 MiB physical).
            vmem_limit_bytes=32 * 1024 * 1024,
        ),
    )(x2d,
      params["w1"], params["b1"],
      params["w2"], params["b2"],
      params["w3"], params["b3"],
      params["w4"], params["b4"])
    return out[:M]


@jax.jit
def sim_nn_forward(x, params):
    """Pallas implementation of simNN.forward (x is NCHW, flattened like
    x.view(x.size(0), -1))."""
    B = x.shape[0]
    x2d = x.reshape(B, -1)
    return fused_mlp(x2d, params)


def init_params(key, inchannel, outchannel, dtype=jnp.float32):
    """Weights stored pre-transposed as (in, out); biases as (1, out).

    hiddensize4=128 is declared but unused in the PyTorch module, matching it.
    """
    h1, h2, h3 = 1024, 512, 256
    sizes = [(inchannel, h1), (h1, h2), (h2, h3), (h3, outchannel)]
    params = {}
    keys = jax.random.split(key, 2 * len(sizes))
    for i, (in_f, out_f) in enumerate(sizes):
        bound = float(in_f) ** -0.5  # PyTorch-like uniform(-1/sqrt(in), 1/sqrt(in))
        params[f"w{i+1}"] = jax.random.uniform(
            keys[2 * i], (in_f, out_f), dtype, minval=-bound, maxval=bound)
        params[f"b{i+1}"] = jax.random.uniform(
            keys[2 * i + 1], (1, out_f), dtype, minval=-bound, maxval=bound)
    return params


def reference_forward(x, params):
    B = x.shape[0]
    out = x.reshape(B, -1)
    out = jnp.maximum(out @ params["w1"] + params["b1"], 0.0)
    out = jnp.maximum(out @ params["w2"] + params["b2"], 0.0)
    out = jnp.maximum(out @ params["w3"] + params["b3"], 0.0)
    out = out @ params["w4"] + params["b4"]
    return out


if __name__ == "__main__":
    key = jax.random.PRNGKey(0)
    k_x, k_p = jax.random.split(key)

    batch, channels, H, W = 2, 4, 16, 16          # NCHW input
    inchannel = channels * H * W                  # 1024 after flatten
    outchannel = 128

    x = jax.random.normal(k_x, (batch, channels, H, W), jnp.float32)
    params = init_params(k_p, inchannel, outchannel)

    out = sim_nn_forward(x, params)
    out = jax.block_until_ready(out)

    ref = reference_forward(x, params)
    assert out.shape == (batch, outchannel)
    assert jnp.allclose(out, ref, atol=1e-4, rtol=1e-4)

    print("KERNEL_OK")
</pallas_src>

<mosaic_0001>
module attributes {stable_mosaic.version = 11 : i64} {
  func.func @_fused_mlp_kernel(%arg0: memref<8x1024xf32, #tpu.memory_space<vmem>>, %arg1: memref<1024x1024xf32, #tpu.memory_space<vmem>>, %arg2: memref<1x1024xf32, #tpu.memory_space<vmem>>, %arg3: memref<1024x512xf32, #tpu.memory_space<vmem>>, %arg4: memref<1x512xf32, #tpu.memory_space<vmem>>, %arg5: memref<512x256xf32, #tpu.memory_space<vmem>>, %arg6: memref<1x256xf32, #tpu.memory_space<vmem>>, %arg7: memref<256x128xf32, #tpu.memory_space<vmem>>, %arg8: memref<1x128xf32, #tpu.memory_space<vmem>>, %arg9: memref<8x128xf32, #tpu.memory_space<vmem>>) attributes {dimension_semantics = [], scalar_prefetch = 0 : i64, scratch_operands = 0 : i64, tpu.core_type = #tpu.core_type<tc>} {
    %c0 = arith.constant 0 : index
    %c0_0 = arith.constant 0 : index
    %0 = vector.load %arg0[%c0, %c0_0] : memref<8x1024xf32, #tpu.memory_space<vmem>>, vector<8x1024xf32>
    %c0_1 = arith.constant 0 : index
    %c0_2 = arith.constant 0 : index
    %1 = vector.load %arg1[%c0_1, %c0_2] : memref<1024x1024xf32, #tpu.memory_space<vmem>>, vector<1024x1024xf32>
    %cst = arith.constant dense<0.000000e+00> : vector<8x1024xf32>
    %2 = tpu.matmul %0, %1, %cst {dimension_numbers = #tpu.dot_dimension_numbers<[1], [0], [0], [1], [0, 0, 1, 1], [], []>} : vector<8x1024xf32>, vector<1024x1024xf32>, vector<8x1024xf32> -> vector<8x1024xf32>
    %c0_3 = arith.constant 0 : index
    %c0_4 = arith.constant 0 : index
    %3 = vector.load %arg2[%c0_3, %c0_4] : memref<1x1024xf32, #tpu.memory_space<vmem>>, vector<1x1024xf32>
    %4 = vector.broadcast %3 : vector<1x1024xf32> to vector<8x1024xf32>
    %5 = arith.addf %2, %4 : vector<8x1024xf32>
    %cst_5 = arith.constant 0.000000e+00 : f32
    %6 = vector.broadcast %cst_5 : f32 to vector<8x1024xf32>
    %7 = arith.maximumf %5, %6 : vector<8x1024xf32>
    %c0_6 = arith.constant 0 : index
    %c0_7 = arith.constant 0 : index
    %8 = vector.load %arg3[%c0_6, %c0_7] : memref<1024x512xf32, #tpu.memory_space<vmem>>, vector<1024x512xf32>
    %cst_8 = arith.constant dense<0.000000e+00> : vector<8x512xf32>
    %9 = tpu.matmul %7, %8, %cst_8 {dimension_numbers = #tpu.dot_dimension_numbers<[1], [0], [0], [1], [0, 0, 1, 1], [], []>} : vector<8x1024xf32>, vector<1024x512xf32>, vector<8x512xf32> -> vector<8x512xf32>
    %c0_9 = arith.constant 0 : index
    %c0_10 = arith.constant 0 : index
    %10 = vector.load %arg4[%c0_9, %c0_10] : memref<1x512xf32, #tpu.memory_space<vmem>>, vector<1x512xf32>
    %11 = vector.broadcast %10 : vector<1x512xf32> to vector<8x512xf32>
    %12 = arith.addf %9, %11 : vector<8x512xf32>
    %cst_11 = arith.constant 0.000000e+00 : f32
    %13 = vector.broadcast %cst_11 : f32 to vector<8x512xf32>
    %14 = arith.maximumf %12, %13 : vector<8x512xf32>
    %c0_12 = arith.constant 0 : index
    %c0_13 = arith.constant 0 : index
    %15 = vector.load %arg5[%c0_12, %c0_13] : memref<512x256xf32, #tpu.memory_space<vmem>>, vector<512x256xf32>
    %cst_14 = arith.constant dense<0.000000e+00> : vector<8x256xf32>
    %16 = tpu.matmul %14, %15, %cst_14 {dimension_numbers = #tpu.dot_dimension_numbers<[1], [0], [0], [1], [0, 0, 1, 1], [], []>} : vector<8x512xf32>, vector<512x256xf32>, vector<8x256xf32> -> vector<8x256xf32>
    %c0_15 = arith.constant 0 : index
    %c0_16 = arith.constant 0 : index
    %17 = vector.load %arg6[%c0_15, %c0_16] : memref<1x256xf32, #tpu.memory_space<vmem>>, vector<1x256xf32>
    %18 = vector.broadcast %17 : vector<1x256xf32> to vector<8x256xf32>
    %19 = arith.addf %16, %18 : vector<8x256xf32>
    %cst_17 = arith.constant 0.000000e+00 : f32
    %20 = vector.broadcast %cst_17 : f32 to vector<8x256xf32>
    %21 = arith.maximumf %19, %20 : vector<8x256xf32>
    %c0_18 = arith.constant 0 : index
    %c0_19 = arith.constant 0 : index
    %22 = vector.load %arg7[%c0_18, %c0_19] : memref<256x128xf32, #tpu.memory_space<vmem>>, vector<256x128xf32>
    %cst_20 = arith.constant dense<0.000000e+00> : vector<8x128xf32>
    %23 = tpu.matmul %21, %22, %cst_20 {dimension_numbers = #tpu.dot_dimension_numbers<[1], [0], [0], [1], [0, 0, 1, 1], [], []>} : vector<8x256xf32>, vector<256x128xf32>, vector<8x128xf32> -> vector<8x128xf32>
    %c0_21 = arith.constant 0 : index
    %c0_22 = arith.constant 0 : index
    %24 = vector.load %arg8[%c0_21, %c0_22] : memref<1x128xf32, #tpu.memory_space<vmem>>, vector<1x128xf32>
    %25 = vector.broadcast %24 : vector<1x128xf32> to vector<8x128xf32>
    %26 = arith.addf %23, %25 : vector<8x128xf32>
    %c0_23 = arith.constant 0 : index
    %c0_24 = arith.constant 0 : index
    %27 = vector.load %arg9[%c0_23, %c0_24] : memref<8x128xf32, #tpu.memory_space<vmem>>, vector<8x128xf32>
    tpu.vector_store %arg9[%c0_23, %c0_24], %26 {strides = array<i32>} : memref<8x128xf32, #tpu.memory_space<vmem>>, vector<8x128xf32>,
    return
  }
}

</mosaic_0001>

<bundles_post_ra>
// kernel: sim_nn_forward.1
= control target key start
LH: loop header
LB: loop body
LE: loop exit
PB: predicated region body
PF: predicated region fallthrough
CT: control target
= control target key end

     0   :  { %14 = vsyncpa [#allocation3], 0  ;;  %s6238_s0 = inlined_call_operand.vmem [shape: f32[8,1024], index: 0, kind: input, shape index: {}]   ;;  %s6239_s1 = inlined_call_operand.hbm [shape: f32[1024,1024], index: 1, kind: input, shape index: {}]   ;;  %s6240_s2 = inlined_call_operand.hbm [shape: f32[1,1024], index: 2, kind: input, shape index: {}]   ;;  %s6241_s3 = inlined_call_operand.hbm [shape: f32[1024,512], index: 3, kind: input, shape index: {}]   ;;  %s6242_s4 = inlined_call_operand.hbm [shape: f32[1,512], index: 4, kind: input, shape index: {}]   ;;  %s6243_s5 = inlined_call_operand.hbm [shape: f32[512,256], index: 5, kind: input, shape index: {}]   ;;  %s6244_s6 = inlined_call_operand.hbm [shape: f32[1,256], index: 6, kind: input, shape index: {}]   ;;  %s6245_s7 = inlined_call_operand.hbm [shape: f32[256,128], index: 7, kind: input, shape index: {}]   ;;  %s6246_s8 = inlined_call_operand.hbm [shape: f32[1,128], index: 8, kind: input, shape index: {}]   ;;  %s6247_s9 = inlined_call_operand.vmem [shape: f32[8,128], index: 9, kind: output, shape index: {}]  }
   0x1   :  { %15 = vsyncpa [#allocation5], 0 }
   0x2   :  { %16 = vsyncpa [#allocation8], 0 }
   0x3   :  { %17 = vsyncpa [#allocation11], 0 }
   0x4   :  { %18 = vsyncpa [#allocation14], 0  ;;  %s5868_s30 = smov [#allocation4]   ;;  %s5869_s11 = smov [#allocation7]  }
   0x5   :  { %s39_s10 = sshll.u32 %s5868_s30, 4  ;;  %s61_s12 = sshll.u32 %s5869_s11, 4  ;;  %s40_s10 = int_to_ptr.vmem [resolvable:$true] %s39_s10  ;;  %s62_s12 = int_to_ptr.vmem [resolvable:$true] %s61_s12 }
   0x6   :  { %s5682_s15 = scalar_lea.hbm %s6240_s2, 128 }
   0x7   :  { %p5683_p0 = scmp.ne.s32.totalorder %s6240_s2, %s5682_s15  ;;  %p5686_p1 = scmp.lt.u32.totalorder %s5682_s15, %s6240_s2 }
   0x9   :  { %p5688_p2 = pnand %p5686_p1, %p5683_p0 }
   0xb   :  { %5691 = shalt.err (!%p5688_p2)
}
   0xc   :  { %s5692_s20 = scalar_lea.vmem %s40_s10, 128  ;;  %p5697_p4 = scmp.lt.s32.totalorder %s40_s10, %s40_s10 }
   0xd   :  { %p5693_p3 = scmp.ne.s32.totalorder %s40_s10, %s5692_s20  ;;  %p5698_p5 = scmp.lt.s32.totalorder %s5692_s20, %s5692_s20 }
   0xf   :  { %p5699_p6 = por %p5698_p5, %p5697_p4 }
  0x11   :  { %p5700_p7 = pnand %p5699_p6, %p5693_p3 }
  0x13   :  { %5703 = shalt.err (!%p5700_p7)
}
  0x14   :  { %42 = dma.hbm_to_vmem [thread:$0]  %s6240_s2, 128, %s40_s10, [#allocation5]  }
  0x15   :  { %s5704_s25 = scalar_lea.hbm %s6242_s4, 64 }
  0x16   :  { %p5705_p8 = scmp.ne.s32.totalorder %s6242_s4, %s5704_s25  ;;  %p5708_p9 = scmp.lt.u32.totalorder %s5704_s25, %s6242_s4 }
  0x18   :  { %p5710_p10 = pnand %p5708_p9, %p5705_p8 }
  0x1a   :  { %5713 = shalt.err (!%p5710_p10)
}
  0x1b   :  { %s5714_s30 = scalar_lea.vmem %s62_s12, 64  ;;  %p5719_p12 = scmp.lt.s32.totalorder %s62_s12, %s62_s12 }
  0x1c   :  { %p5715_p11 = scmp.ne.s32.totalorder %s62_s12, %s5714_s30  ;;  %p5720_p13 = scmp.lt.s32.totalorder %s5714_s30, %s5714_s30 }
  0x1e   :  { %p5721_p0 = por %p5720_p13, %p5719_p12 }
  0x20   :  { %p5722_p1 = pnand %p5721_p0, %p5715_p11 }
  0x22   :  { %5725 = shalt.err (!%p5722_p1)
}
  0x23   :  { %64 = dma.hbm_to_vmem [thread:$0]  %s6242_s4, 64, %s62_s12, [#allocation8]  }
  0x24   :  { %s5870_s11 = smov [#allocation10]   ;;  %s5871_s14 = smov [#allocation2]  }
  0x25   :  { %s83_s13 = sshll.u32 %s5870_s11, 4  ;;  %s26_s15 = sshll.u32 %s5871_s14, 4  ;;  %s84_s13 = int_to_ptr.vmem [resolvable:$true] %s83_s13  ;;  %s5958_s15 = int_to_ptr.vmem [resolvable:$true] %s26_s15 }
  0x26   :  { %s5726_s18 = scalar_lea.hbm %s6244_s6, 32 }
  0x27   :  { %p5727_p2 = scmp.ne.s32.totalorder %s6244_s6, %s5726_s18  ;;  %p5730_p3 = scmp.lt.u32.totalorder %s5726_s18, %s6244_s6 }
  0x29   :  { %p5732_p4 = pnand %p5730_p3, %p5727_p2 }
  0x2b   :  { %5735 = shalt.err (!%p5732_p4)
}
  0x2c   :  { %s5736_s4 = scalar_lea.vmem %s84_s13, 32  ;;  %p5741_p6 = scmp.lt.s32.totalorder %s84_s13, %s84_s13 }
  0x2d   :  { %p5737_p5 = scmp.ne.s32.totalorder %s84_s13, %s5736_s4  ;;  %p5742_p7 = scmp.lt.s32.totalorder %s5736_s4, %s5736_s4 }
  0x2f   :  { %p5743_p8 = por %p5742_p7, %p5741_p6 }
  0x31   :  { %p5744_p9 = pnand %p5743_p8, %p5737_p5 }
  0x33   :  { %5747 = shalt.err (!%p5744_p9)
}
  0x34   :  { %86 = dma.hbm_to_vmem [thread:$0]  %s6244_s6, 32, %s84_s13, [#allocation11]  }
  0x35   :  { %s5748_s26 = scalar_lea.hbm %s6239_s1, 131072 }
  0x36   :  { %p5749_p10 = scmp.ne.s32.totalorder %s6239_s1, %s5748_s26  ;;  %p5752_p11 = scmp.lt.u32.totalorder %s5748_s26, %s6239_s1 }
  0x38   :  { %p5754_p12 = pnand %p5752_p11, %p5749_p10 }
  0x3a   :  { %5757 = shalt.err (!%p5754_p12)
}
  0x3b   :  { %s5758_s2 = scalar_lea.vmem %s5958_s15, 131072  ;;  %p5763_p0 = scmp.lt.s32.totalorder %s5958_s15, %s5958_s15 }
  0x3c   :  { %p5759_p13 = scmp.ne.s32.totalorder %s5958_s15, %s5758_s2  ;;  %p5764_p1 = scmp.lt.s32.totalorder %s5758_s2, %s5758_s2 }
  0x3e   :  { %p5765_p2 = por %p5764_p1, %p5763_p0 }
  0x40   :  { %p5766_p3 = pnand %p5765_p2, %p5759_p13 }
  0x42   :  { %5769 = shalt.err (!%p5766_p3)
}
  0x43   :  { %s5872_s6 = smov 1024   ;;  %s5873_s10 = smov 64  }
  0x44   :  { %32 = dma.hbm_to_vmem [thread:$0]  %s6239_s1, 131072, %s5958_s15, [#allocation3], %s5872_s6, %s5872_s6, %s5873_s10  }
  0x45   :  { %s5874_s14 = smov [#allocation6]   ;;  %s5770_s19 = scalar_lea.hbm %s6241_s3, 65536 }
  0x46   :  { %s48_s16 = sshll.u32 %s5874_s14, 4  ;;  %p5771_p4 = scmp.ne.s32.totalorder %s6241_s3, %s5770_s19  ;;  %s49_s16 = int_to_ptr.vmem [resolvable:$true] %s48_s16 }
  0x47   :  { %p5774_p5 = scmp.lt.u32.totalorder %s5770_s19, %s6241_s3 }
  0x49   :  { %p5776_p6 = pnand %p5774_p5, %p5771_p4 }
  0x4b   :  { %5779 = shalt.err (!%p5776_p6)
}
  0x4c   :  { %s5780_s12 = scalar_lea.vmem %s49_s16, 65536  ;;  %p5785_p8 = scmp.lt.s32.totalorder %s49_s16, %s49_s16 }
  0x4d   :  { %p5781_p7 = scmp.ne.s32.totalorder %s49_s16, %s5780_s12  ;;  %p5786_p9 = scmp.lt.s32.totalorder %s5780_s12, %s5780_s12 }
  0x4f   :  { %p5787_p10 = por %p5786_p9, %p5785_p8 }
  0x51   :  { %p5788_p11 = pnand %p5787_p10, %p5781_p7 }
  0x53   :  { %5791 = shalt.err (!%p5788_p11)
}
  0x54   :  { %s5875_s1 = smov 512   ;;  %s5876_s15 = smov 32  }
  0x55   :  { %54 = dma.hbm_to_vmem [thread:$0]  %s6241_s3, 65536, %s49_s16, [#allocation5], %s5875_s1, %s5875_s1, %s5876_s15  }
  0x56   :  { %s5877_s25 = smov [#allocation9]   ;;  %s5792_s29 = scalar_lea.hbm %s6243_s5, 16384 }
  0x57   :  { %s70_s26 = sshll.u32 %s5877_s25, 4  ;;  %p5793_p12 = scmp.ne.s32.totalorder %s6243_s5, %s5792_s29  ;;  %s71_s26 = int_to_ptr.vmem [resolvable:$true] %s70_s26 }
  0x58   :  { %p5796_p13 = scmp.lt.u32.totalorder %s5792_s29, %s6243_s5 }
  0x5a   :  { %p5798_p0 = pnand %p5796_p13, %p5793_p12 }
  0x5c   :  { %5801 = shalt.err (!%p5798_p0)
}
  0x5d   :  { %s5802_s11 = scalar_lea.vmem %s71_s26, 16384  ;;  %p5807_p2 = scmp.lt.s32.totalorder %s71_s26, %s71_s26 }
  0x5e   :  { %p5803_p1 = scmp.ne.s32.totalorder %s71_s26, %s5802_s11  ;;  %p5808_p3 = scmp.lt.s32.totalorder %s5802_s11, %s5802_s11 }
  0x60   :  { %p5809_p4 = por %p5808_p3, %p5807_p2 }
  0x62   :  { %p5810_p5 = pnand %p5809_p4, %p5803_p1 }
  0x64   :  { %5813 = shalt.err (!%p5810_p5)
}
  0x65   :  { %s5878_s3 = smov 256   ;;  %s5879_s13 = smov 16  }
  0x66   :  { %76 = dma.hbm_to_vmem [thread:$0]  %s6243_s5, 16384, %s71_s26, [#allocation8], %s5878_s3, %s5878_s3, %s5879_s13  }
  0x67   :  { %s5880_s17 = smov [#allocation12]   ;;  %s5814_s21 = scalar_lea.hbm %s6245_s7, 4096 }
  0x68   :  { %s92_s18 = sshll.u32 %s5880_s17, 4  ;;  %p5815_p6 = scmp.ne.s32.totalorder %s6245_s7, %s5814_s21  ;;  %s93_s18 = int_to_ptr.vmem [resolvable:$true] %s92_s18 }
  0x69   :  { %p5818_p7 = scmp.lt.u32.totalorder %s5814_s21, %s6245_s7 }
  0x6b   :  { %p5820_p8 = pnand %p5818_p7, %p5815_p6 }
  0x6d   :  { %5823 = shalt.err (!%p5820_p8)
}
  0x6e   :  { %s5824_s15 = scalar_lea.vmem %s93_s18, 4096  ;;  %p5829_p10 = scmp.lt.s32.totalorder %s93_s18, %s93_s18 }
  0x6f   :  { %p5825_p9 = scmp.ne.s32.totalorder %s93_s18, %s5824_s15  ;;  %p5830_p11 = scmp.lt.s32.totalorder %s5824_s15, %s5824_s15 }
  0x71   :  { %p5831_p12 = por %p5830_p11, %p5829_p10 }
  0x73   :  { %p5832_p13 = pnand %p5831_p12, %p5825_p9 }
  0x75   :  { %5835 = shalt.err (!%p5832_p13)
}
  0x76   :  { %s5881_s5 = smov 128   ;;  %s5882_s23 = smov 8  }
  0x77   :  { %98 = dma.hbm_to_vmem [thread:$0]  %s6245_s7, 4096, %s93_s18, [#allocation11], %s5881_s5, %s5881_s5, %s5882_s23  }
  0x78   :  { %s5883_s26 = smov [#allocation13]   ;;  %s5836_s30 = scalar_lea.hbm %s6246_s8, 16 }
  0x79   :  { %s105_s27 = sshll.u32 %s5883_s26, 4  ;;  %p5837_p0 = scmp.ne.s32.totalorder %s6246_s8, %s5836_s30  ;;  %s106_s27 = int_to_ptr.vmem [resolvable:$true] %s105_s27 }
  0x7a   :  { %p5840_p1 = scmp.lt.u32.totalorder %s5836_s30, %s6246_s8 }
  0x7c   :  { %p5842_p2 = pnand %p5840_p1, %p5837_p0 }
  0x7e   :  { %5845 = shalt.err (!%p5842_p2)
}
  0x7f   :  { %s5846_s3 = scalar_lea.vmem %s106_s27, 16  ;;  %s5850_s7 = scalar_lea.vmem %s106_s27, 32 }
  0x80   :  { %p5847_p3 = scmp.ne.s32.totalorder %s106_s27, %s5846_s3  ;;  %p5851_p4 = scmp.lt.s32.totalorder %s106_s27, %s106_s27 }
  0x81   :  { %p5852_p5 = scmp.lt.s32.totalorder %s5850_s7, %s5846_s3 }
  0x83   :  { %p5853_p6 = por %p5852_p5, %p5851_p4 }
  0x85   :  { %p5854_p7 = pnand %p5853_p6, %p5847_p3 }
  0x87   :  { %5857 = shalt.err (!%p5854_p7)
}
  0x88   :  { %108 = dma.hbm_to_vmem [thread:$0]  %s6246_s8, 16, %s106_s27, [#allocation14]  }
  0x89   :  { %5858 = dma.done.wait [#allocation3], 131072  }
  0x8a   :  { %5859 = vsyncadd [#allocation3], 4294836224 }
  0x8b   :  { %5860 = dma.done.wait [#allocation5], 65664  }
  0x8c   :  { %5861 = vsyncadd [#allocation5], 4294901632 }
  0x8d   :  { %5862 = dma.done.wait [#allocation8], 16448  }
  0x8e   :  { %5863 = vsyncadd [#allocation8], 4294950848 }
  0x8f   :  { %5864 = dma.done.wait [#allocation11], 4128  }
  0x90   :  { %5865 = vsyncadd [#allocation11], 4294963168 }
  0x91   :  { %5866 = dma.done.wait [#allocation14], 16  }
  0x92   :  { %5867 = vsyncadd [#allocation14], 4294967280  ;;  %v142_v0 = vld [vmem:[#allocation2 + $0x8] sm:$0xff]  ;;  %v141_v5 = vld [vmem:[#allocation2] sm:$0xff] }
  0x93   :  { %v150_v1 = vld [vmem:[#allocation2 + $0x48] sm:$0xff]  ;;  %v149_v6 = vld [vmem:[#allocation2 + $0x40] sm:$0xff] }
  0x94   :  { %v398_v2 = vld [vmem:[#allocation2 + $0x808] sm:$0xff]  ;;  %v3896_v3 = vpack.c.bf16 %v150_v1, %v142_v0  ;;  %v3898_v8 = vpack.c.bf16 %v149_v6, %v141_v5  ;;  %v397_v9 = vld [vmem:[#allocation2 + $0x800] sm:$0xff] }
  0x95   :  { %v406_v4 = vld [vmem:[#allocation2 + $0x848] sm:$0xff]  ;;  %v405_v10 = vld [vmem:[#allocation2 + $0x840] sm:$0xff] }
  0x96   :  { %v3960_v7 = vpack.c.bf16 %v406_v4, %v398_v2  ;;  %v158_v11 = vld [vmem:[#allocation2 + $0x88] sm:$0xff]  ;;  %3897 = vmatprep.subr.bf16.mxu1 %v3896_v3  ;;  %v3962_v12 = vpack.c.bf16 %v405_v10, %v397_v9  ;;  %v157_v18 = vld [vmem:[#allocation2 + $0x80] sm:$0xff] }
  0x97   :  { %v166_v13 = vld [vmem:[#allocation2 + $0xc8] sm:$0xff]  ;;  %3899 = vmatpush1.bf16.msra.mxu1 %v3898_v8  ;;  %v165_v19 = vld [vmem:[#allocation2 + $0xc0] sm:$0xff] }
  0x98   :  { %v414_v14 = vld [vmem:[#allocation2 + $0x888] sm:$0xff]  ;;  %3961 = vmatprep.subr.bf16.mxu0 %v3960_v7  ;;  %v3900_v16 = vpack.c.bf16 %v166_v13, %v158_v11  ;;  %v413_v20 = vld [vmem:[#allocation2 + $0x880] sm:$0xff]  ;;  %v3902_v21 = vpack.c.bf16 %v165_v19, %v157_v18 }
  0x99   :  { %v422_v15 = vld [vmem:[#allocation2 + $0x8c8] sm:$0xff]  ;;  %3963 = vmatpush1.bf16.msra.mxu0 %v3962_v12  ;;  %v421_v22 = vld [vmem:[#allocation2 + $0x8c0] sm:$0xff] }
  0x9a   :  { %v3964_v17 = vpack.c.bf16 %v422_v15, %v414_v14  ;;  %v174_v23 = vld [vmem:[#allocation2 + $0x108] sm:$0xff]  ;;  %3901 = vmatprep.subr.bf16.mxu1 %v3900_v16  ;;  %v3966_v25 = vpack.c.bf16 %v421_v22, %v413_v20  ;;  %v173_v29 = vld [vmem:[#allocation2 + $0x100] sm:$0xff] }
  0x9b   :  { %v182_v24 = vld [vmem:[#allocation2 + $0x148] sm:$0xff]  ;;  %v181_v31 = vld [vmem:[#allocation2 + $0x140] sm:$0xff]  ;;  %3903 = vmatpush1.bf16.msra.mxu1 %v3902_v21 }
  0x9c   :  { %3965 = vmatprep.subr.bf16.mxu0 %v3964_v17  ;;  %v3904_v26 = vpack.c.bf16 %v182_v24, %v174_v23  ;;  %v430_v27 = vld [vmem:[#allocation2 + $0x908] sm:$0xff]  ;;  %v429_v32 = vld [vmem:[#allocation2 + $0x900] sm:$0xff]  ;;  %v3906_v34 = vpack.c.bf16 %v181_v31, %v173_v29 }
  0x9d   :  { %v438_v28 = vld [vmem:[#allocation2 + $0x948] sm:$0xff]  ;;  %v437_v33 = vld [vmem:[#allocation2 + $0x940] sm:$0xff]  ;;  %3967 = vmatpush1.bf16.msra.mxu0 %v3966_v25 }
  0x9e   :  { %v3968_v30 = vpack.c.bf16 %v438_v28, %v430_v27  ;;  %v190_v35 = vld [vmem:[#allocation2 + $0x188] sm:$0xff]  ;;  %3905 = vmatprep.subr.bf16.mxu1 %v3904_v26  ;;  %v3970_v38 = vpack.c.bf16 %v437_v33, %v429_v32  ;;  %v189_v41 = vld [vmem:[#allocation2 + $0x180] sm:$0xff] }
  0x9f   :  { %v198_v36 = vld [vmem:[#allocation2 + $0x1c8] sm:$0xff]  ;;  %v197_v42 = vld [vmem:[#allocation2 + $0x1c0] sm:$0xff]  ;;  %3907 = vmatpush1.bf16.msra.mxu1 %v3906_v34 }
  0xa0   :  { %v446_v37 = vld [vmem:[#allocation2 + $0x988] sm:$0xff]  ;;  %v3908_v39 = vpack.c.bf16 %v198_v36, %v190_v35  ;;  %3969 = vmatprep.subr.bf16.mxu0 %v3968_v30  ;;  %v445_v44 = vld [vmem:[#allocation2 + $0x980] sm:$0xff]  ;;  %v3910_v50 = vpack.c.bf16 %v197_v42, %v189_v41 }
  0xa1   :  { %v454_v40 = vld [vmem:[#allocation2 + $0x9c8] sm:$0xff]  ;;  %v453_v45 = vld [vmem:[#allocation2 + $0x9c0] sm:$0xff]  ;;  %3971 = vmatpush1.bf16.msra.mxu0 %v3970_v38 }
  0xa2   :  { %v3972_v43 = vpack.c.bf16 %v454_v40, %v446_v37  ;;  %v206_v46 = vld [vmem:[#allocation2 + $0x208] sm:$0xff]  ;;  %3909 = vmatprep.subr.bf16.mxu1 %v3908_v39  ;;  %v3974_v51 = vpack.c.bf16 %v453_v45, %v445_v44  ;;  %v205_v53 = vld [vmem:[#allocation2 + $0x200] sm:$0xff] }
  0xa3   :  { %v214_v47 = vld [vmem:[#allocation2 + $0x248] sm:$0xff]  ;;  %v213_v54 = vld [vmem:[#allocation2 + $0x240] sm:$0xff]  ;;  %3911 = vmatpush1.bf16.msra.mxu1 %v3910_v50 }
  0xa4   :  { %v462_v48 = vld [vmem:[#allocation2 + $0xa08] sm:$0xff]  ;;  %v3912_v52 = vpack.c.bf16 %v214_v47, %v206_v46  ;;  %v461_v55 = vld [vmem:[#allocation2 + $0xa00] sm:$0xff]  ;;  %3973 = vmatprep.subr.bf16.mxu0 %v3972_v43  ;;  %v3914_v62 = vpack.c.bf16 %v213_v54, %v205_v53 }
  0xa5   :  { %v470_v49 = vld [vmem:[#allocation2 + $0xa48] sm:$0xff]  ;;  %v469_v57 = vld [vmem:[#allocation2 + $0xa40] sm:$0xff]  ;;  %3975 = vmatpush1.bf16.msra.mxu0 %v3974_v51 }
  0xa6   :  { %v3976_v56 = vpack.c.bf16 %v470_v49, %v462_v48  ;;  %v222_v58 = vld [vmem:[#allocation2 + $0x288] sm:$0xff]  ;;  %3913 = vmatprep.subr.bf16.mxu1 %v3912_v52  ;;  %v3978_v63 = vpack.c.bf16 %v469_v57, %v461_v55  ;;  %v221_v1 = vld [vmem:[#allocation2 + $0x280] sm:$0xff] }
  0xa7   :  { %v230_v59 = vld [vmem:[#allocation2 + $0x2c8] sm:$0xff]  ;;  %v229_v2 = vld [vmem:[#allocation2 + $0x2c0] sm:$0xff]  ;;  %3915 = vmatpush1.bf16.msra.mxu1 %v3914_v62 }
  0xa8   :  { %v478_v60 = vld [vmem:[#allocation2 + $0xa88] sm:$0xff]  ;;  %v3916_v0 = vpack.c.bf16 %v230_v59, %v222_v58  ;;  %v477_v3 = vld [vmem:[#allocation2 + $0xa80] sm:$0xff]  ;;  %3977 = vmatprep.subr.bf16.mxu0 %v3976_v56  ;;  %v3918_v10 = vpack.c.bf16 %v229_v2, %v221_v1 }
  0xa9   :  { %v486_v61 = vld [vmem:[#allocation2 + $0xac8] sm:$0xff]  ;;  %v485_v5 = vld [vmem:[#allocation2 + $0xac0] sm:$0xff]  ;;  %3979 = vmatpush1.bf16.msra.mxu0 %v3978_v63 }
  0xaa   :  { %v3980_v4 = vpack.c.bf16 %v486_v61, %v478_v60  ;;  %v238_v6 = vld [vmem:[#allocation2 + $0x308] sm:$0xff]  ;;  %3917 = vmatprep.subr.bf16.mxu1 %v3916_v0  ;;  %v3982_v11 = vpack.c.bf16 %v485_v5, %v477_v3  ;;  %v237_v13 = vld [vmem:[#allocation2 + $0x300] sm:$0xff] }
  0xab   :  { %v246_v7 = vld [vmem:[#allocation2 + $0x348] sm:$0xff]  ;;  %v245_v14 = vld [vmem:[#allocation2 + $0x340] sm:$0xff]  ;;  %3919 = vmatpush1.bf16.msra.mxu1 %v3918_v10 }
  0xac   :  { %v494_v8 = vld [vmem:[#allocation2 + $0xb08] sm:$0xff]  ;;  %v3920_v12 = vpack.c.bf16 %v246_v7, %v238_v6  ;;  %v493_v15 = vld [vmem:[#allocation2 + $0xb00] sm:$0xff]  ;;  %3981 = vmatprep.subr.bf16.mxu0 %v3980_v4  ;;  %v3922_v22 = vpack.c.bf16 %v245_v14, %v237_v13 }
  0xad   :  { %v502_v9 = vld [vmem:[#allocation2 + $0xb48] sm:$0xff]  ;;  %v501_v17 = vld [vmem:[#allocation2 + $0xb40] sm:$0xff]  ;;  %3983 = vmatpush1.bf16.msra.mxu0 %v3982_v11 }
  0xae   :  { %v3984_v16 = vpack.c.bf16 %v502_v9, %v494_v8  ;;  %v254_v18 = vld [vmem:[#allocation2 + $0x388] sm:$0xff]  ;;  %3921 = vmatprep.subr.bf16.mxu1 %v3920_v12  ;;  %v3986_v23 = vpack.c.bf16 %v501_v17, %v493_v15  ;;  %v253_v25 = vld [vmem:[#allocation2 + $0x380] sm:$0xff] }
  0xaf   :  { %v262_v19 = vld [vmem:[#allocation2 + $0x3c8] sm:$0xff]  ;;  %v261_v26 = vld [vmem:[#allocation2 + $0x3c0] sm:$0xff]  ;;  %3923 = vmatpush1.bf16.msra.mxu1 %v3922_v22 }
  0xb0   :  { %v510_v20 = vld [vmem:[#allocation2 + $0xb88] sm:$0xff]  ;;  %v3924_v24 = vpack.c.bf16 %v262_v19, %v254_v18  ;;  %v509_v27 = vld [vmem:[#allocation2 + $0xb80] sm:$0xff]  ;;  %3985 = vmatprep.subr.bf16.mxu0 %v3984_v16  ;;  %v3926_v34 = vpack.c.bf16 %v261_v26, %v253_v25  ;;  %v6046_v19 = vld [vmem:[%s6238_s0 + $0x18] sm:$0xff] }
  0xb1   :  { %v518_v21 = vld [vmem:[#allocation2 + $0xbc8] sm:$0xff]  ;;  %v517_v29 = vld [vmem:[#allocation2 + $0xbc0] sm:$0xff]  ;;  %3987 = vmatpush1.bf16.msra.mxu0 %v3986_v23  ;;  %1342 = vmatprep.mubr.f32.mxu0 %v6046_v19 }
  0xb2   :  { %v3988_v28 = vpack.c.bf16 %v518_v21, %v510_v20  ;;  %v270_v30 = vld [vmem:[#allocation2 + $0x408] sm:$0xff]  ;;  %3925 = vmatprep.subr.bf16.mxu1 %v3924_v24  ;;  %v3990_v35 = vpack.c.bf16 %v517_v29, %v509_v27  ;;  %v269_v37 = vld [vmem:[#allocation2 + $0x400] sm:$0xff] }
  0xb3   :  { %v278_v31 = vld [vmem:[#allocation2 + $0x448] sm:$0xff]  ;;  %v277_v38 = vld [vmem:[#allocation2 + $0x440] sm:$0xff]  ;;  %3927 = vmatpush1.bf16.msra.mxu1 %v3926_v34 }
  0xb4   :  { %v526_v32 = vld [vmem:[#allocation2 + $0xc08] sm:$0xff]  ;;  %v3928_v36 = vpack.c.bf16 %v278_v31, %v270_v30  ;;  %v525_v39 = vld [vmem:[#allocation2 + $0xc00] sm:$0xff]  ;;  %3989 = vmatprep.subr.bf16.mxu0 %v3988_v28  ;;  %v3930_v46 = vpack.c.bf16 %v277_v38, %v269_v37 }
  0xb5   :  { %v534_v33 = vld [vmem:[#allocation2 + $0xc48] sm:$0xff]  ;;  %v533_v41 = vld [vmem:[#allocation2 + $0xc40] sm:$0xff]  ;;  %3991 = vmatpush1.bf16.msra.mxu0 %v3990_v35 }
  0xb6   :  { %v3992_v40 = vpack.c.bf16 %v534_v33, %v526_v32  ;;  %v286_v42 = vld [vmem:[#allocation2 + $0x488] sm:$0xff]  ;;  %3929 = vmatprep.subr.bf16.mxu1 %v3928_v36  ;;  %v3994_v47 = vpack.c.bf16 %v533_v41, %v525_v39  ;;  %v285_v49 = vld [vmem:[#allocation2 + $0x480] sm:$0xff] }
  0xb7   :  { %v294_v43 = vld [vmem:[#allocation2 + $0x4c8] sm:$0xff]  ;;  %v293_v50 = vld [vmem:[#allocation2 + $0x4c0] sm:$0xff]  ;;  %3931 = vmatpush1.bf16.msra.mxu1 %v3930_v46 }
  0xb8   :  { %v542_v44 = vld [vmem:[#allocation2 + $0xc88] sm:$0xff]  ;;  %v3932_v48 = vpack.c.bf16 %v294_v43, %v286_v42  ;;  %v541_v51 = vld [vmem:[#allocation2 + $0xc80] sm:$0xff]  ;;  %3993 = vmatprep.subr.bf16.mxu0 %v3992_v40  ;;  %v3934_v58 = vpack.c.bf16 %v293_v50, %v285_v49 }
  0xb9   :  { %v550_v45 = vld [vmem:[#allocation2 + $0xcc8] sm:$0xff]  ;;  %v549_v53 = vld [vmem:[#allocation2 + $0xcc0] sm:$0xff]  ;;  %3995 = vmatpush1.bf16.msra.mxu0 %v3994_v47 }
  0xba   :  { %v3996_v52 = vpack.c.bf16 %v550_v45, %v542_v44  ;;  %v302_v54 = vld [vmem:[#allocation2 + $0x508] sm:$0xff]  ;;  %3933 = vmatprep.subr.bf16.mxu1 %v3932_v48  ;;  %v3998_v59 = vpack.c.bf16 %v549_v53, %v541_v51  ;;  %v301_v61 = vld [vmem:[#allocation2 + $0x500] sm:$0xff] }
  0xbb   :  { %v310_v55 = vld [vmem:[#allocation2 + $0x548] sm:$0xff]  ;;  %v309_v62 = vld [vmem:[#allocation2 + $0x540] sm:$0xff]  ;;  %3935 = vmatpush1.bf16.msra.mxu1 %v3934_v58 }
  0xbc   :  { %v558_v56 = vld [vmem:[#allocation2 + $0xd08] sm:$0xff]  ;;  %v3936_v60 = vpack.c.bf16 %v310_v55, %v302_v54  ;;  %v557_v63 = vld [vmem:[#allocation2 + $0xd00] sm:$0xff]  ;;  %3997 = vmatprep.subr.bf16.mxu0 %v3996_v52  ;;  %v3938_v6 = vpack.c.bf16 %v309_v62, %v301_v61 }
  0xbd   :  { %v566_v57 = vld [vmem:[#allocation2 + $0xd48] sm:$0xff]  ;;  %v565_v1 = vld [vmem:[#allocation2 + $0xd40] sm:$0xff]  ;;  %3999 = vmatpush1.bf16.msra.mxu0 %v3998_v59 }
  0xbe   :  { %v4000_v0 = vpack.c.bf16 %v566_v57, %v558_v56  ;;  %v318_v2 = vld [vmem:[#allocation2 + $0x588] sm:$0xff]  ;;  %v317_v7 = vld [vmem:[#allocation2 + $0x580] sm:$0xff]  ;;  %3937 = vmatprep.subr.bf16.mxu1 %v3936_v60  ;;  %v4002_v8 = vpack.c.bf16 %v565_v1, %v557_v63  ;;  %v152_v1 = vld [vmem:[#allocation2 + $0x58] sm:$0xff] }
  0xbf   :  { %v326_v3 = vld [vmem:[#allocation2 + $0x5c8] sm:$0xff]  ;;  %v325_v10 = vld [vmem:[#allocation2 + $0x5c0] sm:$0xff]  ;;  %3939 = vmatpush1.bf16.msra.mxu1 %v3938_v6 }
  0xc0   :  { %v574_v4 = vld [vmem:[#allocation2 + $0xd88] sm:$0xff]  ;;  %v3940_v9 = vpack.c.bf16 %v326_v3, %v318_v2  ;;  %v573_v11 = vld [vmem:[#allocation2 + $0xd80] sm:$0xff]  ;;  %4001 = vmatprep.subr.bf16.mxu0 %v4000_v0  ;;  %v3942_v20 = vpack.c.bf16 %v325_v10, %v317_v7  ;;  %v144_v0 = vld [vmem:[#allocation2 + $0x18] sm:$0xff] }
  0xc1   :  { %v582_v5 = vld [vmem:[#allocation2 + $0xdc8] sm:$0xff]  ;;  %v581_v12 = vld [vmem:[#allocation2 + $0xdc0] sm:$0xff]  ;;  %4003 = vmatpush1.bf16.msra.mxu0 %v4002_v8  ;;  %v4152_v6 = vpack.c.bf16 %v152_v1, %v144_v0  ;;  %v143_v8 = vld [vmem:[#allocation2 + $0x10] sm:$0xff] }
  0xc2   :  { %v4004_v13 = vpack.c.bf16 %v582_v5, %v574_v4  ;;  %v334_v14 = vld [vmem:[#allocation2 + $0x608] sm:$0xff]  ;;  %3941 = vmatprep.subr.bf16.mxu1 %v3940_v9  ;;  %v4006_v21 = vpack.c.bf16 %v581_v12, %v573_v11  ;;  %v333_v23 = vld [vmem:[#allocation2 + $0x600] sm:$0xff]  ;;  %v151_v9 = vld [vmem:[#allocation2 + $0x50] sm:$0xff] }
  0xc3   :  { %v342_v15 = vld [vmem:[#allocation2 + $0x648] sm:$0xff]  ;;  %v341_v24 = vld [vmem:[#allocation2 + $0x640] sm:$0xff]  ;;  %3943 = vmatpush1.bf16.msra.mxu1 %v3942_v20  ;;  %v160_v12 = vld [vmem:[#allocation2 + $0x98] sm:$0xff]  ;;  %v4154_v20 = vpack.c.bf16 %v151_v9, %v143_v8 }
  0xc4   :  { %v6040_v16 = vld [vmem:[%s6238_s0 + $0x8] sm:$0xff]  ;;  %v3944_v22 = vpack.c.bf16 %v342_v15, %v334_v14  ;;  %v589_v25 = vld [vmem:[#allocation2 + $0xe00] sm:$0xff]  ;;  %4005 = vmatprep.subr.bf16.mxu0 %v4004_v13  ;;  %v3946_v32 = vpack.c.bf16 %v341_v24, %v333_v23  ;;  %v168_v13 = vld [vmem:[#allocation2 + $0xd8] sm:$0xff] }
  0xc5   :  { %v590_v17 = vld [vmem:[#allocation2 + $0xe08] sm:$0xff]  ;;  %1271 = vmatprep.mubr.f32.mxu1 %v6040_v16  ;;  %v597_v27 = vld [vmem:[#allocation2 + $0xe40] sm:$0xff]  ;;  %4007 = vmatpush1.bf16.msra.mxu0 %v4006_v21  ;;  %v159_v24 = vld [vmem:[#allocation2 + $0x90] sm:$0xff] }
  0xc6   :  { %v598_v18 = vld [vmem:[#allocation2 + $0xe48] sm:$0xff]  ;;  %3945 = vmatprep.subr.bf16.mxu1 %v3944_v22  ;;  %v4010_v33 = vpack.c.bf16 %v597_v27, %v589_v25  ;;  %v349_v35 = vld [vmem:[#allocation2 + $0x680] sm:$0xff]  ;;  %v4156_v22 = vpack.c.bf16 %v168_v13, %v160_v12  ;;  %v167_v25 = vld [vmem:[#allocation2 + $0xd0] sm:$0xff] }
  0xc7   :  { %v4008_v26 = vpack.c.bf16 %v598_v18, %v590_v17  ;;  %v350_v28 = vld [vmem:[#allocation2 + $0x688] sm:$0xff]  ;;  %v357_v36 = vld [vmem:[#allocation2 + $0x6c0] sm:$0xff]  ;;  %3947 = vmatpush1.bf16.msra.mxu1 %v3946_v32  ;;  %v135_v18 = vld [vmem:[%s6238_s0 + $0x10] sm:$0xff]  ;;  %v4158_v32 = vpack.c.bf16 %v167_v25, %v159_v24 }
  0xc8   :  { %v358_v29 = vld [vmem:[#allocation2 + $0x6c8] sm:$0xff]  ;;  %v605_v37 = vld [vmem:[#allocation2 + $0xe80] sm:$0xff]  ;;  %v3950_v44 = vpack.c.bf16 %v357_v36, %v349_v35  ;;  %v175_v36 = vld [vmem:[#allocation2 + $0x110] sm:$0xff] }
  0xc9   :  { %v606_v30 = vld [vmem:[#allocation2 + $0xe88] sm:$0xff]  ;;  %v3948_v34 = vpack.c.bf16 %v358_v29, %v350_v28  ;;  %4009 = vmatprep.subr.bf16.mxu0 %v4008_v26  ;;  %v613_v39 = vld [vmem:[#allocation2 + $0xec0] sm:$0xff]  ;;  %v176_v28 = vld [vmem:[#allocation2 + $0x118] sm:$0xff] }
  0xca   :  { %v614_v31 = vld [vmem:[#allocation2 + $0xec8] sm:$0xff]  ;;  %4011 = vmatpush1.bf16.msra.mxu0 %v4010_v33  ;;  %v4014_v45 = vpack.c.bf16 %v613_v39, %v605_v37  ;;  %v365_v47 = vld [vmem:[#allocation2 + $0x700] sm:$0xff]  ;;  %v184_v29 = vld [vmem:[#allocation2 + $0x158] sm:$0xff] }
  0xcb   :  { %v4012_v38 = vpack.c.bf16 %v614_v31, %v606_v30  ;;  %v366_v40 = vld [vmem:[#allocation2 + $0x708] sm:$0xff]  ;;  %3949 = vmatprep.subr.bf16.mxu1 %v3948_v34  ;;  %v373_v48 = vld [vmem:[#allocation2 + $0x740] sm:$0xff]  ;;  %v4160_v34 = vpack.c.bf16 %v184_v29, %v176_v28  ;;  %v183_v37 = vld [vmem:[#allocation2 + $0x150] sm:$0xff] }
  0xcc   :  { %v374_v41 = vld [vmem:[#allocation2 + $0x748] sm:$0xff]  ;;  %v621_v49 = vld [vmem:[#allocation2 + $0xf00] sm:$0xff]  ;;  %3951 = vmatpush1.bf16.msra.mxu1 %v3950_v44  ;;  %v3954_v56 = vpack.c.bf16 %v373_v48, %v365_v47  ;;  %v4162_v44 = vpack.c.bf16 %v183_v37, %v175_v36  ;;  %v191_v48 = vld [vmem:[#allocation2 + $0x190] sm:$0xff] }
  0xcd   :  { %v622_v42 = vld [vmem:[#allocation2 + $0xf08] sm:$0xff]  ;;  %v3952_v46 = vpack.c.bf16 %v374_v41, %v366_v40  ;;  %4013 = vmatprep.subr.bf16.mxu0 %v4012_v38  ;;  %v629_v51 = vld [vmem:[#allocation2 + $0xf40] sm:$0xff]  ;;  %v192_v40 = vld [vmem:[#allocation2 + $0x198] sm:$0xff] }
  0xce   :  { %v630_v43 = vld [vmem:[#allocation2 + $0xf48] sm:$0xff]  ;;  %4015 = vmatpush1.bf16.msra.mxu0 %v4014_v45  ;;  %v4018_v57 = vpack.c.bf16 %v629_v51, %v621_v49  ;;  %v381_v59 = vld [vmem:[#allocation2 + $0x780] sm:$0xff]  ;;  %v200_v41 = vld [vmem:[#allocation2 + $0x1d8] sm:$0xff] }
  0xcf   :  { %v4016_v50 = vpack.c.bf16 %v630_v43, %v622_v42  ;;  %v382_v52 = vld [vmem:[#allocation2 + $0x788] sm:$0xff]  ;;  %3953 = vmatprep.subr.bf16.mxu1 %v3952_v46  ;;  %v389_v60 = vld [vmem:[#allocation2 + $0x7c0] sm:$0xff]  ;;  %v4164_v46 = vpack.c.bf16 %v200_v41, %v192_v40  ;;  %v199_v49 = vld [vmem:[#allocation2 + $0x1d0] sm:$0xff] }
  0xd0   :  { %v390_v53 = vld [vmem:[#allocation2 + $0x7c8] sm:$0xff]  ;;  %v637_v61 = vld [vmem:[#allocation2 + $0xf80] sm:$0xff]  ;;  %3955 = vmatpush1.bf16.msra.mxu1 %v3954_v56  ;;  %v3958_v4 = vpack.c.bf16 %v389_v60, %v381_v59  ;;  %v207_v59 = vld [vmem:[#allocation2 + $0x210] sm:$0xff] }
  0xd1   :  { %v638_v54 = vld [vmem:[#allocation2 + $0xf88] sm:$0xff]  ;;  %v3956_v58 = vpack.c.bf16 %v390_v53, %v382_v52  ;;  %4017 = vmatprep.subr.bf16.mxu0 %v4016_v50  ;;  %v645_v63 = vld [vmem:[#allocation2 + $0xfc0] sm:$0xff]  ;;  %v208_v52 = vld [vmem:[#allocation2 + $0x218] sm:$0xff] }
  0xd2   :  { %v646_v55 = vld [vmem:[#allocation2 + $0xfc8] sm:$0xff]  ;;  %4019 = vmatpush1.bf16.msra.mxu0 %v4018_v57  ;;  %v4022_v5 = vpack.c.bf16 %v645_v63, %v637_v61  ;;  %v653_v7 = vld [vmem:[#allocation2 + $0x1000] sm:$0xff]  ;;  %v216_v53 = vld [vmem:[#allocation2 + $0x258] sm:$0xff] }
  0xd3   :  { %v4020_v62 = vpack.c.bf16 %v646_v55, %v638_v54  ;;  %v654_v2 = vld [vmem:[#allocation2 + $0x1008] sm:$0xff]  ;;  %3957 = vmatprep.subr.bf16.mxu1 %v3956_v58  ;;  %v661_v11 = vld [vmem:[#allocation2 + $0x1040] sm:$0xff]  ;;  %v4168_v57 = vpack.c.bf16 %v216_v53, %v208_v52  ;;  %v215_v60 = vld [vmem:[#allocation2 + $0x250] sm:$0xff] }
  0xd4   :  { %v662_v3 = vld [vmem:[#allocation2 + $0x1048] sm:$0xff]  ;;  %3959 = vmatpush1.bf16.msra.mxu1 %v3958_v4  ;;  %v6052_v17 = vld [vmem:[%s6238_s0] sm:$0xff]  ;;  %v4026_v21 = vpack.c.bf16 %v661_v11, %v653_v7  ;;  %v224_v63 = vld [vmem:[#allocation2 + $0x298] sm:$0xff] }
  0xd5   :  { %4021 = vmatprep.subr.bf16.mxu0 %v4020_v62  ;;  %v4024_v10 = vpack.c.bf16 %v662_v3, %v654_v2  ;;  %v670_v14 = vld [vmem:[#allocation2 + $0x1088] sm:$0xff]  ;;  %4153 = vmatprep.subr.bf16.mxu1 %v4152_v6  ;;  %v669_v23 = vld [vmem:[#allocation2 + $0x1080] sm:$0xff]  ;;  %v232_v0 = vld [vmem:[#allocation2 + $0x2d8] sm:$0xff]  ;;  %v4170_v3 = vpack.c.bf16 %v215_v60, %v207_v59 }
  0xd6   :  { %v678_v15 = vld [vmem:[#allocation2 + $0x10c8] sm:$0xff]  ;;  %4023 = vmatpush1.bf16.msra.mxu0 %v4022_v5  ;;  %v677_v27 = vld [vmem:[#allocation2 + $0x10c0] sm:$0xff]  ;;  %v4172_v5 = vpack.c.bf16 %v232_v0, %v224_v63  ;;  %v223_v7 = vld [vmem:[#allocation2 + $0x290] sm:$0xff] }
  0xd7   :  { %4025 = vmatprep.subr.bf16.mxu0 %v4024_v10  ;;  %v4028_v26 = vpack.c.bf16 %v678_v15, %v670_v14  ;;  %1272 = vmatmul.mubr.f32.vlgmr.msra.gmra.mrb[0].mxu1 %v6052_v17  ;;  %v686_v30 = vld [vmem:[#allocation2 + $0x1108] sm:$0xff]  ;;  %v4030_v33 = vpack.c.bf16 %v677_v27, %v669_v23  ;;  %v685_v35 = vld [vmem:[#allocation2 + $0x1100] sm:$0xff]  ;;  %v231_v8 = vld [vmem:[#allocation2 + $0x2d0] sm:$0xff] }
  0xd8   :  { %v694_v31 = vld [vmem:[#allocation2 + $0x1148] sm:$0xff]  ;;  %4155 = vmatpush1.bf16.msra.mxu1 %v4154_v20  ;;  %v693_v39 = vld [vmem:[#allocation2 + $0x1140] sm:$0xff]  ;;  %1555 = vmatprep.mubr.f32.mxu1 %v6040_v16  ;;  %v4166_v16 = vpack.c.bf16 %v199_v49, %v191_v48  ;;  %v240_v11 = vld [vmem:[#allocation2 + $0x318] sm:$0xff]  ;;  %v4174_v15 = vpack.c.bf16 %v231_v8, %v223_v7 }
  0xd9   :  { %1343 = vmatmul.mubr.f32.vlgmr.msra.gmra.mrb[0].mxu0 %v135_v18  ;;  %4157 = vmatprep.subr.bf16.mxu1 %v4156_v22  ;;  %v4032_v38 = vpack.c.bf16 %v694_v31, %v686_v30  ;;  %v702_v42 = vld [vmem:[#allocation2 + $0x1188] sm:$0xff]  ;;  %v4034_v45 = vpack.c.bf16 %v693_v39, %v685_v35  ;;  %v701_v47 = vld [vmem:[#allocation2 + $0x1180] sm:$0xff]  ;;  %v248_v12 = vld [vmem:[#allocation2 + $0x358] sm:$0xff] }
  0xda   :  { %4027 = vmatpush1.bf16.msra.mxu0 %v4026_v21  ;;  %v710_v43 = vld [vmem:[#allocation2 + $0x11c8] sm:$0xff]  ;;  %v709_v51 = vld [vmem:[#allocation2 + $0x11c0] sm:$0xff]  ;;  %v4176_v21 = vpack.c.bf16 %v248_v12, %v240_v11  ;;  %v239_v23 = vld [vmem:[#allocation2 + $0x310] sm:$0xff] }
  0xdb   :  { %4029 = vmatprep.subr.bf16.mxu0 %v4028_v26  ;;  %v4036_v50 = vpack.c.bf16 %v710_v43, %v702_v42  ;;  %v718_v54 = vld [vmem:[#allocation2 + $0x1208] sm:$0xff]  ;;  %v4038_v56 = vpack.c.bf16 %v709_v51, %v701_v47  ;;  %v717_v58 = vld [vmem:[#allocation2 + $0x1200] sm:$0xff]  ;;  %v247_v24 = vld [vmem:[#allocation2 + $0x350] sm:$0xff] }
  0xdc   :  { %4159 = vmatpush1.bf16.msra.mxu1 %v4158_v32  ;;  %v726_v55 = vld [vmem:[#allocation2 + $0x1248] sm:$0xff]  ;;  %v725_v62 = vld [vmem:[#allocation2 + $0x1240] sm:$0xff]  ;;  %v256_v26 = vld [vmem:[#allocation2 + $0x398] sm:$0xff]  ;;  %v4178_v31 = vpack.c.bf16 %v247_v24, %v239_v23 }
  0xdd   :  { %4161 = vmatprep.subr.bf16.mxu1 %v4160_v34  ;;  %v4040_v61 = vpack.c.bf16 %v726_v55, %v718_v54  ;;  %v734_v1 = vld [vmem:[#allocation2 + $0x1288] sm:$0xff]  ;;  %v4042_v4 = vpack.c.bf16 %v725_v62, %v717_v58  ;;  %v733_v6 = vld [vmem:[#allocation2 + $0x1280] sm:$0xff]  ;;  %v264_v27 = vld [vmem:[#allocation2 + $0x3d8] sm:$0xff] }
  0xde   :  { %4031 = vmatpush1.bf16.msra.mxu0 %v4030_v33  ;;  %v742_v2 = vld [vmem:[#allocation2 + $0x12c8] sm:$0xff]  ;;  %v741_v10 = vld [vmem:[#allocation2 + $0x12c0] sm:$0xff]  ;;  %v4180_v33 = vpack.c.bf16 %v264_v27, %v256_v26  ;;  %v255_v35 = vld [vmem:[#allocation2 + $0x390] sm:$0xff] }
  0xdf   :  { %4033 = vmatprep.subr.bf16.mxu0 %v4032_v38  ;;  %v4044_v9 = vpack.c.bf16 %v742_v2, %v734_v1  ;;  %v750_v13 = vld [vmem:[#allocation2 + $0x1308] sm:$0xff]  ;;  %v749_v18 = vld [vmem:[#allocation2 + $0x1300] sm:$0xff]  ;;  %v4046_v20 = vpack.c.bf16 %v741_v10, %v733_v6  ;;  %v263_v36 = vld [vmem:[#allocation2 + $0x3d0] sm:$0xff] }
  0xe0   :  { %4163 = vmatpush1.bf16.msra.mxu1 %v4162_v44  ;;  %v758_v14 = vld [vmem:[#allocation2 + $0x1348] sm:$0xff]  ;;  %v757_v22 = vld [vmem:[#allocation2 + $0x1340] sm:$0xff]  ;;  %v272_v39 = vld [vmem:[#allocation2 + $0x418] sm:$0xff]  ;;  %v4182_v43 = vpack.c.bf16 %v263_v36, %v255_v35 }
  0xe1   :  { %4165 = vmatprep.subr.bf16.mxu1 %v4164_v46  ;;  %v4048_v25 = vpack.c.bf16 %v758_v14, %v750_v13  ;;  %v6062_v28 = vld [vmem:[%s6238_s0 + $0x28] sm:$0xff]  ;;  %v4050_v32 = vpack.c.bf16 %v757_v22, %v749_v18  ;;  %v765_v34 = vld [vmem:[#allocation2 + $0x1380] sm:$0xff]  ;;  %v280_v40 = vld [vmem:[#allocation2 + $0x458] sm:$0xff] }
  0xe2   :  { %4035 = vmatpush1.bf16.msra.mxu0 %v4034_v45  ;;  %v766_v29 = vld [vmem:[#allocation2 + $0x1388] sm:$0xff]  ;;  %1413 = vmatprep.mubr.f32.mxu0 %v6062_v28  ;;  %v773_v38 = vld [vmem:[#allocation2 + $0x13c0] sm:$0xff]  ;;  %v4184_v45 = vpack.c.bf16 %v280_v40, %v272_v39  ;;  %v271_v47 = vld [vmem:[#allocation2 + $0x410] sm:$0xff] }
  0xe3   :  { %4037 = vmatprep.subr.bf16.mxu0 %v4036_v50  ;;  %v774_v30 = vld [vmem:[#allocation2 + $0x13c8] sm:$0xff]  ;;  %v4054_v44 = vpack.c.bf16 %v773_v38, %v765_v34  ;;  %v781_v46 = vld [vmem:[#allocation2 + $0x1400] sm:$0xff]  ;;  %v279_v48 = vld [vmem:[#allocation2 + $0x450] sm:$0xff] }
  0xe4   :  { %4167 = vmatpush1.bf16.msra.mxu1 %v4166_v16  ;;  %v4052_v37 = vpack.c.bf16 %v774_v30, %v766_v29  ;;  %v782_v41 = vld [vmem:[#allocation2 + $0x1408] sm:$0xff]  ;;  %v789_v50 = vld [vmem:[#allocation2 + $0x1440] sm:$0xff]  ;;  %v288_v51 = vld [vmem:[#allocation2 + $0x498] sm:$0xff]  ;;  %v4186_v55 = vpack.c.bf16 %v279_v48, %v271_v47 }
  0xe5   :  { %4169 = vmatprep.subr.bf16.mxu1 %v4168_v57  ;;  %v790_v42 = vld [vmem:[#allocation2 + $0x1448] sm:$0xff]  ;;  %v296_v52 = vld [vmem:[#allocation2 + $0x4d8] sm:$0xff]  ;;  %v4058_v16 = vpack.c.bf16 %v789_v50, %v781_v46  ;;  %v797_v57 = vld [vmem:[#allocation2 + $0x1480] sm:$0xff] }
  0xe6   :  { %4039 = vmatpush1.bf16.msra.mxu0 %v4038_v56  ;;  %v4056_v49 = vpack.c.bf16 %v790_v42, %v782_v41  ;;  %v798_v53 = vld [vmem:[#allocation2 + $0x1488] sm:$0xff]  ;;  %v4188_v56 = vpack.c.bf16 %v296_v52, %v288_v51  ;;  %v287_v58 = vld [vmem:[#allocation2 + $0x490] sm:$0xff]  ;;  %v304_v62 = vld [vmem:[#allocation2 + $0x518] sm:$0xff] }
  0xe7   :  { %4041 = vmatprep.subr.bf16.mxu0 %v4040_v61  ;;  %v806_v54 = vld [vmem:[#allocation2 + $0x14c8] sm:$0xff]  ;;  %v295_v59 = vld [vmem:[#allocation2 + $0x4d0] sm:$0xff]  ;;  %v805_v61 = vld [vmem:[#allocation2 + $0x14c0] sm:$0xff] }
  0xe8   :  { %4171 = vmatpush1.bf16.msra.mxu1 %v4170_v3  ;;  %v4060_v60 = vpack.c.bf16 %v806_v54, %v798_v53  ;;  %v312_v63 = vld [vmem:[#allocation2 + $0x558] sm:$0xff]  ;;  %v814_v0 = vld [vmem:[#allocation2 + $0x1508] sm:$0xff]  ;;  %v4190_v2 = vpack.c.bf16 %v295_v59, %v287_v58  ;;  %v4062_v3 = vpack.c.bf16 %v805_v61, %v797_v57  ;;  %v303_v6 = vld [vmem:[#allocation2 + $0x510] sm:$0xff] }
  0xe9   :  { %4173 = vmatprep.subr.bf16.mxu1 %v4172_v5  ;;  %v822_v1 = vld [vmem:[#allocation2 + $0x1548] sm:$0xff]  ;;  %v813_v5 = vld [vmem:[#allocation2 + $0x1500] sm:$0xff]  ;;  %v311_v7 = vld [vmem:[#allocation2 + $0x550] sm:$0xff] }
  0xea   :  { %4043 = vmatpush1.bf16.msra.mxu0 %v4042_v4  ;;  %v4192_v4 = vpack.c.bf16 %v312_v63, %v304_v62  ;;  %v4064_v8 = vpack.c.bf16 %v822_v1, %v814_v0  ;;  %v320_v10 = vld [vmem:[#allocation2 + $0x598] sm:$0xff]  ;;  %v830_v12 = vld [vmem:[#allocation2 + $0x1588] sm:$0xff]  ;;  %v4194_v14 = vpack.c.bf16 %v311_v7, %v303_v6  ;;  %v327_v22 = vld [vmem:[#allocation2 + $0x5d0] sm:$0xff] }
  0xeb   :  { %4045 = vmatprep.subr.bf16.mxu0 %v4044_v9  ;;  %v821_v9 = vld [vmem:[#allocation2 + $0x1540] sm:$0xff]  ;;  %v328_v11 = vld [vmem:[#allocation2 + $0x5d8] sm:$0xff]  ;;  %v838_v13 = vld [vmem:[#allocation2 + $0x15c8] sm:$0xff] }
  0xec   :  { %4175 = vmatpush1.bf16.msra.mxu1 %v4174_v15  ;;  %v4066_v15 = vpack.c.bf16 %v821_v9, %v813_v5  ;;  %v4196_v18 = vpack.c.bf16 %v328_v11, %v320_v10  ;;  %v4068_v23 = vpack.c.bf16 %v838_v13, %v830_v12  ;;  %v837_v24 = vld [vmem:[#allocation2 + $0x15c0] sm:$0xff]  ;;  %v344_v26 = vld [vmem:[#allocation2 + $0x658] sm:$0xff]  ;;  %v846_v27 = vld [vmem:[#allocation2 + $0x1608] sm:$0xff] }
  0xed   :  { %4177 = vmatprep.subr.bf16.mxu1 %v4176_v21  ;;  %v319_v21 = vld [vmem:[#allocation2 + $0x590] sm:$0xff]  ;;  %v854_v29 = vld [vmem:[#allocation2 + $0x1648] sm:$0xff]  ;;  %v352_v38 = vld [vmem:[#allocation2 + $0x698] sm:$0xff] }
  0xee   :  { %4047 = vmatpush1.bf16.msra.mxu0 %v4046_v20  ;;  %v829_v20 = vld [vmem:[#allocation2 + $0x1580] sm:$0xff]  ;;  %v4198_v30 = vpack.c.bf16 %v327_v22, %v319_v21  ;;  %v335_v34 = vld [vmem:[#allocation2 + $0x610] sm:$0xff]  ;;  %v4072_v36 = vpack.c.bf16 %v854_v29, %v846_v27  ;;  %v360_v39 = vld [vmem:[#allocation2 + $0x6d8] sm:$0xff] }
  0xef   :  { %4049 = vmatprep.subr.bf16.mxu0 %v4048_v25  ;;  %v336_v25 = vld [vmem:[#allocation2 + $0x618] sm:$0xff]  ;;  %v343_v35 = vld [vmem:[#allocation2 + $0x650] sm:$0xff]  ;;  %v862_v40 = vld [vmem:[#allocation2 + $0x1688] sm:$0xff] }
  0xf0   :  { %4179 = vmatpush1.bf16.msra.mxu1 %v4178_v31  ;;  %v4070_v31 = vpack.c.bf16 %v837_v24, %v829_v20  ;;  %v870_v41 = vld [vmem:[#allocation2 + $0x16c8] sm:$0xff]  ;;  %v4202_v42 = vpack.c.bf16 %v343_v35, %v335_v34  ;;  %v351_v46 = vld [vmem:[#allocation2 + $0x690] sm:$0xff]  ;;  %v368_v50 = vld [vmem:[#allocation2 + $0x718] sm:$0xff] }
  0xf1   :  { %4181 = vmatprep.subr.bf16.mxu1 %v4180_v33  ;;  %v845_v33 = vld [vmem:[#allocation2 + $0x1600] sm:$0xff]  ;;  %v359_v47 = vld [vmem:[#allocation2 + $0x6d0] sm:$0xff]  ;;  %v4076_v48 = vpack.c.bf16 %v870_v41, %v862_v40  ;;  %v376_v51 = vld [vmem:[#allocation2 + $0x758] sm:$0xff] }
  0xf2   :  { %4051 = vmatpush1.bf16.msra.mxu0 %v4050_v32  ;;  %v4200_v32 = vpack.c.bf16 %v344_v26, %v336_v25  ;;  %v878_v52 = vld [vmem:[#allocation2 + $0x1708] sm:$0xff]  ;;  %v4206_v54 = vpack.c.bf16 %v359_v47, %v351_v46  ;;  %v367_v57 = vld [vmem:[#allocation2 + $0x710] sm:$0xff]  ;;  %v384_v61 = vld [vmem:[#allocation2 + $0x798] sm:$0xff] }
  0xf3   :  { %4053 = vmatprep.subr.bf16.mxu0 %v4052_v37  ;;  %v853_v37 = vld [vmem:[#allocation2 + $0x1640] sm:$0xff]  ;;  %v886_v53 = vld [vmem:[#allocation2 + $0x1748] sm:$0xff]  ;;  %v375_v58 = vld [vmem:[#allocation2 + $0x750] sm:$0xff] }
  0xf4   :  { %4183 = vmatpush1.bf16.msra.mxu1 %v4182_v43  ;;  %v4074_v43 = vpack.c.bf16 %v853_v37, %v845_v33  ;;  %v4080_v59 = vpack.c.bf16 %v886_v53, %v878_v52  ;;  %v392_v62 = vld [vmem:[#allocation2 + $0x7d8] sm:$0xff]  ;;  %v894_v63 = vld [vmem:[#allocation2 + $0x1788] sm:$0xff]  ;;  %v4210_v1 = vpack.c.bf16 %v375_v58, %v367_v57  ;;  %v383_v5 = vld [vmem:[#allocation2 + $0x790] sm:$0xff] }
  0xf5   :  { %4185 = vmatprep.subr.bf16.mxu1 %v4184_v45  ;;  %v861_v45 = vld [vmem:[#allocation2 + $0x1680] sm:$0xff]  ;;  %v902_v0 = vld [vmem:[#allocation2 + $0x17c8] sm:$0xff]  ;;  %v391_v6 = vld [vmem:[#allocation2 + $0x7d0] sm:$0xff] }
  0xf6   :  { %4055 = vmatpush1.bf16.msra.mxu0 %v4054_v44  ;;  %v4204_v44 = vpack.c.bf16 %v360_v39, %v352_v38  ;;  %v4084_v7 = vpack.c.bf16 %v902_v0, %v894_v63  ;;  %v400_v9 = vld [vmem:[#allocation2 + $0x818] sm:$0xff]  ;;  %v910_v11 = vld [vmem:[#allocation2 + $0x1808] sm:$0xff]  ;;  %v4214_v13 = vpack.c.bf16 %v391_v6, %v383_v5  ;;  %v399_v20 = vld [vmem:[#allocation2 + $0x810] sm:$0xff] }
  0xf7   :  { %4057 = vmatprep.subr.bf16.mxu0 %v4056_v49  ;;  %v869_v49 = vld [vmem:[#allocation2 + $0x16c0] sm:$0xff]  ;;  %v408_v10 = vld [vmem:[#allocation2 + $0x858] sm:$0xff]  ;;  %v918_v12 = vld [vmem:[#allocation2 + $0x1848] sm:$0xff] }
  0xf8   :  { %4187 = vmatpush1.bf16.msra.mxu1 %v4186_v55  ;;  %v4078_v55 = vpack.c.bf16 %v869_v49, %v861_v45  ;;  %v407_v21 = vld [vmem:[#allocation2 + $0x850] sm:$0xff]  ;;  %v4088_v22 = vpack.c.bf16 %v918_v12, %v910_v11  ;;  %v416_v24 = vld [vmem:[#allocation2 + $0x898] sm:$0xff]  ;;  %v926_v26 = vld [vmem:[#allocation2 + $0x1888] sm:$0xff] }
  0xf9   :  { %4189 = vmatprep.subr.bf16.mxu1 %v4188_v56  ;;  %v877_v56 = vld [vmem:[#allocation2 + $0x1700] sm:$0xff]  ;;  %v424_v25 = vld [vmem:[#allocation2 + $0x8d8] sm:$0xff]  ;;  %v934_v27 = vld [vmem:[#allocation2 + $0x18c8] sm:$0xff] }
  0xfa   :  { %4059 = vmatpush1.bf16.msra.mxu0 %v4058_v16  ;;  %v4208_v16 = vpack.c.bf16 %v376_v51, %v368_v50  ;;  %v137_v29 = vld [vmem:[%s6238_s0 + $0x20] sm:$0xff]  ;;  %v415_v34 = vld [vmem:[#allocation2 + $0x890] sm:$0xff]  ;;  %v432_v38 = vld [vmem:[#allocation2 + $0x918] sm:$0xff] }
  0xfb   :  { %4061 = vmatprep.subr.bf16.mxu0 %v4060_v60  ;;  %v885_v60 = vld [vmem:[#allocation2 + $0x1740] sm:$0xff]  ;;  %v423_v35 = vld [vmem:[#allocation2 + $0x8d0] sm:$0xff]  ;;  %v440_v39 = vld [vmem:[#allocation2 + $0x958] sm:$0xff] }
  0xfc   :  { %4191 = vmatpush1.bf16.msra.mxu1 %v4190_v2  ;;  %v4082_v2 = vpack.c.bf16 %v885_v60, %v877_v56  ;;  %v925_v33 = vld [vmem:[#allocation2 + $0x1880] sm:$0xff]  ;;  %v942_v40 = vld [vmem:[#allocation2 + $0x1908] sm:$0xff]  ;;  %v4224_v45 = vpack.c.bf16 %v440_v39, %v432_v38  ;;  %v431_v47 = vld [vmem:[#allocation2 + $0x910] sm:$0xff] }
  0xfd   :  { %4193 = vmatprep.subr.bf16.mxu1 %v4192_v4  ;;  %v893_v4 = vld [vmem:[#allocation2 + $0x1780] sm:$0xff]  ;;  %v950_v41 = vld [vmem:[#allocation2 + $0x1948] sm:$0xff]  ;;  %v456_v51 = vld [vmem:[#allocation2 + $0x9d8] sm:$0xff] }
  0xfe   :  { %4063 = vmatpush1.bf16.msra.mxu0 %v4062_v3  ;;  %v4212_v3 = vpack.c.bf16 %v392_v62, %v384_v61  ;;  %v933_v37 = vld [vmem:[#allocation2 + $0x18c0] sm:$0xff]  ;;  %v4096_v49 = vpack.c.bf16 %v950_v41, %v942_v40  ;;  %v958_v52 = vld [vmem:[#allocation2 + $0x1988] sm:$0xff]  ;;  %v447_v57 = vld [vmem:[#allocation2 + $0x990] sm:$0xff] }
  0xff   :  { %4065 = vmatprep.subr.bf16.mxu0 %v4064_v8  ;;  %v901_v8 = vld [vmem:[#allocation2 + $0x17c0] sm:$0xff]  ;;  %v966_v53 = vld [vmem:[#allocation2 + $0x19c8] sm:$0xff]  ;;  %v455_v58 = vld [vmem:[#allocation2 + $0x9d0] sm:$0xff] }
 0x100   :  { %4195 = vmatpush1.bf16.msra.mxu1 %v4194_v14  ;;  %v4086_v14 = vpack.c.bf16 %v901_v8, %v893_v4  ;;  %v941_v46 = vld [vmem:[#allocation2 + $0x1900] sm:$0xff]  ;;  %v464_v61 = vld [vmem:[#allocation2 + $0xa18] sm:$0xff]  ;;  %v974_v63 = vld [vmem:[#allocation2 + $0x1a08] sm:$0xff] }
 0x101   :  { %4197 = vmatprep.subr.bf16.mxu1 %v4196_v18  ;;  %v909_v18 = vld [vmem:[#allocation2 + $0x1800] sm:$0xff]  ;;  %v472_v62 = vld [vmem:[#allocation2 + $0xa58] sm:$0xff]  ;;  %v982_v0 = vld [vmem:[#allocation2 + $0x1a48] sm:$0xff] }
 0x102   :  { %4067 = vmatpush1.bf16.msra.mxu0 %v4066_v15  ;;  %v4216_v15 = vpack.c.bf16 %v408_v10, %v400_v9  ;;  %v949_v50 = vld [vmem:[#allocation2 + $0x1940] sm:$0xff]  ;;  %v463_v4 = vld [vmem:[#allocation2 + $0xa10] sm:$0xff]  ;;  %v4104_v6 = vpack.c.bf16 %v982_v0, %v974_v63  ;;  %v480_v8 = vld [vmem:[#allocation2 + $0xa98] sm:$0xff] }
 0x103   :  { %4069 = vmatprep.subr.bf16.mxu0 %v4068_v23  ;;  %v917_v23 = vld [vmem:[#allocation2 + $0x1840] sm:$0xff]  ;;  %v471_v5 = vld [vmem:[#allocation2 + $0xa50] sm:$0xff]  ;;  %v488_v9 = vld [vmem:[#allocation2 + $0xad8] sm:$0xff] }
 0x104   :  { %4199 = vmatpush1.bf16.msra.mxu1 %v4198_v30  ;;  %v4218_v30 = vpack.c.bf16 %v407_v21, %v399_v20  ;;  %v957_v56 = vld [vmem:[#allocation2 + $0x1980] sm:$0xff]  ;;  %v990_v10 = vld [vmem:[#allocation2 + $0x1a88] sm:$0xff]  ;;  %v4234_v12 = vpack.c.bf16 %v471_v5, %v463_v4  ;;  %v487_v20 = vld [vmem:[#allocation2 + $0xad0] sm:$0xff] }
 0x105   :  { %4201 = vmatprep.subr.bf16.mxu1 %v4200_v32  ;;  %v4220_v32 = vpack.c.bf16 %v424_v25, %v416_v24  ;;  %v965_v60 = vld [vmem:[#allocation2 + $0x19c0] sm:$0xff]  ;;  %v998_v11 = vld [vmem:[#allocation2 + $0x1ac8] sm:$0xff]  ;;  %v504_v24 = vld [vmem:[#allocation2 + $0xb58] sm:$0xff] }
 0x106   :  { %4071 = vmatpush1.bf16.msra.mxu0 %v4070_v31  ;;  %v4090_v31 = vpack.c.bf16 %v917_v23, %v909_v18  ;;  %v479_v18 = vld [vmem:[#allocation2 + $0xa90] sm:$0xff]  ;;  %v4108_v21 = vpack.c.bf16 %v998_v11, %v990_v10  ;;  %v496_v23 = vld [vmem:[#allocation2 + $0xb18] sm:$0xff]  ;;  %v1006_v25 = vld [vmem:[#allocation2 + $0x1b08] sm:$0xff] }
 0x107   :  { %4073 = vmatprep.subr.bf16.mxu0 %v4072_v36  ;;  %v4092_v36 = vpack.c.bf16 %v934_v27, %v926_v26  ;;  %v1014_v26 = vld [vmem:[#allocation2 + $0x1b48] sm:$0xff]  ;;  %v4238_v27 = vpack.c.bf16 %v487_v20, %v479_v18  ;;  %v1061_v4 = vld [vmem:[#allocation2 + $0x1cc0] sm:$0xff]  ;;  %v560_v5 = vld [vmem:[#allocation2 + $0xd18] sm:$0xff] }
 0x108   :  { %4203 = vmatpush1.bf16.msra.mxu1 %v4202_v42  ;;  %v140_v42 = vld [vmem:[%s6238_s0 + $0x38] sm:$0xff]  ;;  %v1022_v38 = vld [vmem:[#allocation2 + $0x1b88] sm:$0xff]  ;;  %v1077_v18 = vld [vmem:[#allocation2 + $0x1d40] sm:$0xff] }
 0x109   :  { %4205 = vmatprep.subr.bf16.mxu1 %v4204_v44  ;;  %v4094_v44 = vpack.c.bf16 %v933_v37, %v925_v33  ;;  %v503_v33 = vld [vmem:[#allocation2 + $0xb50] sm:$0xff]  ;;  %v520_v37 = vld [vmem:[#allocation2 + $0xbd8] sm:$0xff]  ;;  %v1030_v39 = vld [vmem:[#allocation2 + $0x1bc8] sm:$0xff] }
 0x10a   :  { %4075 = vmatpush1.bf16.msra.mxu0 %v4074_v43  ;;  %v4222_v43 = vpack.c.bf16 %v423_v35, %v415_v34  ;;  %v4112_v34 = vpack.c.bf16 %v1014_v26, %v1006_v25  ;;  %v1013_v35 = vld [vmem:[#allocation2 + $0x1b40] sm:$0xff]  ;;  %v576_v20 = vld [vmem:[#allocation2 + $0xd98] sm:$0xff] }
 0x10b   :  { %4077 = vmatprep.subr.bf16.mxu0 %v4076_v48  ;;  %v439_v48 = vld [vmem:[#allocation2 + $0x950] sm:$0xff] }
 0x10c   :  { %4207 = vmatpush1.bf16.msra.mxu1 %v4206_v54  ;;  %v4226_v54 = vpack.c.bf16 %v439_v48, %v431_v47  ;;  %v1029_v47 = vld [vmem:[#allocation2 + $0x1bc0] sm:$0xff]  ;;  %v528_v48 = vld [vmem:[#allocation2 + $0xc18] sm:$0xff] }
 0x10d   :  { %4209 = vmatprep.subr.bf16.mxu1 %v4208_v16 }
 0x10e   :  { %4079 = vmatpush1.bf16.msra.mxu0 %v4078_v55  ;;  %v4098_v55 = vpack.c.bf16 %v949_v50, %v941_v46  ;;  %v4116_v46 = vpack.c.bf16 %v1030_v39, %v1022_v38  ;;  %v1038_v50 = vld [vmem:[#allocation2 + $0x1c08] sm:$0xff] }
 0x10f   :  { %4081 = vmatprep.subr.bf16.mxu0 %v4080_v59  ;;  %v4100_v59 = vpack.c.bf16 %v966_v53, %v958_v52 }
 0x110   :  { %4211 = vmatpush1.bf16.msra.mxu1 %v4210_v1  ;;  %v4230_v1 = vpack.c.bf16 %v455_v58, %v447_v57  ;;  %v1045_v57 = vld [vmem:[#allocation2 + $0x1c40] sm:$0xff]  ;;  %v544_v58 = vld [vmem:[#allocation2 + $0xc98] sm:$0xff] }
 0x111   :  { %4213 = vmatprep.subr.bf16.mxu1 %v4212_v3  ;;  %v973_v3 = vld [vmem:[#allocation2 + $0x1a00] sm:$0xff] }
 0x112   :  { %4083 = vmatpush1.bf16.msra.mxu0 %v4082_v2  ;;  %v4232_v2 = vpack.c.bf16 %v472_v62, %v464_v61  ;;  %v1062_v61 = vld [vmem:[#allocation2 + $0x1cc8] sm:$0xff] }
 0x113   :  { %4085 = vmatprep.subr.bf16.mxu0 %v4084_v7  ;;  %v981_v7 = vld [vmem:[#allocation2 + $0x1a40] sm:$0xff] }
 0x114   :  { %4215 = vmatpush1.bf16.msra.mxu1 %v4214_v13  ;;  %v4106_v13 = vpack.c.bf16 %v981_v7, %v973_v3  ;;  %v1070_v7 = vld [vmem:[#allocation2 + $0x1d08] sm:$0xff] }
 0x115   :  { %4217 = vmatprep.subr.bf16.mxu1 %v4216_v15  ;;  %v989_v15 = vld [vmem:[#allocation2 + $0x1a80] sm:$0xff] }
 0x116   :  { %4087 = vmatpush1.bf16.msra.mxu0 %v4086_v14  ;;  %v4236_v14 = vpack.c.bf16 %v488_v9, %v480_v8  ;;  %v1078_v8 = vld [vmem:[#allocation2 + $0x1d48] sm:$0xff] }
 0x117   :  { %4089 = vmatprep.subr.bf16.mxu0 %v4088_v22  ;;  %1556 = vmatmul.mubr.f32.vlgmr.msra.gmra.mrb[2].mxu1 %v6052_v17  ;;  %v448_v17 = vld [vmem:[#allocation2 + $0x998] sm:$0xff]  ;;  %v997_v22 = vld [vmem:[#allocation2 + $0x1ac0] sm:$0xff] }
 0x118   :  { %4219 = vmatpush1.bf16.msra.mxu1 %v4218_v30  ;;  %1626 = vmatprep.mubr.f32.mxu1 %v6046_v19  ;;  %v4228_v16 = vpack.c.bf16 %v456_v51, %v448_v17  ;;  %v4102_v19 = vpack.c.bf16 %v965_v60, %v957_v56  ;;  %v4240_v30 = vpack.c.bf16 %v504_v24, %v496_v23  ;;  %v1046_v17 = vld [vmem:[#allocation2 + $0x1c48] sm:$0xff] }
 0x119   :  { %1414 = vmatmul.mubr.f32.vlgmr.msra.gmra.mrb[0].mxu0 %v137_v29  ;;  %4221 = vmatprep.subr.bf16.mxu1 %v4220_v32  ;;  %v4110_v29 = vpack.c.bf16 %v997_v22, %v989_v15  ;;  %v495_v32 = vld [vmem:[#allocation2 + $0xb10] sm:$0xff]  ;;  %v4120_v56 = vpack.c.bf16 %v1046_v17, %v1038_v50  ;;  %v1054_v60 = vld [vmem:[#allocation2 + $0x1c88] sm:$0xff]  ;;  %v4128_v15 = vpack.c.bf16 %v1078_v8, %v1070_v7 }
 0x11a   :  { %4091 = vmatpush1.bf16.msra.mxu0 %v4090_v31  ;;  %1484 = vmatprep.mubr.f32.mxu0 %v140_v42  ;;  %v1005_v31 = vld [vmem:[#allocation2 + $0x1b00] sm:$0xff]  ;;  %v4242_v40 = vpack.c.bf16 %v503_v33, %v495_v32  ;;  %v4124_v3 = vpack.c.bf16 %v1062_v61, %v1054_v60  ;;  %v1086_v22 = vld [vmem:[#allocation2 + $0x1d88] sm:$0xff]  ;;  %v592_v33 = vld [vmem:[#allocation2 + $0xe18] sm:$0xff] }
 0x11b   :  { %4093 = vmatprep.subr.bf16.mxu0 %v4092_v36  ;;  %v512_v36 = vld [vmem:[#allocation2 + $0xb98] sm:$0xff]  ;;  %v4114_v41 = vpack.c.bf16 %v1013_v35, %v1005_v31  ;;  %v1094_v23 = vld [vmem:[#allocation2 + $0x1dc8] sm:$0xff]  ;;  %v1093_v32 = vld [vmem:[#allocation2 + $0x1dc0] sm:$0xff] }
 0x11c   :  { %4223 = vmatpush1.bf16.msra.mxu1 %v4222_v43  ;;  %v4244_v42 = vpack.c.bf16 %v520_v37, %v512_v36  ;;  %v1021_v43 = vld [vmem:[#allocation2 + $0x1b80] sm:$0xff]  ;;  %v4132_v31 = vpack.c.bf16 %v1094_v23, %v1086_v22  ;;  %v1102_v35 = vld [vmem:[#allocation2 + $0x1e08] sm:$0xff] }
 0x11d   :  { %4225 = vmatprep.subr.bf16.mxu1 %v4224_v45  ;;  %v519_v45 = vld [vmem:[#allocation2 + $0xbd0] sm:$0xff]  ;;  %v4118_v52 = vpack.c.bf16 %v1029_v47, %v1021_v43  ;;  %v1110_v36 = vld [vmem:[#allocation2 + $0x1e48] sm:$0xff] }
 0x11e   :  { %4095 = vmatpush1.bf16.msra.mxu0 %v4094_v44  ;;  %v511_v44 = vld [vmem:[#allocation2 + $0xb90] sm:$0xff]  ;;  %v4136_v43 = vpack.c.bf16 %v1110_v36, %v1102_v35  ;;  %v1118_v47 = vld [vmem:[#allocation2 + $0x1e88] sm:$0xff] }
 0x11f   :  { %4097 = vmatprep.subr.bf16.mxu0 %v4096_v49  ;;  %v536_v49 = vld [vmem:[#allocation2 + $0xc58] sm:$0xff]  ;;  %v4246_v51 = vpack.c.bf16 %v519_v45, %v511_v44  ;;  %v1109_v44 = vld [vmem:[#allocation2 + $0x1e40] sm:$0xff] }
 0x120   :  { %4227 = vmatpush1.bf16.msra.mxu1 %v4226_v54  ;;  %v4248_v53 = vpack.c.bf16 %v536_v49, %v528_v48  ;;  %v1037_v54 = vld [vmem:[#allocation2 + $0x1c00] sm:$0xff]  ;;  %v608_v45 = vld [vmem:[#allocation2 + $0xe98] sm:$0xff]  ;;  %v1126_v48 = vld [vmem:[#allocation2 + $0x1ec8] sm:$0xff] }
 0x121   :  { %4229 = vmatprep.subr.bf16.mxu1 %v4228_v16  ;;  %v535_v16 = vld [vmem:[#allocation2 + $0xc50] sm:$0xff]  ;;  %v4122_v63 = vpack.c.bf16 %v1045_v57, %v1037_v54  ;;  %v4140_v54 = vpack.c.bf16 %v1126_v48, %v1118_v47  ;;  %v1134_v57 = vld [vmem:[#allocation2 + $0x1f08] sm:$0xff] }
 0x122   :  { %4099 = vmatpush1.bf16.msra.mxu0 %v4098_v55  ;;  %v527_v55 = vld [vmem:[#allocation2 + $0xc10] sm:$0xff]  ;;  %v186_v47 = vld [vmem:[#allocation2 + $0x168] sm:$0xff] }
 0x123   :  { %4101 = vmatprep.subr.bf16.mxu0 %v4100_v59  ;;  %v552_v59 = vld [vmem:[#allocation2 + $0xcd8] sm:$0xff]  ;;  %v4250_v62 = vpack.c.bf16 %v535_v16, %v527_v55  ;;  %v1125_v55 = vld [vmem:[#allocation2 + $0x1ec0] sm:$0xff] }
 0x124   :  { %4231 = vmatpush1.bf16.msra.mxu1 %v4230_v1  ;;  %v4252_v0 = vpack.c.bf16 %v552_v59, %v544_v58  ;;  %v1053_v1 = vld [vmem:[#allocation2 + $0x1c80] sm:$0xff]  ;;  %v624_v16 = vld [vmem:[#allocation2 + $0xf18] sm:$0xff]  ;;  %v1142_v58 = vld [vmem:[#allocation2 + $0x1f48] sm:$0xff] }
 0x125   :  { %4233 = vmatprep.subr.bf16.mxu1 %v4232_v2  ;;  %v551_v2 = vld [vmem:[#allocation2 + $0xcd0] sm:$0xff]  ;;  %v4126_v10 = vpack.c.bf16 %v1061_v4, %v1053_v1  ;;  %v4144_v1 = vpack.c.bf16 %v1142_v58, %v1134_v57  ;;  %v1150_v4 = vld [vmem:[#allocation2 + $0x1f88] sm:$0xff] }
 0x126   :  { %4103 = vmatpush1.bf16.msra.mxu0 %v4102_v19  ;;  %v543_v19 = vld [vmem:[#allocation2 + $0xc90] sm:$0xff]  ;;  %v202_v57 = vld [vmem:[#allocation2 + $0x1e8] sm:$0xff] }
 0x127   :  { %4105 = vmatprep.subr.bf16.mxu0 %v4104_v6  ;;  %v568_v6 = vld [vmem:[#allocation2 + $0xd58] sm:$0xff]  ;;  %v4254_v9 = vpack.c.bf16 %v551_v2, %v543_v19  ;;  %v1141_v19 = vld [vmem:[#allocation2 + $0x1f40] sm:$0xff]  ;;  %v5661_v58 = vld [vmem:[%s6238_s0 + $0x8] sm:$0xff] }
 0x128   :  { %4235 = vmatpush1.bf16.msra.mxu1 %v4234_v12  ;;  %v4256_v11 = vpack.c.bf16 %v568_v6, %v560_v5  ;;  %v1069_v12 = vld [vmem:[#allocation2 + $0x1d00] sm:$0xff]  ;;  %v640_v2 = vld [vmem:[#allocation2 + $0xf98] sm:$0xff]  ;;  %v1158_v5 = vld [vmem:[#allocation2 + $0x1fc8] sm:$0xff] }
 0x129   :  { %4237 = vmatprep.subr.bf16.mxu1 %v4236_v14  ;;  %v567_v14 = vld [vmem:[#allocation2 + $0xd50] sm:$0xff]  ;;  %v4130_v25 = vpack.c.bf16 %v1077_v18, %v1069_v12  ;;  %v4148_v12 = vpack.c.bf16 %v1158_v5, %v1150_v4  ;;  %v146_v18 = vld [vmem:[#allocation2 + $0x28] sm:$0xff] }
 0x12a   :  { %4107 = vmatpush1.bf16.msra.mxu0 %v4106_v13  ;;  %v559_v13 = vld [vmem:[#allocation2 + $0xd10] sm:$0xff]  ;;  %v218_v4 = vld [vmem:[#allocation2 + $0x268] sm:$0xff] }
 0x12b   :  { %4109 = vmatprep.subr.bf16.mxu0 %v4108_v21  ;;  %v584_v21 = vld [vmem:[#allocation2 + $0xdd8] sm:$0xff]  ;;  %v4258_v24 = vpack.c.bf16 %v567_v14, %v559_v13  ;;  %v1157_v13 = vld [vmem:[#allocation2 + $0x1fc0] sm:$0xff] }
 0x12c   :  { %4239 = vmatpush1.bf16.msra.mxu1 %v4238_v27  ;;  %v4260_v26 = vpack.c.bf16 %v584_v21, %v576_v20  ;;  %v1085_v27 = vld [vmem:[#allocation2 + $0x1d80] sm:$0xff]  ;;  %v656_v14 = vld [vmem:[#allocation2 + $0x1018] sm:$0xff]  ;;  %v154_v20 = vld [vmem:[#allocation2 + $0x68] sm:$0xff] }
 0x12d   :  { %4241 = vmatprep.subr.bf16.mxu1 %v4240_v30  ;;  %v583_v30 = vld [vmem:[#allocation2 + $0xdd0] sm:$0xff]  ;;  %v4134_v38 = vpack.c.bf16 %v1093_v32, %v1085_v27  ;;  %v4408_v27 = vpack.c.bf16 %v154_v20, %v146_v18  ;;  %v162_v32 = vld [vmem:[#allocation2 + $0xa8] sm:$0xff] }
 0x12e   :  { %4111 = vmatpush1.bf16.msra.mxu0 %v4110_v29  ;;  %v575_v29 = vld [vmem:[#allocation2 + $0xd90] sm:$0xff]  ;;  %v234_v18 = vld [vmem:[#allocation2 + $0x2e8] sm:$0xff] }
 0x12f   :  { %4113 = vmatprep.subr.bf16.mxu0 %v4112_v34  ;;  %v600_v34 = vld [vmem:[#allocation2 + $0xe58] sm:$0xff]  ;;  %v4262_v37 = vpack.c.bf16 %v583_v30, %v575_v29  ;;  %v153_v29 = vld [vmem:[#allocation2 + $0x60] sm:$0xff] }
 0x130   :  { %4243 = vmatpush1.bf16.msra.mxu1 %v4242_v40  ;;  %v4264_v39 = vpack.c.bf16 %v600_v34, %v592_v33  ;;  %v1101_v40 = vld [vmem:[#allocation2 + $0x1e00] sm:$0xff]  ;;  %v672_v30 = vld [vmem:[#allocation2 + $0x1098] sm:$0xff]  ;;  %v170_v33 = vld [vmem:[#allocation2 + $0xe8] sm:$0xff] }
 0x131   :  { %4245 = vmatprep.subr.bf16.mxu1 %v4244_v42  ;;  %v599_v42 = vld [vmem:[#allocation2 + $0xe50] sm:$0xff]  ;;  %v4138_v50 = vpack.c.bf16 %v1109_v44, %v1101_v40  ;;  %v161_v40 = vld [vmem:[#allocation2 + $0xa0] sm:$0xff]  ;;  %v696_v44 = vld [vmem:[#allocation2 + $0x1158] sm:$0xff] }
 0x132   :  { %4115 = vmatpush1.bf16.msra.mxu0 %v4114_v41  ;;  %v591_v41 = vld [vmem:[#allocation2 + $0xe10] sm:$0xff] }
 0x133   :  { %4117 = vmatprep.subr.bf16.mxu0 %v4116_v46  ;;  %v616_v46 = vld [vmem:[#allocation2 + $0xed8] sm:$0xff]  ;;  %v4266_v49 = vpack.c.bf16 %v599_v42, %v591_v41  ;;  %v139_v34 = vld [vmem:[%s6238_s0 + $0x30] sm:$0xff]  ;;  %v4412_v41 = vpack.c.bf16 %v170_v33, %v162_v32  ;;  %v169_v42 = vld [vmem:[#allocation2 + $0xe0] sm:$0xff] }
 0x134   :  { %4247 = vmatpush1.bf16.msra.mxu1 %v4246_v51  ;;  %v4268_v17 = vpack.c.bf16 %v616_v46, %v608_v45  ;;  %v1117_v51 = vld [vmem:[#allocation2 + $0x1e80] sm:$0xff]  ;;  %v5660_v45 = vld [vmem:[%s6238_s0 + $0x10] sm:$0xff]  ;;  %v178_v46 = vld [vmem:[#allocation2 + $0x128] sm:$0xff] }
 0x135   :  { %4249 = vmatprep.subr.bf16.mxu1 %v4248_v53  ;;  %v615_v53 = vld [vmem:[#allocation2 + $0xed0] sm:$0xff]  ;;  %v4142_v60 = vpack.c.bf16 %v1125_v55, %v1117_v51  ;;  %v704_v55 = vld [vmem:[#allocation2 + $0x1198] sm:$0xff]  ;;  %v250_v32 = vld [vmem:[#allocation2 + $0x368] sm:$0xff] }
 0x136   :  { %4119 = vmatpush1.bf16.msra.mxu0 %v4118_v52  ;;  %v607_v52 = vld [vmem:[#allocation2 + $0xe90] sm:$0xff] }
 0x137   :  { %4121 = vmatprep.subr.bf16.mxu0 %v4120_v56  ;;  %v632_v56 = vld [vmem:[#allocation2 + $0xf58] sm:$0xff]  ;;  %v4270_v59 = vpack.c.bf16 %v615_v53, %v607_v52  ;;  %v695_v51 = vld [vmem:[#allocation2 + $0x1150] sm:$0xff]  ;;  %v177_v52 = vld [vmem:[#allocation2 + $0x120] sm:$0xff]  ;;  %v4416_v53 = vpack.c.bf16 %v186_v47, %v178_v46 }
 0x138   :  { %4251 = vmatpush1.bf16.msra.mxu1 %v4250_v62  ;;  %v4272_v61 = vpack.c.bf16 %v632_v56, %v624_v16  ;;  %v1133_v62 = vld [vmem:[#allocation2 + $0x1f00] sm:$0xff]  ;;  %v712_v16 = vld [vmem:[#allocation2 + $0x11d8] sm:$0xff]  ;;  %v194_v56 = vld [vmem:[#allocation2 + $0x1a8] sm:$0xff] }
 0x139   :  { %4253 = vmatprep.subr.bf16.mxu1 %v4252_v0  ;;  %v631_v0 = vld [vmem:[#allocation2 + $0xf50] sm:$0xff]  ;;  %v4146_v7 = vpack.c.bf16 %v1141_v19, %v1133_v62  ;;  %v201_v19 = vld [vmem:[#allocation2 + $0x1e0] sm:$0xff] }
 0x13a   :  { %4123 = vmatpush1.bf16.msra.mxu0 %v4122_v63  ;;  %v623_v63 = vld [vmem:[#allocation2 + $0xf10] sm:$0xff] }
 0x13b   :  { %4125 = vmatprep.subr.bf16.mxu0 %v4124_v3  ;;  %v648_v3 = vld [vmem:[#allocation2 + $0xfd8] sm:$0xff]  ;;  %v4274_v6 = vpack.c.bf16 %v631_v0, %v623_v63  ;;  %v703_v62 = vld [vmem:[#allocation2 + $0x1190] sm:$0xff]  ;;  %v193_v0 = vld [vmem:[#allocation2 + $0x1a0] sm:$0xff] }
 0x13c   :  { %4255 = vmatpush1.bf16.msra.mxu1 %v4254_v9  ;;  %v4276_v8 = vpack.c.bf16 %v648_v3, %v640_v2  ;;  %v1149_v9 = vld [vmem:[#allocation2 + $0x1f80] sm:$0xff]  ;;  %v711_v63 = vld [vmem:[#allocation2 + $0x11d0] sm:$0xff]  ;;  %v728_v2 = vld [vmem:[#allocation2 + $0x1258] sm:$0xff] }
 0x13d   :  { %4257 = vmatprep.subr.bf16.mxu1 %v4256_v11  ;;  %v647_v11 = vld [vmem:[#allocation2 + $0xfd0] sm:$0xff]  ;;  %v4150_v22 = vpack.c.bf16 %v1157_v13, %v1149_v9  ;;  %v210_v3 = vld [vmem:[#allocation2 + $0x228] sm:$0xff]  ;;  %v4294_v5 = vpack.c.bf16 %v711_v63, %v703_v62  ;;  %v736_v13 = vld [vmem:[#allocation2 + $0x1298] sm:$0xff] }
 0x13e   :  { %4127 = vmatpush1.bf16.msra.mxu0 %v4126_v10  ;;  %v639_v10 = vld [vmem:[#allocation2 + $0xf90] sm:$0xff]  ;;  %v281_v62 = vld [vmem:[#allocation2 + $0x460] sm:$0xff]  ;;  %v800_v63 = vld [vmem:[#allocation2 + $0x1498] sm:$0xff] }
 0x13f   :  { %4129 = vmatprep.subr.bf16.mxu0 %v4128_v15  ;;  %v664_v15 = vld [vmem:[#allocation2 + $0x1058] sm:$0xff]  ;;  %v4278_v21 = vpack.c.bf16 %v647_v11, %v639_v10  ;;  %v727_v9 = vld [vmem:[#allocation2 + $0x1250] sm:$0xff]  ;;  %v209_v10 = vld [vmem:[#allocation2 + $0x220] sm:$0xff]  ;;  %v4424_v11 = vpack.c.bf16 %v218_v4, %v210_v3 }
 0x140   :  { %4259 = vmatpush1.bf16.msra.mxu1 %v4258_v24  ;;  %v4280_v23 = vpack.c.bf16 %v664_v15, %v656_v14  ;;  %v655_v24 = vld [vmem:[#allocation2 + $0x1010] sm:$0xff]  ;;  %v744_v14 = vld [vmem:[#allocation2 + $0x12d8] sm:$0xff]  ;;  %v226_v15 = vld [vmem:[#allocation2 + $0x2a8] sm:$0xff] }
 0x141   :  { %4261 = vmatprep.subr.bf16.mxu1 %v4260_v26  ;;  %v145_v26 = vld [vmem:[#allocation2 + $0x20] sm:$0xff]  ;;  %v799_v4 = vld [vmem:[#allocation2 + $0x1490] sm:$0xff] }
 0x142   :  { %4131 = vmatpush1.bf16.msra.mxu0 %v4130_v25  ;;  %v663_v25 = vld [vmem:[#allocation2 + $0x1050] sm:$0xff]  ;;  %v4410_v36 = vpack.c.bf16 %v153_v29, %v145_v26  ;;  %v4428_v26 = vpack.c.bf16 %v234_v18, %v226_v15  ;;  %v752_v29 = vld [vmem:[#allocation2 + $0x1318] sm:$0xff] }
 0x143   :  { %4133 = vmatprep.subr.bf16.mxu0 %v4132_v31  ;;  %v680_v31 = vld [vmem:[#allocation2 + $0x10d8] sm:$0xff]  ;;  %v4282_v35 = vpack.c.bf16 %v663_v25, %v655_v24  ;;  %v743_v24 = vld [vmem:[#allocation2 + $0x12d0] sm:$0xff]  ;;  %v225_v25 = vld [vmem:[#allocation2 + $0x2a0] sm:$0xff] }
 0x144   :  { %4263 = vmatpush1.bf16.msra.mxu1 %v4262_v37  ;;  %v4284_v37 = vpack.c.bf16 %v680_v31, %v672_v30  ;;  %v760_v30 = vld [vmem:[#allocation2 + $0x1358] sm:$0xff]  ;;  %v242_v31 = vld [vmem:[#allocation2 + $0x328] sm:$0xff]  ;;  %v815_v18 = vld [vmem:[#allocation2 + $0x1510] sm:$0xff] }
 0x145   :  { %4265 = vmatprep.subr.bf16.mxu1 %v4264_v39  ;;  %v679_v39 = vld [vmem:[#allocation2 + $0x10d0] sm:$0xff] }
 0x146   :  { %4135 = vmatpush1.bf16.msra.mxu0 %v4134_v38  ;;  %v671_v38 = vld [vmem:[#allocation2 + $0x1090] sm:$0xff] }
 0x147   :  { %4137 = vmatprep.subr.bf16.mxu0 %v4136_v43  ;;  %v688_v43 = vld [vmem:[#allocation2 + $0x1118] sm:$0xff]  ;;  %v4286_v48 = vpack.c.bf16 %v679_v39, %v671_v38  ;;  %v241_v38 = vld [vmem:[#allocation2 + $0x320] sm:$0xff]  ;;  %v4432_v39 = vpack.c.bf16 %v250_v32, %v242_v31  ;;  %v831_v32 = vld [vmem:[#allocation2 + $0x1590] sm:$0xff] }
 0x148   :  { %4267 = vmatpush1.bf16.msra.mxu1 %v4266_v49  ;;  %v4414_v49 = vpack.c.bf16 %v169_v42, %v161_v40  ;;  %v249_v40 = vld [vmem:[#allocation2 + $0x360] sm:$0xff]  ;;  %v776_v42 = vld [vmem:[#allocation2 + $0x13d8] sm:$0xff] }
 0x149   :  { %4269 = vmatprep.subr.bf16.mxu1 %v4268_v17  ;;  %v687_v17 = vld [vmem:[#allocation2 + $0x1110] sm:$0xff]  ;;  %v4434_v46 = vpack.c.bf16 %v249_v40, %v241_v38  ;;  %v856_v38 = vld [vmem:[#allocation2 + $0x1658] sm:$0xff]  ;;  %v346_v40 = vld [vmem:[#allocation2 + $0x668] sm:$0xff] }
 0x14a   :  { %4139 = vmatpush1.bf16.msra.mxu0 %v4138_v50  ;;  %v4288_v50 = vpack.c.bf16 %v696_v44, %v688_v43  ;;  %v258_v43 = vld [vmem:[#allocation2 + $0x3a8] sm:$0xff] }
 0x14b   :  { %4141 = vmatprep.subr.bf16.mxu0 %v4140_v54  ;;  %v185_v54 = vld [vmem:[#allocation2 + $0x160] sm:$0xff]  ;;  %v266_v44 = vld [vmem:[#allocation2 + $0x3e8] sm:$0xff] }
 0x14c   :  { %4271 = vmatpush1.bf16.msra.mxu1 %v4270_v59  ;;  %v4290_v59 = vpack.c.bf16 %v695_v51, %v687_v17  ;;  %v4436_v17 = vpack.c.bf16 %v266_v44, %v258_v43  ;;  %v265_v51 = vld [vmem:[#allocation2 + $0x3e0] sm:$0xff]  ;;  %v847_v44 = vld [vmem:[#allocation2 + $0x1610] sm:$0xff] }
 0x14d   :  { %4273 = vmatprep.subr.bf16.mxu1 %v4272_v61  ;;  %v4292_v61 = vpack.c.bf16 %v712_v16, %v704_v55  ;;  %v282_v55 = vld [vmem:[#allocation2 + $0x468] sm:$0xff] }
 0x14e   :  { %4143 = vmatpush1.bf16.msra.mxu0 %v4142_v60  ;;  %v4418_v60 = vpack.c.bf16 %v185_v54, %v177_v52  ;;  %v784_v52 = vld [vmem:[#allocation2 + $0x1418] sm:$0xff]  ;;  %v274_v54 = vld [vmem:[#allocation2 + $0x428] sm:$0xff] }
 0x14f   :  { %4145 = vmatprep.subr.bf16.mxu0 %v4144_v1  ;;  %v4420_v1 = vpack.c.bf16 %v202_v57, %v194_v56 }
 0x150   :  { %4275 = vmatpush1.bf16.msra.mxu1 %v4274_v6  ;;  %v4422_v6 = vpack.c.bf16 %v201_v19, %v193_v0  ;;  %v808_v0 = vld [vmem:[#allocation2 + $0x14d8] sm:$0xff]  ;;  %v298_v19 = vld [vmem:[#allocation2 + $0x4e8] sm:$0xff] }
 0x151   :  { %4277 = vmatprep.subr.bf16.mxu1 %v4276_v8  ;;  %v719_v8 = vld [vmem:[#allocation2 + $0x1210] sm:$0xff]  ;;  %v4316_v3 = vpack.c.bf16 %v808_v0, %v800_v63 }
 0x152   :  { %4147 = vmatpush1.bf16.msra.mxu0 %v4146_v7  ;;  %v4298_v20 = vpack.c.bf16 %v727_v9, %v719_v8  ;;  %v297_v8 = vld [vmem:[#allocation2 + $0x4e0] sm:$0xff]  ;;  %v816_v9 = vld [vmem:[#allocation2 + $0x1518] sm:$0xff] }
 0x153   :  { %4149 = vmatprep.subr.bf16.mxu0 %v4148_v12  ;;  %v217_v12 = vld [vmem:[#allocation2 + $0x260] sm:$0xff] }
 0x154   :  { %4279 = vmatpush1.bf16.msra.mxu1 %v4278_v21  ;;  %v4426_v21 = vpack.c.bf16 %v217_v12, %v209_v10  ;;  %v824_v10 = vld [vmem:[#allocation2 + $0x1558] sm:$0xff]  ;;  %v314_v12 = vld [vmem:[#allocation2 + $0x568] sm:$0xff] }
 0x155   :  { %4281 = vmatprep.subr.bf16.mxu1 %v4280_v23  ;;  %v735_v23 = vld [vmem:[#allocation2 + $0x1290] sm:$0xff]  ;;  %v4320_v15 = vpack.c.bf16 %v824_v10, %v816_v9 }
 0x156   :  { %4151 = vmatpush1.bf16.msra.mxu0 %v4150_v22  ;;  %v4300_v22 = vpack.c.bf16 %v744_v14, %v736_v13  ;;  %v4302_v33 = vpack.c.bf16 %v743_v24, %v735_v23  ;;  %v313_v23 = vld [vmem:[#allocation2 + $0x560] sm:$0xff]  ;;  %v832_v24 = vld [vmem:[#allocation2 + $0x1598] sm:$0xff] }
 0x157   :  { %4409 = vmatprep.subr.bf16.mxu0 %v4408_v27  ;;  %1627 = vmatmul.mubr.f32.vlgmr.msra.gmra.mrb[2].mxu1 %v5660_v45  ;;  %v233_v27 = vld [vmem:[#allocation2 + $0x2e0] sm:$0xff] }
 0x158   :  { %4283 = vmatpush1.bf16.msra.mxu1 %v4282_v35  ;;  %1697 = vmatprep.mubr.f32.mxu1 %v6062_v28  ;;  %v720_v28 = vld [vmem:[#allocation2 + $0x1218] sm:$0xff]  ;;  %v4304_v35 = vpack.c.bf16 %v760_v30, %v752_v29 }
 0x159   :  { %1485 = vmatmul.mubr.f32.vlgmr.msra.gmra.mrb[0].mxu0 %v139_v34  ;;  %4285 = vmatprep.subr.bf16.mxu1 %v4284_v37  ;;  %v4296_v7 = vpack.c.bf16 %v728_v2, %v720_v28  ;;  %v4430_v34 = vpack.c.bf16 %v233_v27, %v225_v25  ;;  %v759_v37 = vld [vmem:[#allocation2 + $0x1350] sm:$0xff]  ;;  %v840_v25 = vld [vmem:[#allocation2 + $0x15d8] sm:$0xff]  ;;  %v330_v27 = vld [vmem:[#allocation2 + $0x5e8] sm:$0xff] }
 0x15a   :  { %4411 = vmatpush1.bf16.msra.mxu0 %v4410_v36  ;;  %1839 = vmatprep.mubr.f32.mxu0 %v5661_v58  ;;  %v751_v36 = vld [vmem:[#allocation2 + $0x1310] sm:$0xff]  ;;  %v4324_v31 = vpack.c.bf16 %v840_v25, %v832_v24 }
 0x15b   :  { %4413 = vmatprep.subr.bf16.mxu0 %v4412_v41  ;;  %v768_v41 = vld [vmem:[#allocation2 + $0x1398] sm:$0xff]  ;;  %v4306_v45 = vpack.c.bf16 %v759_v37, %v751_v36  ;;  %v783_v58 = vld [vmem:[#allocation2 + $0x1410] sm:$0xff]  ;;  %v329_v36 = vld [vmem:[#allocation2 + $0x5e0] sm:$0xff] }
 0x15c   :  { %4287 = vmatpush1.bf16.msra.mxu1 %v4286_v48  ;;  %v4308_v47 = vpack.c.bf16 %v776_v42, %v768_v41  ;;  %v767_v48 = vld [vmem:[#allocation2 + $0x1390] sm:$0xff]  ;;  %v848_v37 = vld [vmem:[#allocation2 + $0x1618] sm:$0xff] }
 0x15d   :  { %4289 = vmatprep.subr.bf16.mxu1 %v4288_v50  ;;  %v257_v50 = vld [vmem:[#allocation2 + $0x3a0] sm:$0xff]  ;;  %v4328_v43 = vpack.c.bf16 %v856_v38, %v848_v37 }
 0x15e   :  { %4415 = vmatpush1.bf16.msra.mxu0 %v4414_v49  ;;  %v775_v49 = vld [vmem:[#allocation2 + $0x13d0] sm:$0xff]  ;;  %v4438_v56 = vpack.c.bf16 %v265_v51, %v257_v50  ;;  %v872_v50 = vld [vmem:[#allocation2 + $0x16d8] sm:$0xff]  ;;  %v362_v51 = vld [vmem:[#allocation2 + $0x6e8] sm:$0xff] }
 0x15f   :  { %4417 = vmatprep.subr.bf16.mxu0 %v4416_v53  ;;  %v792_v53 = vld [vmem:[#allocation2 + $0x1458] sm:$0xff]  ;;  %v4310_v16 = vpack.c.bf16 %v775_v49, %v767_v48  ;;  %v345_v48 = vld [vmem:[#allocation2 + $0x660] sm:$0xff] }
 0x160   :  { %4291 = vmatpush1.bf16.msra.mxu1 %v4290_v59  ;;  %v4312_v57 = vpack.c.bf16 %v792_v53, %v784_v52  ;;  %v791_v59 = vld [vmem:[#allocation2 + $0x1450] sm:$0xff]  ;;  %v864_v49 = vld [vmem:[#allocation2 + $0x1698] sm:$0xff] }
 0x161   :  { %4293 = vmatprep.subr.bf16.mxu1 %v4292_v61  ;;  %v4440_v61 = vpack.c.bf16 %v282_v55, %v274_v54  ;;  %v4314_v28 = vpack.c.bf16 %v791_v59, %v783_v58  ;;  %v4332_v54 = vpack.c.bf16 %v872_v50, %v864_v49  ;;  %v863_v55 = vld [vmem:[#allocation2 + $0x1690] sm:$0xff]  ;;  %v361_v58 = vld [vmem:[#allocation2 + $0x6e0] sm:$0xff]  ;;  %v880_v59 = vld [vmem:[#allocation2 + $0x1718] sm:$0xff] }
 0x162   :  { %4419 = vmatpush1.bf16.msra.mxu0 %v4418_v60  ;;  %v273_v60 = vld [vmem:[#allocation2 + $0x420] sm:$0xff]  ;;  %v442_v49 = vld [vmem:[#allocation2 + $0x968] sm:$0xff] }
 0x163   :  { %4421 = vmatprep.subr.bf16.mxu0 %v4420_v1  ;;  %v290_v1 = vld [vmem:[#allocation2 + $0x4a8] sm:$0xff]  ;;  %v4442_v2 = vpack.c.bf16 %v281_v62, %v273_v60  ;;  %v888_v60 = vld [vmem:[#allocation2 + $0x1758] sm:$0xff]  ;;  %v5663_v50 = vld [vmem:[%s6238_s0] sm:$0xff] }
 0x164   :  { %4295 = vmatpush1.bf16.msra.mxu1 %v4294_v5  ;;  %v807_v5 = vld [vmem:[#allocation2 + $0x14d0] sm:$0xff]  ;;  %v378_v62 = vld [vmem:[#allocation2 + $0x768] sm:$0xff] }
 0x165   :  { %4297 = vmatprep.subr.bf16.mxu1 %v4296_v7  ;;  %v4444_v7 = vpack.c.bf16 %v298_v19, %v290_v1  ;;  %v4318_v13 = vpack.c.bf16 %v807_v5, %v799_v4  ;;  %v4336_v1 = vpack.c.bf16 %v888_v60, %v880_v59  ;;  %v879_v19 = vld [vmem:[#allocation2 + $0x1710] sm:$0xff]  ;;  %v377_v4 = vld [vmem:[#allocation2 + $0x760] sm:$0xff]  ;;  %v896_v5 = vld [vmem:[#allocation2 + $0x1798] sm:$0xff] }
 0x166   :  { %4423 = vmatpush1.bf16.msra.mxu0 %v4422_v6  ;;  %v289_v6 = vld [vmem:[#allocation2 + $0x4a0] sm:$0xff]  ;;  %v5664_v59 = vld [vmem:[%s6238_s0 + $0x38] sm:$0xff]  ;;  %v450_v60 = vld [vmem:[#allocation2 + $0x9a8] sm:$0xff] }
 0x167   :  { %4425 = vmatprep.subr.bf16.mxu0 %v4424_v11  ;;  %v306_v11 = vld [vmem:[#allocation2 + $0x528] sm:$0xff]  ;;  %v4446_v14 = vpack.c.bf16 %v297_v8, %v289_v6  ;;  %v904_v6 = vld [vmem:[#allocation2 + $0x17d8] sm:$0xff] }
 0x168   :  { %4299 = vmatpush1.bf16.msra.mxu1 %v4298_v20  ;;  %v823_v20 = vld [vmem:[#allocation2 + $0x1550] sm:$0xff]  ;;  %v394_v8 = vld [vmem:[#allocation2 + $0x7e8] sm:$0xff] }
 0x169   :  { %4301 = vmatprep.subr.bf16.mxu1 %v4300_v22  ;;  %v4448_v22 = vpack.c.bf16 %v314_v12, %v306_v11  ;;  %v4322_v29 = vpack.c.bf16 %v823_v20, %v815_v18  ;;  %v4340_v11 = vpack.c.bf16 %v904_v6, %v896_v5  ;;  %v895_v12 = vld [vmem:[#allocation2 + $0x1790] sm:$0xff]  ;;  %v393_v18 = vld [vmem:[#allocation2 + $0x7e0] sm:$0xff]  ;;  %v912_v20 = vld [vmem:[#allocation2 + $0x1818] sm:$0xff] }
 0x16a   :  { %4427 = vmatpush1.bf16.msra.mxu0 %v4426_v21  ;;  %v305_v21 = vld [vmem:[#allocation2 + $0x520] sm:$0xff]  ;;  %v976_v5 = vld [vmem:[#allocation2 + $0x1a18] sm:$0xff] }
 0x16b   :  { %4429 = vmatprep.subr.bf16.mxu0 %v4428_v26  ;;  %v322_v26 = vld [vmem:[#allocation2 + $0x5a8] sm:$0xff]  ;;  %v4450_v30 = vpack.c.bf16 %v313_v23, %v305_v21  ;;  %v920_v21 = vld [vmem:[#allocation2 + $0x1858] sm:$0xff] }
 0x16c   :  { %4303 = vmatpush1.bf16.msra.mxu1 %v4302_v33  ;;  %v839_v33 = vld [vmem:[#allocation2 + $0x15d0] sm:$0xff]  ;;  %v410_v23 = vld [vmem:[#allocation2 + $0x868] sm:$0xff]  ;;  %v984_v6 = vld [vmem:[#allocation2 + $0x1a58] sm:$0xff] }
 0x16d   :  { %4305 = vmatprep.subr.bf16.mxu1 %v4304_v35  ;;  %v4452_v35 = vpack.c.bf16 %v330_v27, %v322_v26  ;;  %v4326_v41 = vpack.c.bf16 %v839_v33, %v831_v32  ;;  %v4344_v26 = vpack.c.bf16 %v920_v21, %v912_v20  ;;  %v911_v27 = vld [vmem:[#allocation2 + $0x1810] sm:$0xff]  ;;  %v409_v32 = vld [vmem:[#allocation2 + $0x860] sm:$0xff]  ;;  %v928_v33 = vld [vmem:[#allocation2 + $0x1898] sm:$0xff] }
 0x16e   :  { %4431 = vmatpush1.bf16.msra.mxu0 %v4430_v34  ;;  %v321_v34 = vld [vmem:[#allocation2 + $0x5a0] sm:$0xff]  ;;  %v992_v20 = vld [vmem:[#allocation2 + $0x1a98] sm:$0xff] }
 0x16f   :  { %4433 = vmatprep.subr.bf16.mxu0 %v4432_v39  ;;  %v338_v39 = vld [vmem:[#allocation2 + $0x628] sm:$0xff]  ;;  %v4454_v42 = vpack.c.bf16 %v329_v36, %v321_v34  ;;  %v936_v34 = vld [vmem:[#allocation2 + $0x18d8] sm:$0xff] }
 0x170   :  { %4307 = vmatpush1.bf16.msra.mxu1 %v4306_v45  ;;  %v855_v45 = vld [vmem:[#allocation2 + $0x1650] sm:$0xff]  ;;  %v426_v36 = vld [vmem:[#allocation2 + $0x8e8] sm:$0xff]  ;;  %v1000_v21 = vld [vmem:[#allocation2 + $0x1ad8] sm:$0xff] }
 0x171   :  { %4309 = vmatprep.subr.bf16.mxu1 %v4308_v47  ;;  %v4456_v47 = vpack.c.bf16 %v346_v40, %v338_v39  ;;  %v4330_v52 = vpack.c.bf16 %v855_v45, %v847_v44  ;;  %v4348_v39 = vpack.c.bf16 %v936_v34, %v928_v33  ;;  %v927_v40 = vld [vmem:[#allocation2 + $0x1890] sm:$0xff]  ;;  %v425_v44 = vld [vmem:[#allocation2 + $0x8e0] sm:$0xff]  ;;  %v944_v45 = vld [vmem:[#allocation2 + $0x1918] sm:$0xff] }
 0x172   :  { %4435 = vmatpush1.bf16.msra.mxu0 %v4434_v46  ;;  %v337_v46 = vld [vmem:[#allocation2 + $0x620] sm:$0xff]  ;;  %v1008_v33 = vld [vmem:[#allocation2 + $0x1b18] sm:$0xff] }
 0x173   :  { %4437 = vmatprep.subr.bf16.mxu0 %v4436_v17  ;;  %v354_v17 = vld [vmem:[#allocation2 + $0x6a8] sm:$0xff]  ;;  %v4458_v53 = vpack.c.bf16 %v345_v48, %v337_v46  ;;  %v952_v46 = vld [vmem:[#allocation2 + $0x1958] sm:$0xff] }
 0x174   :  { %4311 = vmatpush1.bf16.msra.mxu1 %v4310_v16  ;;  %v871_v16 = vld [vmem:[#allocation2 + $0x16d0] sm:$0xff]  ;;  %v434_v48 = vld [vmem:[#allocation2 + $0x928] sm:$0xff]  ;;  %v1016_v34 = vld [vmem:[#allocation2 + $0x1b58] sm:$0xff] }
 0x175   :  { %4313 = vmatprep.subr.bf16.mxu1 %v4312_v57  ;;  %v4460_v57 = vpack.c.bf16 %v362_v51, %v354_v17  ;;  %v4334_v63 = vpack.c.bf16 %v871_v16, %v863_v55  ;;  %v433_v55 = vld [vmem:[#allocation2 + $0x920] sm:$0xff]  ;;  %v4480_v16 = vpack.c.bf16 %v442_v49, %v434_v48  ;;  %v514_v49 = vld [vmem:[#allocation2 + $0xba8] sm:$0xff] }
 0x176   :  { %4439 = vmatpush1.bf16.msra.mxu0 %v4438_v56  ;;  %v353_v56 = vld [vmem:[#allocation2 + $0x6a0] sm:$0xff] }
 0x177   :  { %4441 = vmatprep.subr.bf16.mxu0 %v4440_v61  ;;  %v370_v61 = vld [vmem:[#allocation2 + $0x728] sm:$0xff]  ;;  %v4462_v0 = vpack.c.bf16 %v361_v58, %v353_v56  ;;  %v441_v56 = vld [vmem:[#allocation2 + $0x960] sm:$0xff]  ;;  %v968_v58 = vld [vmem:[#allocation2 + $0x19d8] sm:$0xff] }
 0x178   :  { %4315 = vmatpush1.bf16.msra.mxu1 %v4314_v28  ;;  %v887_v28 = vld [vmem:[#allocation2 + $0x1750] sm:$0xff] }
 0x179   :  { %4317 = vmatprep.subr.bf16.mxu1 %v4316_v3  ;;  %v4464_v3 = vpack.c.bf16 %v378_v62, %v370_v61  ;;  %v4338_v9 = vpack.c.bf16 %v887_v28, %v879_v19  ;;  %v458_v61 = vld [vmem:[#allocation2 + $0x9e8] sm:$0xff]  ;;  %v5665_v62 = vld [vmem:[%s6238_s0 + $0x18] sm:$0xff]  ;;  %v959_v19 = vld [vmem:[#allocation2 + $0x1990] sm:$0xff] }
 0x17a   :  { %4443 = vmatpush1.bf16.msra.mxu0 %v4442_v2  ;;  %v369_v2 = vld [vmem:[#allocation2 + $0x720] sm:$0xff]  ;;  %v967_v28 = vld [vmem:[#allocation2 + $0x19d0] sm:$0xff] }
 0x17b   :  { %4445 = vmatprep.subr.bf16.mxu0 %v4444_v7  ;;  %v386_v7 = vld [vmem:[#allocation2 + $0x7a8] sm:$0xff]  ;;  %v4466_v10 = vpack.c.bf16 %v377_v4, %v369_v2  ;;  %v449_v2 = vld [vmem:[#allocation2 + $0x9a0] sm:$0xff] }
 0x17c   :  { %4319 = vmatpush1.bf16.msra.mxu1 %v4318_v13  ;;  %v903_v13 = vld [vmem:[#allocation2 + $0x17d0] sm:$0xff]  ;;  %v457_v4 = vld [vmem:[#allocation2 + $0x9e0] sm:$0xff] }
 0x17d   :  { %4321 = vmatprep.subr.bf16.mxu1 %v4320_v15  ;;  %v4468_v15 = vpack.c.bf16 %v394_v8, %v386_v7  ;;  %v4342_v24 = vpack.c.bf16 %v903_v13, %v895_v12  ;;  %v466_v7 = vld [vmem:[#allocation2 + $0xa28] sm:$0xff]  ;;  %v975_v12 = vld [vmem:[#allocation2 + $0x1a10] sm:$0xff] }
 0x17e   :  { %4447 = vmatpush1.bf16.msra.mxu0 %v4446_v14  ;;  %v385_v14 = vld [vmem:[#allocation2 + $0x7a0] sm:$0xff]  ;;  %v474_v8 = vld [vmem:[#allocation2 + $0xa68] sm:$0xff]  ;;  %v983_v13 = vld [vmem:[#allocation2 + $0x1a50] sm:$0xff] }
 0x17f   :  { %4449 = vmatprep.subr.bf16.mxu0 %v4448_v22  ;;  %v402_v22 = vld [vmem:[#allocation2 + $0x828] sm:$0xff]  ;;  %v4470_v25 = vpack.c.bf16 %v393_v18, %v385_v14  ;;  %v465_v14 = vld [vmem:[#allocation2 + $0xa20] sm:$0xff] }
 0x180   :  { %4323 = vmatpush1.bf16.msra.mxu1 %v4322_v29  ;;  %v919_v29 = vld [vmem:[#allocation2 + $0x1850] sm:$0xff]  ;;  %v473_v18 = vld [vmem:[#allocation2 + $0xa60] sm:$0xff] }
 0x181   :  { %4325 = vmatprep.subr.bf16.mxu1 %v4324_v31  ;;  %v4472_v31 = vpack.c.bf16 %v410_v23, %v402_v22  ;;  %v4346_v37 = vpack.c.bf16 %v919_v29, %v911_v27  ;;  %v482_v22 = vld [vmem:[#allocation2 + $0xaa8] sm:$0xff]  ;;  %v991_v27 = vld [vmem:[#allocation2 + $0x1a90] sm:$0xff] }
 0x182   :  { %4451 = vmatpush1.bf16.msra.mxu0 %v4450_v30  ;;  %v401_v30 = vld [vmem:[#allocation2 + $0x820] sm:$0xff]  ;;  %v490_v23 = vld [vmem:[#allocation2 + $0xae8] sm:$0xff]  ;;  %v999_v29 = vld [vmem:[#allocation2 + $0x1ad0] sm:$0xff] }
 0x183   :  { %4453 = vmatprep.subr.bf16.mxu0 %v4452_v35  ;;  %v418_v35 = vld [vmem:[#allocation2 + $0x8a8] sm:$0xff]  ;;  %v4474_v38 = vpack.c.bf16 %v409_v32, %v401_v30  ;;  %v481_v30 = vld [vmem:[#allocation2 + $0xaa0] sm:$0xff] }
 0x184   :  { %4327 = vmatpush1.bf16.msra.mxu1 %v4326_v41  ;;  %v935_v41 = vld [vmem:[#allocation2 + $0x18d0] sm:$0xff]  ;;  %v489_v32 = vld [vmem:[#allocation2 + $0xae0] sm:$0xff] }
 0x185   :  { %4329 = vmatprep.subr.bf16.mxu1 %v4328_v43  ;;  %v4476_v43 = vpack.c.bf16 %v426_v36, %v418_v35  ;;  %v4350_v17 = vpack.c.bf16 %v935_v41, %v927_v40  ;;  %v498_v35 = vld [vmem:[#allocation2 + $0xb28] sm:$0xff]  ;;  %v1007_v40 = vld [vmem:[#allocation2 + $0x1b10] sm:$0xff] }
 0x186   :  { %4455 = vmatpush1.bf16.msra.mxu0 %v4454_v42  ;;  %v417_v42 = vld [vmem:[#allocation2 + $0x8a0] sm:$0xff]  ;;  %v506_v36 = vld [vmem:[#allocation2 + $0xb68] sm:$0xff]  ;;  %v1015_v41 = vld [vmem:[#allocation2 + $0x1b50] sm:$0xff] }
 0x187   :  { %4457 = vmatprep.subr.bf16.mxu0 %v4456_v47  ;;  %v5662_v47 = vld [vmem:[%s6238_s0 + $0x20] sm:$0xff]  ;;  %v4478_v51 = vpack.c.bf16 %v425_v44, %v417_v42  ;;  %v4496_v44 = vpack.c.bf16 %v506_v36, %v498_v35 }
 0x188   :  { %4331 = vmatpush1.bf16.msra.mxu1 %v4330_v52  ;;  %v4352_v52 = vpack.c.bf16 %v952_v46, %v944_v45  ;;  %v497_v42 = vld [vmem:[#allocation2 + $0xb20] sm:$0xff]  ;;  %v1024_v46 = vld [vmem:[#allocation2 + $0x1b98] sm:$0xff] }
 0x189   :  { %4333 = vmatprep.subr.bf16.mxu1 %v4332_v54  ;;  %v951_v54 = vld [vmem:[#allocation2 + $0x1950] sm:$0xff]  ;;  %v505_v45 = vld [vmem:[#allocation2 + $0xb60] sm:$0xff] }
 0x18a   :  { %4459 = vmatpush1.bf16.msra.mxu0 %v4458_v53  ;;  %v943_v53 = vld [vmem:[#allocation2 + $0x1910] sm:$0xff] }
 0x18b   :  { %4461 = vmatprep.subr.bf16.mxu0 %v4460_v57  ;;  %v960_v57 = vld [vmem:[#allocation2 + $0x1998] sm:$0xff] }
 0x18c   :  { %4335 = vmatpush1.bf16.msra.mxu1 %v4334_v63  ;;  %v4354_v63 = vpack.c.bf16 %v951_v54, %v943_v53  ;;  %v1023_v53 = vld [vmem:[#allocation2 + $0x1b90] sm:$0xff] }
 0x18d   :  { %4337 = vmatprep.subr.bf16.mxu1 %v4336_v1  ;;  %v4356_v1 = vpack.c.bf16 %v968_v58, %v960_v57  ;;  %v1031_v54 = vld [vmem:[#allocation2 + $0x1bd0] sm:$0xff]  ;;  %v1040_v57 = vld [vmem:[#allocation2 + $0x1c18] sm:$0xff] }
 0x18e   :  { %4463 = vmatpush1.bf16.msra.mxu0 %v4462_v0  ;;  %v4482_v0 = vpack.c.bf16 %v441_v56, %v433_v55  ;;  %v513_v55 = vld [vmem:[#allocation2 + $0xba0] sm:$0xff]  ;;  %v1048_v58 = vld [vmem:[#allocation2 + $0x1c58] sm:$0xff] }
 0x18f   :  { %4465 = vmatprep.subr.bf16.mxu0 %v4464_v3  ;;  %v4484_v3 = vpack.c.bf16 %v458_v61, %v450_v60  ;;  %v521_v56 = vld [vmem:[#allocation2 + $0xbe0] sm:$0xff]  ;;  %v538_v60 = vld [vmem:[#allocation2 + $0xc68] sm:$0xff]  ;;  %v4374_v61 = vpack.c.bf16 %v1031_v54, %v1023_v53 }
 0x190   :  { %4339 = vmatpush1.bf16.msra.mxu1 %v4338_v9  ;;  %v4358_v9 = vpack.c.bf16 %v967_v28, %v959_v19  ;;  %v529_v19 = vld [vmem:[#allocation2 + $0xc20] sm:$0xff] }
 0x191   :  { %4341 = vmatprep.subr.bf16.mxu1 %v4340_v11  ;;  %v4360_v11 = vpack.c.bf16 %v984_v6, %v976_v5  ;;  %v546_v5 = vld [vmem:[#allocation2 + $0xca8] sm:$0xff]  ;;  %v593_v53 = vld [vmem:[#allocation2 + $0xe20] sm:$0xff] }
 0x192   :  { %4467 = vmatpush1.bf16.msra.mxu0 %v4466_v10  ;;  %v4486_v10 = vpack.c.bf16 %v457_v4, %v449_v2  ;;  %v537_v2 = vld [vmem:[#allocation2 + $0xc60] sm:$0xff]  ;;  %v1064_v4 = vld [vmem:[#allocation2 + $0x1cd8] sm:$0xff]  ;;  %v554_v6 = vld [vmem:[#allocation2 + $0xce8] sm:$0xff] }
 0x193   :  { %4469 = vmatprep.subr.bf16.mxu0 %v4468_v15  ;;  %v4488_v15 = vpack.c.bf16 %v474_v8, %v466_v7  ;;  %v4506_v8 = vpack.c.bf16 %v537_v2, %v529_v19  ;;  %v617_v19 = vld [vmem:[#allocation2 + $0xee0] sm:$0xff]  ;;  %v1144_v2 = vld [vmem:[#allocation2 + $0x1f58] sm:$0xff] }
 0x194   :  { %4343 = vmatpush1.bf16.msra.mxu1 %v4342_v24  ;;  %v4362_v24 = vpack.c.bf16 %v983_v13, %v975_v12  ;;  %v545_v12 = vld [vmem:[#allocation2 + $0xca0] sm:$0xff]  ;;  %v4508_v13 = vpack.c.bf16 %v554_v6, %v546_v5 }
 0x195   :  { %4345 = vmatprep.subr.bf16.mxu1 %v4344_v26  ;;  %v4364_v26 = vpack.c.bf16 %v1000_v21, %v992_v20  ;;  %v562_v20 = vld [vmem:[#allocation2 + $0xd28] sm:$0xff] }
 0x196   :  { %4471 = vmatpush1.bf16.msra.mxu0 %v4470_v25  ;;  %v4490_v25 = vpack.c.bf16 %v473_v18, %v465_v14  ;;  %v553_v14 = vld [vmem:[#allocation2 + $0xce0] sm:$0xff]  ;;  %v1080_v18 = vld [vmem:[#allocation2 + $0x1d58] sm:$0xff]  ;;  %v570_v21 = vld [vmem:[#allocation2 + $0xd68] sm:$0xff] }
 0x197   :  { %4473 = vmatprep.subr.bf16.mxu0 %v4472_v31  ;;  %1698 = vmatmul.mubr.f32.vlgmr.msra.gmra.mrb[2].mxu1 %v5662_v47  ;;  %v4492_v31 = vpack.c.bf16 %v490_v23, %v482_v22  ;;  %v1032_v47 = vld [vmem:[#allocation2 + $0x1bd8] sm:$0xff]  ;;  %v4510_v23 = vpack.c.bf16 %v553_v14, %v545_v12  ;;  %v633_v12 = vld [vmem:[#allocation2 + $0xf60] sm:$0xff] }
 0x198   :  { %4347 = vmatpush1.bf16.msra.mxu1 %v4346_v37  ;;  %1768 = vmatprep.mubr.f32.mxu1 %v5664_v59  ;;  %v4366_v37 = vpack.c.bf16 %v999_v29, %v991_v27  ;;  %v530_v59 = vld [vmem:[#allocation2 + $0xc28] sm:$0xff]  ;;  %v561_v27 = vld [vmem:[#allocation2 + $0xd20] sm:$0xff]  ;;  %v4512_v29 = vpack.c.bf16 %v570_v21, %v562_v20  ;;  %v1160_v14 = vld [vmem:[#allocation2 + $0x1fd8] sm:$0xff] }
 0x199   :  { %1840 = vmatmul.mubr.f32.vlgmr.msra.gmra.mrb[2].mxu0 %v5663_v50  ;;  %4349 = vmatprep.subr.bf16.mxu1 %v4348_v39  ;;  %v4368_v39 = vpack.c.bf16 %v1016_v34, %v1008_v33  ;;  %v522_v50 = vld [vmem:[#allocation2 + $0xbe8] sm:$0xff]  ;;  %v4504_v28 = vpack.c.bf16 %v538_v60, %v530_v59 }
 0x19a   :  { %4475 = vmatpush1.bf16.msra.mxu0 %v4474_v38  ;;  %1910 = vmatprep.mubr.f32.mxu0 %v5665_v62  ;;  %v4494_v38 = vpack.c.bf16 %v489_v32, %v481_v30  ;;  %v4502_v62 = vpack.c.bf16 %v521_v56, %v513_v55  ;;  %v569_v30 = vld [vmem:[#allocation2 + $0xd60] sm:$0xff]  ;;  %v1096_v32 = vld [vmem:[#allocation2 + $0x1dd8] sm:$0xff]  ;;  %v578_v33 = vld [vmem:[#allocation2 + $0xda8] sm:$0xff] }
 0x19b   :  { %4477 = vmatprep.subr.bf16.mxu0 %v4476_v43  ;;  %v586_v34 = vld [vmem:[#allocation2 + $0xde8] sm:$0xff]  ;;  %v4514_v36 = vpack.c.bf16 %v569_v30, %v561_v27  ;;  %v601_v55 = vld [vmem:[#allocation2 + $0xe60] sm:$0xff]  ;;  %v1128_v56 = vld [vmem:[#allocation2 + $0x1ed8] sm:$0xff] }
 0x19c   :  { %4351 = vmatpush1.bf16.msra.mxu1 %v4350_v17  ;;  %v4370_v17 = vpack.c.bf16 %v1015_v41, %v1007_v40  ;;  %v577_v40 = vld [vmem:[#allocation2 + $0xda0] sm:$0xff]  ;;  %v4516_v41 = vpack.c.bf16 %v586_v34, %v578_v33  ;;  %v4522_v60 = vpack.c.bf16 %v601_v55, %v593_v53  ;;  %v156_v30 = vld [vmem:[#allocation2 + $0x78] sm:$0xff] }
 0x19d   :  { %4353 = vmatprep.subr.bf16.mxu1 %v4352_v52  ;;  %v4372_v52 = vpack.c.bf16 %v1032_v47, %v1024_v46  ;;  %v594_v46 = vld [vmem:[#allocation2 + $0xe28] sm:$0xff]  ;;  %v649_v27 = vld [vmem:[#allocation2 + $0xfe0] sm:$0xff]  ;;  %v188_v55 = vld [vmem:[#allocation2 + $0x178] sm:$0xff] }
 0x19e   :  { %4479 = vmatpush1.bf16.msra.mxu0 %v4478_v51  ;;  %v4498_v51 = vpack.c.bf16 %v505_v45, %v497_v42  ;;  %v585_v42 = vld [vmem:[#allocation2 + $0xde0] sm:$0xff]  ;;  %v1112_v45 = vld [vmem:[#allocation2 + $0x1e58] sm:$0xff]  ;;  %v602_v47 = vld [vmem:[#allocation2 + $0xe68] sm:$0xff] }
 0x19f   :  { %4481 = vmatprep.subr.bf16.mxu0 %v4480_v16  ;;  %v4500_v16 = vpack.c.bf16 %v522_v50, %v514_v49  ;;  %v4518_v50 = vpack.c.bf16 %v585_v42, %v577_v40  ;;  %v4520_v54 = vpack.c.bf16 %v602_v47, %v594_v46  ;;  %v665_v40 = vld [vmem:[#allocation2 + $0x1060] sm:$0xff]  ;;  %v172_v42 = vld [vmem:[#allocation2 + $0xf8] sm:$0xff] }
 0x1a0   :  { %4355 = vmatpush1.bf16.msra.mxu1 %v4354_v63  ;;  %v4376_v63 = vpack.c.bf16 %v1048_v58, %v1040_v57  ;;  %v610_v57 = vld [vmem:[#allocation2 + $0xea8] sm:$0xff]  ;;  %v681_v53 = vld [vmem:[#allocation2 + $0x10e0] sm:$0xff] }
 0x1a1   :  { %4357 = vmatprep.subr.bf16.mxu1 %v4356_v1  ;;  %v1047_v1 = vld [vmem:[#allocation2 + $0x1c50] sm:$0xff]  ;;  %v618_v58 = vld [vmem:[#allocation2 + $0xee8] sm:$0xff] }
 0x1a2   :  { %4483 = vmatpush1.bf16.msra.mxu0 %v4482_v0  ;;  %v1039_v0 = vld [vmem:[#allocation2 + $0x1c10] sm:$0xff] }
 0x1a3   :  { %4485 = vmatprep.subr.bf16.mxu0 %v4484_v3  ;;  %v1056_v3 = vld [vmem:[#allocation2 + $0x1c98] sm:$0xff]  ;;  %v4378_v7 = vpack.c.bf16 %v1047_v1, %v1039_v0  ;;  %v609_v0 = vld [vmem:[#allocation2 + $0xea0] sm:$0xff]  ;;  %v4524_v1 = vpack.c.bf16 %v618_v58, %v610_v57  ;;  %v698_v57 = vld [vmem:[#allocation2 + $0x1168] sm:$0xff] }
 0x1a4   :  { %4359 = vmatpush1.bf16.msra.mxu1 %v4358_v9  ;;  %v4380_v9 = vpack.c.bf16 %v1064_v4, %v1056_v3  ;;  %v626_v3 = vld [vmem:[#allocation2 + $0xf28] sm:$0xff]  ;;  %v4526_v6 = vpack.c.bf16 %v617_v19, %v609_v0  ;;  %v5667_v58 = vld [vmem:[%s6238_s0 + $0x10] sm:$0xff]  ;;  %v697_v19 = vld [vmem:[#allocation2 + $0x1160] sm:$0xff] }
 0x1a5   :  { %4361 = vmatprep.subr.bf16.mxu1 %v4360_v11  ;;  %v1063_v11 = vld [vmem:[#allocation2 + $0x1cd0] sm:$0xff]  ;;  %v634_v4 = vld [vmem:[#allocation2 + $0xf68] sm:$0xff] }
 0x1a6   :  { %4487 = vmatpush1.bf16.msra.mxu0 %v4486_v10  ;;  %v1055_v10 = vld [vmem:[#allocation2 + $0x1c90] sm:$0xff] }
 0x1a7   :  { %4489 = vmatprep.subr.bf16.mxu0 %v4488_v15  ;;  %v1072_v15 = vld [vmem:[#allocation2 + $0x1d18] sm:$0xff]  ;;  %v4382_v22 = vpack.c.bf16 %v1063_v11, %v1055_v10  ;;  %v625_v10 = vld [vmem:[#allocation2 + $0xf20] sm:$0xff]  ;;  %v4528_v11 = vpack.c.bf16 %v634_v4, %v626_v3  ;;  %v187_v0 = vld [vmem:[#allocation2 + $0x170] sm:$0xff] }
 0x1a8   :  { %4363 = vmatpush1.bf16.msra.mxu1 %v4362_v24  ;;  %v4384_v24 = vpack.c.bf16 %v1080_v18, %v1072_v15  ;;  %v642_v15 = vld [vmem:[#allocation2 + $0xfa8] sm:$0xff]  ;;  %v4530_v21 = vpack.c.bf16 %v633_v12, %v625_v10  ;;  %v705_v10 = vld [vmem:[#allocation2 + $0x11a0] sm:$0xff]  ;;  %v203_v12 = vld [vmem:[#allocation2 + $0x1f0] sm:$0xff] }
 0x1a9   :  { %4365 = vmatprep.subr.bf16.mxu1 %v4364_v26  ;;  %v1079_v26 = vld [vmem:[#allocation2 + $0x1d50] sm:$0xff]  ;;  %v650_v18 = vld [vmem:[#allocation2 + $0xfe8] sm:$0xff] }
 0x1aa   :  { %4491 = vmatpush1.bf16.msra.mxu0 %v4490_v25  ;;  %v6095_v43 = vpop.f32.mrb[0].mxu1  ;;  %v1071_v25 = vld [vmem:[#allocation2 + $0x1d10] sm:$0xff]  ;;  %v5668_v3 = vld [vmem:[%s6238_s0 + $0x28] sm:$0xff] }
 0x1ab   :  { %4493 = vmatprep.subr.bf16.mxu0 %v4492_v31  ;;  %v6097_v48 = vpop.f32.mrb[1].mxu1  ;;  %v1088_v31 = vld [vmem:[#allocation2 + $0x1d98] sm:$0xff]  ;;  %v4386_v35 = vpack.c.bf16 %v1079_v26, %v1071_v25  ;;  %v641_v25 = vld [vmem:[#allocation2 + $0xfa0] sm:$0xff]  ;;  %v4532_v26 = vpack.c.bf16 %v650_v18, %v642_v15  ;;  %v706_v4 = vld [vmem:[#allocation2 + $0x11a8] sm:$0xff] }
 0x1ac   :  { %4367 = vmatpush1.bf16.msra.mxu1 %v4366_v37  ;;  %v4388_v37 = vpack.c.bf16 %v1096_v32, %v1088_v31  ;;  %v658_v31 = vld [vmem:[#allocation2 + $0x1028] sm:$0xff]  ;;  %v4534_v34 = vpack.c.bf16 %v649_v27, %v641_v25  ;;  %v212_v15 = vld [vmem:[#allocation2 + $0x238] sm:$0xff]  ;;  %v721_v25 = vld [vmem:[#allocation2 + $0x1220] sm:$0xff] }
 0x1ad   :  { %4369 = vmatprep.subr.bf16.mxu1 %v4368_v39  ;;  %v1095_v39 = vld [vmem:[#allocation2 + $0x1dd0] sm:$0xff]  ;;  %v666_v32 = vld [vmem:[#allocation2 + $0x1068] sm:$0xff]  ;;  %v220_v18 = vld [vmem:[#allocation2 + $0x278] sm:$0xff] }
 0x1ae   :  { %4495 = vmatpush1.bf16.msra.mxu0 %v4494_v38  ;;  %v1087_v38 = vld [vmem:[#allocation2 + $0x1d90] sm:$0xff] }
 0x1af   :  { %4497 = vmatprep.subr.bf16.mxu0 %v4496_v44  ;;  %v1104_v44 = vld [vmem:[#allocation2 + $0x1e18] sm:$0xff]  ;;  %v4390_v49 = vpack.c.bf16 %v1095_v39, %v1087_v38  ;;  %v155_v38 = vld [vmem:[#allocation2 + $0x70] sm:$0xff]  ;;  %v4536_v39 = vpack.c.bf16 %v666_v32, %v658_v31 }
 0x1b0   :  { %4371 = vmatpush1.bf16.msra.mxu1 %v4370_v17  ;;  %v4392_v17 = vpack.c.bf16 %v1112_v45, %v1104_v44  ;;  %v674_v44 = vld [vmem:[#allocation2 + $0x10a8] sm:$0xff]  ;;  %v219_v27 = vld [vmem:[#allocation2 + $0x270] sm:$0xff]  ;;  %v228_v31 = vld [vmem:[#allocation2 + $0x2b8] sm:$0xff] }
 0x1b1   :  { %4373 = vmatprep.subr.bf16.mxu1 %v4372_v52  ;;  %v1111_v52 = vld [vmem:[#allocation2 + $0x1e50] sm:$0xff]  ;;  %v682_v45 = vld [vmem:[#allocation2 + $0x10e8] sm:$0xff]  ;;  %v236_v32 = vld [vmem:[#allocation2 + $0x2f8] sm:$0xff] }
 0x1b2   :  { %4499 = vmatpush1.bf16.msra.mxu0 %v4498_v51  ;;  %v1103_v51 = vld [vmem:[#allocation2 + $0x1e10] sm:$0xff] }
 0x1b3   :  { %4501 = vmatprep.subr.bf16.mxu0 %v4500_v16  ;;  %v1120_v16 = vld [vmem:[#allocation2 + $0x1e98] sm:$0xff]  ;;  %v4394_v59 = vpack.c.bf16 %v1111_v52, %v1103_v51  ;;  %v171_v51 = vld [vmem:[#allocation2 + $0xf0] sm:$0xff]  ;;  %v4540_v52 = vpack.c.bf16 %v682_v45, %v674_v44 }
 0x1b4   :  { %4375 = vmatpush1.bf16.msra.mxu1 %v4374_v61  ;;  %v4396_v61 = vpack.c.bf16 %v1128_v56, %v1120_v16  ;;  %v5666_v16 = vld [vmem:[%s6238_s0 + $0x30] sm:$0xff]  ;;  %v690_v56 = vld [vmem:[#allocation2 + $0x1128] sm:$0xff]  ;;  %v244_v44 = vld [vmem:[#allocation2 + $0x338] sm:$0xff] }
 0x1b5   :  { %4377 = vmatprep.subr.bf16.mxu1 %v4376_v63  ;;  %v1127_v63 = vld [vmem:[#allocation2 + $0x1ed0] sm:$0xff]  ;;  %v252_v45 = vld [vmem:[#allocation2 + $0x378] sm:$0xff] }
 0x1b6   :  { %4503 = vmatpush1.bf16.msra.mxu0 %v4502_v62  ;;  %v1119_v62 = vld [vmem:[#allocation2 + $0x1e90] sm:$0xff] }
 0x1b7   :  { %4505 = vmatprep.subr.bf16.mxu0 %v4504_v28  ;;  %v1136_v28 = vld [vmem:[#allocation2 + $0x1f18] sm:$0xff]  ;;  %v4398_v5 = vpack.c.bf16 %v1127_v63, %v1119_v62  ;;  %v689_v62 = vld [vmem:[#allocation2 + $0x1120] sm:$0xff]  ;;  %v179_v63 = vld [vmem:[#allocation2 + $0x130] sm:$0xff] }
 0x1b8   :  { %4379 = vmatpush1.bf16.msra.mxu1 %v4378_v7  ;;  %v4400_v7 = vpack.c.bf16 %v1144_v2, %v1136_v28  ;;  %v196_v28 = vld [vmem:[#allocation2 + $0x1b8] sm:$0xff] }
 0x1b9   :  { %4381 = vmatprep.subr.bf16.mxu1 %v4380_v9  ;;  %v1143_v9 = vld [vmem:[#allocation2 + $0x1f50] sm:$0xff]  ;;  %v204_v2 = vld [vmem:[#allocation2 + $0x1f8] sm:$0xff] }
 0x1ba   :  { %4507 = vmatpush1.bf16.msra.mxu0 %v4506_v8  ;;  %v1135_v8 = vld [vmem:[#allocation2 + $0x1f10] sm:$0xff] }
 0x1bb   :  { %4509 = vmatprep.subr.bf16.mxu0 %v4508_v13  ;;  %v1152_v13 = vld [vmem:[#allocation2 + $0x1f98] sm:$0xff]  ;;  %v4402_v20 = vpack.c.bf16 %v1143_v9, %v1135_v8  ;;  %v4546_v8 = vpack.c.bf16 %v697_v19, %v689_v62  ;;  %v4676_v9 = vpack.c.bf16 %v204_v2, %v196_v28  ;;  %v769_v62 = vld [vmem:[#allocation2 + $0x13a0] sm:$0xff] }
 0x1bc   :  { %4383 = vmatpush1.bf16.msra.mxu1 %v4382_v22  ;;  %v4404_v22 = vpack.c.bf16 %v1160_v14, %v1152_v13  ;;  %v713_v14 = vld [vmem:[#allocation2 + $0x11e0] sm:$0xff]  ;;  %v276_v28 = vld [vmem:[#allocation2 + $0x438] sm:$0xff] }
 0x1bd   :  { %4385 = vmatprep.subr.bf16.mxu1 %v4384_v24  ;;  %v1159_v24 = vld [vmem:[#allocation2 + $0x1fd0] sm:$0xff]  ;;  %v777_v19 = vld [vmem:[#allocation2 + $0x13e0] sm:$0xff]  ;;  %v284_v2 = vld [vmem:[#allocation2 + $0x478] sm:$0xff] }
 0x1be   :  { %4511 = vmatpush1.bf16.msra.mxu0 %v4510_v23  ;;  %v1151_v23 = vld [vmem:[#allocation2 + $0x1f90] sm:$0xff] }
 0x1bf   :  { %4513 = vmatprep.subr.bf16.mxu0 %v4512_v29  ;;  %v148_v29 = vld [vmem:[#allocation2 + $0x38] sm:$0xff]  ;;  %v4406_v33 = vpack.c.bf16 %v1159_v24, %v1151_v23  ;;  %v4550_v23 = vpack.c.bf16 %v713_v14, %v705_v10  ;;  %v4680_v24 = vpack.c.bf16 %v220_v18, %v212_v15  ;;  %v283_v10 = vld [vmem:[#allocation2 + $0x470] sm:$0xff]  ;;  %v802_v15 = vld [vmem:[#allocation2 + $0x14a8] sm:$0xff] }
 0x1c0   :  { %4387 = vmatpush1.bf16.msra.mxu1 %v4386_v35  ;;  %v4664_v35 = vpack.c.bf16 %v156_v30, %v148_v29  ;;  %v729_v30 = vld [vmem:[#allocation2 + $0x1260] sm:$0xff]  ;;  %v300_v14 = vld [vmem:[#allocation2 + $0x4f8] sm:$0xff]  ;;  %v810_v18 = vld [vmem:[#allocation2 + $0x14e8] sm:$0xff] }
 0x1c1   :  { %4389 = vmatprep.subr.bf16.mxu1 %v4388_v37  ;;  %v147_v37 = vld [vmem:[#allocation2 + $0x30] sm:$0xff] }
 0x1c2   :  { %4515 = vmatpush1.bf16.msra.mxu0 %v4514_v36  ;;  %v657_v36 = vld [vmem:[#allocation2 + $0x1020] sm:$0xff]  ;;  %v4666_v46 = vpack.c.bf16 %v155_v38, %v147_v37  ;;  %v4684_v37 = vpack.c.bf16 %v236_v32, %v228_v31  ;;  %v818_v31 = vld [vmem:[#allocation2 + $0x1528] sm:$0xff] }
 0x1c3   :  { %4517 = vmatprep.subr.bf16.mxu0 %v4516_v41  ;;  %v164_v41 = vld [vmem:[#allocation2 + $0xb8] sm:$0xff]  ;;  %v4538_v47 = vpack.c.bf16 %v665_v40, %v657_v36  ;;  %v4554_v36 = vpack.c.bf16 %v729_v30, %v721_v25  ;;  %v737_v38 = vld [vmem:[#allocation2 + $0x12a0] sm:$0xff]  ;;  %v235_v40 = vld [vmem:[#allocation2 + $0x2f0] sm:$0xff] }
 0x1c4   :  { %4391 = vmatpush1.bf16.msra.mxu1 %v4390_v49  ;;  %v4668_v49 = vpack.c.bf16 %v172_v42, %v164_v41  ;;  %v745_v42 = vld [vmem:[#allocation2 + $0x12e0] sm:$0xff]  ;;  %v299_v25 = vld [vmem:[#allocation2 + $0x4f0] sm:$0xff]  ;;  %v316_v30 = vld [vmem:[#allocation2 + $0x578] sm:$0xff] }
 0x1c5   :  { %4393 = vmatprep.subr.bf16.mxu1 %v4392_v17  ;;  %v163_v17 = vld [vmem:[#allocation2 + $0xb0] sm:$0xff]  ;;  %v826_v32 = vld [vmem:[#allocation2 + $0x1568] sm:$0xff] }
 0x1c6   :  { %4519 = vmatpush1.bf16.msra.mxu0 %v4518_v50  ;;  %v673_v50 = vld [vmem:[#allocation2 + $0x10a0] sm:$0xff] }
 0x1c7   :  { %4521 = vmatprep.subr.bf16.mxu0 %v4520_v54  ;;  %v180_v54 = vld [vmem:[#allocation2 + $0x138] sm:$0xff] }
 0x1c8   :  { %4395 = vmatpush1.bf16.msra.mxu1 %v4394_v59  ;;  %v4670_v59 = vpack.c.bf16 %v171_v51, %v163_v17  ;;  %v4688_v17 = vpack.c.bf16 %v252_v45, %v244_v44  ;;  %v753_v51 = vld [vmem:[#allocation2 + $0x1320] sm:$0xff]  ;;  %v834_v44 = vld [vmem:[#allocation2 + $0x15a8] sm:$0xff] }
 0x1c9   :  { %4397 = vmatprep.subr.bf16.mxu1 %v4396_v61  ;;  %v4672_v61 = vpack.c.bf16 %v188_v55, %v180_v54  ;;  %v761_v55 = vld [vmem:[#allocation2 + $0x1360] sm:$0xff]  ;;  %v842_v45 = vld [vmem:[#allocation2 + $0x15e8] sm:$0xff] }
 0x1ca   :  { %4523 = vmatpush1.bf16.msra.mxu0 %v4522_v60  ;;  %v4542_v60 = vpack.c.bf16 %v681_v53, %v673_v50  ;;  %v4558_v50 = vpack.c.bf16 %v745_v42, %v737_v38  ;;  %v251_v53 = vld [vmem:[#allocation2 + $0x370] sm:$0xff]  ;;  %v332_v42 = vld [vmem:[#allocation2 + $0x5f8] sm:$0xff] }
 0x1cb   :  { %4525 = vmatprep.subr.bf16.mxu0 %v4524_v1  ;;  %v4544_v1 = vpack.c.bf16 %v698_v57, %v690_v56  ;;  %v268_v56 = vld [vmem:[#allocation2 + $0x3f8] sm:$0xff]  ;;  %v770_v57 = vld [vmem:[#allocation2 + $0x13a8] sm:$0xff]  ;;  %v315_v38 = vld [vmem:[#allocation2 + $0x570] sm:$0xff] }
 0x1cc   :  { %4399 = vmatpush1.bf16.msra.mxu1 %v4398_v5  ;;  %v714_v5 = vld [vmem:[#allocation2 + $0x11e8] sm:$0xff] }
 0x1cd   :  { %4401 = vmatprep.subr.bf16.mxu1 %v4400_v7  ;;  %v4674_v7 = vpack.c.bf16 %v187_v0, %v179_v63  ;;  %v4548_v13 = vpack.c.bf16 %v714_v5, %v706_v4  ;;  %v259_v63 = vld [vmem:[#allocation2 + $0x3b0] sm:$0xff]  ;;  %v794_v4 = vld [vmem:[#allocation2 + $0x1468] sm:$0xff] }
 0x1ce   :  { %4527 = vmatpush1.bf16.msra.mxu0 %v4526_v6  ;;  %v5669_v6 = vld [vmem:[%s6238_s0 + $0x8] sm:$0xff]  ;;  %v267_v0 = vld [vmem:[#allocation2 + $0x3f0] sm:$0xff] }
 0x1cf   :  { %4529 = vmatprep.subr.bf16.mxu0 %v4528_v11  ;;  %v195_v11 = vld [vmem:[#allocation2 + $0x1b0] sm:$0xff]  ;;  %v4694_v5 = vpack.c.bf16 %v267_v0, %v259_v63  ;;  %v857_v0 = vld [vmem:[#allocation2 + $0x1660] sm:$0xff] }
 0x1d0   :  { %4403 = vmatpush1.bf16.msra.mxu1 %v4402_v20  ;;  %v722_v20 = vld [vmem:[#allocation2 + $0x1228] sm:$0xff] }
 0x1d1   :  { %4405 = vmatprep.subr.bf16.mxu1 %v4404_v22  ;;  %v4678_v22 = vpack.c.bf16 %v203_v12, %v195_v11  ;;  %v793_v12 = vld [vmem:[#allocation2 + $0x1460] sm:$0xff] }
 0x1d2   :  { %4531 = vmatpush1.bf16.msra.mxu0 %v4530_v21  ;;  %v730_v21 = vld [vmem:[#allocation2 + $0x1268] sm:$0xff] }
 0x1d3   :  { %4533 = vmatprep.subr.bf16.mxu0 %v4532_v26  ;;  %v211_v26 = vld [vmem:[#allocation2 + $0x230] sm:$0xff]  ;;  %v4552_v29 = vpack.c.bf16 %v730_v21, %v722_v20 }
 0x1d4   :  { %4407 = vmatpush1.bf16.msra.mxu1 %v4406_v33  ;;  %v738_v33 = vld [vmem:[#allocation2 + $0x12a8] sm:$0xff] }
 0x1d5   :  { %4665 = vmatprep.subr.bf16.mxu1 %v4664_v35  ;;  %v4682_v35 = vpack.c.bf16 %v219_v27, %v211_v26  ;;  %v4572_v26 = vpack.c.bf16 %v810_v18, %v802_v15  ;;  %v809_v27 = vld [vmem:[#allocation2 + $0x14e0] sm:$0xff] }
 0x1d6   :  { %4535 = vmatpush1.bf16.msra.mxu0 %v4534_v34  ;;  %v746_v34 = vld [vmem:[#allocation2 + $0x12e8] sm:$0xff] }
 0x1d7   :  { %4537 = vmatprep.subr.bf16.mxu0 %v4536_v39  ;;  %1769 = vmatmul.mubr.f32.vlgmr.msra.gmra.mrb[2].mxu1 %v5666_v16  ;;  %v227_v39 = vld [vmem:[#allocation2 + $0x2b0] sm:$0xff]  ;;  %v4556_v41 = vpack.c.bf16 %v746_v34, %v738_v33  ;;  %v260_v16 = vld [vmem:[#allocation2 + $0x3b8] sm:$0xff] }
 0x1d8   :  { %4667 = vmatpush1.bf16.msra.mxu1 %v4666_v46  ;;  %2123 = vmatprep.mubr.f32.mxu1 %v5669_v6  ;;  %v754_v46 = vld [vmem:[#allocation2 + $0x1328] sm:$0xff]  ;;  %v4566_v6 = vpack.c.bf16 %v777_v19, %v769_v62  ;;  %v347_v62 = vld [vmem:[#allocation2 + $0x670] sm:$0xff]  ;;  %v364_v19 = vld [vmem:[#allocation2 + $0x6f8] sm:$0xff] }
 0x1d9   :  { %1911 = vmatmul.mubr.f32.vlgmr.msra.gmra.mrb[2].mxu0 %v5667_v58  ;;  %4669 = vmatprep.subr.bf16.mxu1 %v4668_v49  ;;  %v4686_v49 = vpack.c.bf16 %v235_v40, %v227_v39  ;;  %v778_v58 = vld [vmem:[#allocation2 + $0x13e8] sm:$0xff]  ;;  %v4576_v39 = vpack.c.bf16 %v826_v32, %v818_v31  ;;  %v825_v40 = vld [vmem:[#allocation2 + $0x1560] sm:$0xff] }
 0x1da   :  { %4539 = vmatpush1.bf16.msra.mxu0 %v4538_v47  ;;  %1981 = vmatprep.mubr.f32.mxu0 %v5668_v3  ;;  %v762_v47 = vld [vmem:[#allocation2 + $0x1368] sm:$0xff] }
 0x1db   :  { %4541 = vmatprep.subr.bf16.mxu0 %v4540_v52  ;;  %v243_v52 = vld [vmem:[#allocation2 + $0x330] sm:$0xff]  ;;  %v4560_v54 = vpack.c.bf16 %v762_v47, %v754_v46  ;;  %v786_v3 = vld [vmem:[#allocation2 + $0x1428] sm:$0xff] }
 0x1dc   :  { %4671 = vmatpush1.bf16.msra.mxu1 %v4670_v59  ;;  %v4690_v59 = vpack.c.bf16 %v251_v53, %v243_v52  ;;  %v4568_v11 = vpack.c.bf16 %v794_v4, %v786_v3  ;;  %v4580_v52 = vpack.c.bf16 %v842_v45, %v834_v44  ;;  %v841_v53 = vld [vmem:[#allocation2 + $0x15e0] sm:$0xff] }
 0x1dd   :  { %4673 = vmatprep.subr.bf16.mxu1 %v4672_v61  ;;  %v4692_v61 = vpack.c.bf16 %v268_v56, %v260_v16  ;;  %v850_v16 = vld [vmem:[#allocation2 + $0x1628] sm:$0xff] }
 0x1de   :  { %4543 = vmatpush1.bf16.msra.mxu0 %v4542_v60  ;;  %v4562_v60 = vpack.c.bf16 %v761_v55, %v753_v51  ;;  %v331_v51 = vld [vmem:[#allocation2 + $0x5f0] sm:$0xff]  ;;  %v348_v55 = vld [vmem:[#allocation2 + $0x678] sm:$0xff]  ;;  %v858_v56 = vld [vmem:[#allocation2 + $0x1668] sm:$0xff] }
 0x1df   :  { %4545 = vmatprep.subr.bf16.mxu0 %v4544_v1  ;;  %v4564_v1 = vpack.c.bf16 %v778_v58, %v770_v57  ;;  %v4584_v63 = vpack.c.bf16 %v858_v56, %v850_v16 }
 0x1e0   :  { %4675 = vmatpush1.bf16.msra.mxu1 %v4674_v7  ;;  %v4696_v7 = vpack.c.bf16 %v284_v2, %v276_v28  ;;  %v866_v28 = vld [vmem:[#allocation2 + $0x16a8] sm:$0xff] }
 0x1e1   :  { %4677 = vmatprep.subr.bf16.mxu1 %v4676_v9  ;;  %v275_v9 = vld [vmem:[#allocation2 + $0x430] sm:$0xff]  ;;  %v874_v2 = vld [vmem:[#allocation2 + $0x16e8] sm:$0xff] }
 0x1e2   :  { %4547 = vmatpush1.bf16.msra.mxu0 %v4546_v8  ;;  %v785_v8 = vld [vmem:[#allocation2 + $0x1420] sm:$0xff]  ;;  %v4698_v20 = vpack.c.bf16 %v283_v10, %v275_v9  ;;  %v4588_v9 = vpack.c.bf16 %v874_v2, %v866_v28  ;;  %v954_v28 = vld [vmem:[#allocation2 + $0x1968] sm:$0xff] }
 0x1e3   :  { %4549 = vmatprep.subr.bf16.mxu0 %v4548_v13  ;;  %v292_v13 = vld [vmem:[#allocation2 + $0x4b8] sm:$0xff]  ;;  %v4570_v21 = vpack.c.bf16 %v793_v12, %v785_v8  ;;  %v363_v8 = vld [vmem:[#allocation2 + $0x6f0] sm:$0xff]  ;;  %v873_v10 = vld [vmem:[#allocation2 + $0x16e0] sm:$0xff] }
 0x1e4   :  { %4679 = vmatpush1.bf16.msra.mxu1 %v4678_v22  ;;  %v4700_v22 = vpack.c.bf16 %v300_v14, %v292_v13  ;;  %v380_v12 = vld [vmem:[#allocation2 + $0x778] sm:$0xff]  ;;  %v882_v13 = vld [vmem:[#allocation2 + $0x1728] sm:$0xff]  ;;  %v5671_v2 = vld [vmem:[%s6238_s0 + $0x20] sm:$0xff] }
 0x1e5   :  { %4681 = vmatprep.subr.bf16.mxu1 %v4680_v24  ;;  %v291_v24 = vld [vmem:[#allocation2 + $0x4b0] sm:$0xff]  ;;  %v890_v14 = vld [vmem:[#allocation2 + $0x1768] sm:$0xff] }
 0x1e6   :  { %4551 = vmatpush1.bf16.msra.mxu0 %v4550_v23  ;;  %v801_v23 = vld [vmem:[#allocation2 + $0x14a0] sm:$0xff]  ;;  %v4702_v33 = vpack.c.bf16 %v299_v25, %v291_v24  ;;  %v4592_v24 = vpack.c.bf16 %v890_v14, %v882_v13  ;;  %v460_v13 = vld [vmem:[#allocation2 + $0x9f8] sm:$0xff] }
 0x1e7   :  { %4553 = vmatprep.subr.bf16.mxu0 %v4552_v29  ;;  %v308_v29 = vld [vmem:[#allocation2 + $0x538] sm:$0xff]  ;;  %v4574_v34 = vpack.c.bf16 %v809_v27, %v801_v23  ;;  %v379_v23 = vld [vmem:[#allocation2 + $0x770] sm:$0xff]  ;;  %v889_v25 = vld [vmem:[#allocation2 + $0x1760] sm:$0xff] }
 0x1e8   :  { %4683 = vmatpush1.bf16.msra.mxu1 %v4682_v35  ;;  %v4704_v35 = vpack.c.bf16 %v316_v30, %v308_v29  ;;  %v396_v27 = vld [vmem:[#allocation2 + $0x7f8] sm:$0xff]  ;;  %v898_v29 = vld [vmem:[#allocation2 + $0x17a8] sm:$0xff] }
 0x1e9   :  { %4685 = vmatprep.subr.bf16.mxu1 %v4684_v37  ;;  %v307_v37 = vld [vmem:[#allocation2 + $0x530] sm:$0xff]  ;;  %v906_v30 = vld [vmem:[#allocation2 + $0x17e8] sm:$0xff]  ;;  %v5672_v14 = vld [vmem:[%s6238_s0 + $0x38] sm:$0xff] }
 0x1ea   :  { %4555 = vmatpush1.bf16.msra.mxu0 %v4554_v36  ;;  %v817_v36 = vld [vmem:[#allocation2 + $0x1520] sm:$0xff]  ;;  %v4706_v46 = vpack.c.bf16 %v315_v38, %v307_v37  ;;  %v4596_v37 = vpack.c.bf16 %v906_v30, %v898_v29 }
 0x1eb   :  { %4557 = vmatprep.subr.bf16.mxu0 %v4556_v41  ;;  %v324_v41 = vld [vmem:[#allocation2 + $0x5b8] sm:$0xff]  ;;  %v4578_v47 = vpack.c.bf16 %v825_v40, %v817_v36  ;;  %v395_v36 = vld [vmem:[#allocation2 + $0x7f0] sm:$0xff]  ;;  %v905_v38 = vld [vmem:[#allocation2 + $0x17e0] sm:$0xff] }
 0x1ec   :  { %4687 = vmatpush1.bf16.msra.mxu1 %v4686_v49  ;;  %v4708_v49 = vpack.c.bf16 %v332_v42, %v324_v41  ;;  %v412_v40 = vld [vmem:[#allocation2 + $0x878] sm:$0xff]  ;;  %v914_v41 = vld [vmem:[#allocation2 + $0x1828] sm:$0xff]  ;;  %v969_v30 = vld [vmem:[#allocation2 + $0x19e0] sm:$0xff] }
 0x1ed   :  { %4689 = vmatprep.subr.bf16.mxu1 %v4688_v17  ;;  %v323_v17 = vld [vmem:[#allocation2 + $0x5b0] sm:$0xff]  ;;  %v922_v42 = vld [vmem:[#allocation2 + $0x1868] sm:$0xff] }
 0x1ee   :  { %4559 = vmatpush1.bf16.msra.mxu0 %v4558_v50  ;;  %v833_v50 = vld [vmem:[#allocation2 + $0x15a0] sm:$0xff]  ;;  %v4710_v57 = vpack.c.bf16 %v331_v51, %v323_v17  ;;  %v4600_v17 = vpack.c.bf16 %v922_v42, %v914_v41 }
 0x1ef   :  { %4561 = vmatprep.subr.bf16.mxu0 %v4560_v54  ;;  %v340_v54 = vld [vmem:[#allocation2 + $0x638] sm:$0xff]  ;;  %v4582_v58 = vpack.c.bf16 %v841_v53, %v833_v50  ;;  %v411_v50 = vld [vmem:[#allocation2 + $0x870] sm:$0xff]  ;;  %v921_v51 = vld [vmem:[#allocation2 + $0x1860] sm:$0xff] }
 0x1f0   :  { %4691 = vmatpush1.bf16.msra.mxu1 %v4690_v59  ;;  %v4712_v59 = vpack.c.bf16 %v348_v55, %v340_v54  ;;  %v428_v53 = vld [vmem:[#allocation2 + $0x8f8] sm:$0xff]  ;;  %v930_v54 = vld [vmem:[#allocation2 + $0x18a8] sm:$0xff] }
 0x1f1   :  { %4693 = vmatprep.subr.bf16.mxu1 %v4692_v61  ;;  %v339_v61 = vld [vmem:[#allocation2 + $0x630] sm:$0xff]  ;;  %v938_v55 = vld [vmem:[#allocation2 + $0x18e8] sm:$0xff] }
 0x1f2   :  { %4563 = vmatpush1.bf16.msra.mxu0 %v4562_v60  ;;  %v849_v60 = vld [vmem:[#allocation2 + $0x1620] sm:$0xff]  ;;  %v4714_v3 = vpack.c.bf16 %v347_v62, %v339_v61  ;;  %v4604_v61 = vpack.c.bf16 %v938_v55, %v930_v54  ;;  %v483_v55 = vld [vmem:[#allocation2 + $0xab0] sm:$0xff] }
 0x1f3   :  { %4565 = vmatprep.subr.bf16.mxu0 %v4564_v1  ;;  %v356_v1 = vld [vmem:[#allocation2 + $0x6b8] sm:$0xff]  ;;  %v4586_v4 = vpack.c.bf16 %v857_v0, %v849_v60  ;;  %v427_v60 = vld [vmem:[#allocation2 + $0x8f0] sm:$0xff]  ;;  %v937_v62 = vld [vmem:[#allocation2 + $0x18e0] sm:$0xff] }
 0x1f4   :  { %4695 = vmatpush1.bf16.msra.mxu1 %v4694_v5  ;;  %v4716_v5 = vpack.c.bf16 %v364_v19, %v356_v1  ;;  %v444_v0 = vld [vmem:[#allocation2 + $0x978] sm:$0xff]  ;;  %v5670_v1 = vld [vmem:[%s6238_s0] sm:$0xff]  ;;  %v946_v19 = vld [vmem:[#allocation2 + $0x1928] sm:$0xff] }
 0x1f5   :  { %4697 = vmatprep.subr.bf16.mxu1 %v4696_v7  ;;  %v355_v7 = vld [vmem:[#allocation2 + $0x6b0] sm:$0xff]  ;;  %v993_v54 = vld [vmem:[#allocation2 + $0x1aa0] sm:$0xff] }
 0x1f6   :  { %4567 = vmatpush1.bf16.msra.mxu0 %v4566_v6  ;;  %v865_v6 = vld [vmem:[#allocation2 + $0x16a0] sm:$0xff]  ;;  %v4718_v15 = vpack.c.bf16 %v363_v8, %v355_v7  ;;  %v435_v7 = vld [vmem:[#allocation2 + $0x930] sm:$0xff] }
 0x1f7   :  { %4569 = vmatprep.subr.bf16.mxu0 %v4568_v11  ;;  %v372_v11 = vld [vmem:[#allocation2 + $0x738] sm:$0xff]  ;;  %v4590_v18 = vpack.c.bf16 %v873_v10, %v865_v6  ;;  %v945_v6 = vld [vmem:[#allocation2 + $0x1920] sm:$0xff]  ;;  %v443_v8 = vld [vmem:[#allocation2 + $0x970] sm:$0xff]  ;;  %v4608_v10 = vpack.c.bf16 %v954_v28, %v946_v19 }
 0x1f8   :  { %4699 = vmatpush1.bf16.msra.mxu1 %v4698_v20  ;;  %v4720_v20 = vpack.c.bf16 %v380_v12, %v372_v11  ;;  %v953_v11 = vld [vmem:[#allocation2 + $0x1960] sm:$0xff]  ;;  %v452_v12 = vld [vmem:[#allocation2 + $0x9b8] sm:$0xff] }
 0x1f9   :  { %4701 = vmatprep.subr.bf16.mxu1 %v4700_v22  ;;  %v371_v22 = vld [vmem:[#allocation2 + $0x730] sm:$0xff]  ;;  %v1009_v28 = vld [vmem:[#allocation2 + $0x1b20] sm:$0xff] }
 0x1fa   :  { %4571 = vmatpush1.bf16.msra.mxu0 %v4570_v21  ;;  %v881_v21 = vld [vmem:[#allocation2 + $0x1720] sm:$0xff]  ;;  %v4722_v31 = vpack.c.bf16 %v379_v23, %v371_v22  ;;  %v4610_v22 = vpack.c.bf16 %v953_v11, %v945_v6  ;;  %v4740_v23 = vpack.c.bf16 %v460_v13, %v452_v12  ;;  %v1026_v11 = vld [vmem:[#allocation2 + $0x1ba8] sm:$0xff] }
 0x1fb   :  { %4573 = vmatprep.subr.bf16.mxu0 %v4572_v26  ;;  %v388_v26 = vld [vmem:[#allocation2 + $0x7b8] sm:$0xff]  ;;  %v4594_v32 = vpack.c.bf16 %v889_v25, %v881_v21  ;;  %v4738_v21 = vpack.c.bf16 %v443_v8, %v435_v7  ;;  %v451_v25 = vld [vmem:[#allocation2 + $0x9b0] sm:$0xff]  ;;  %v1017_v6 = vld [vmem:[#allocation2 + $0x1b60] sm:$0xff] }
 0x1fc   :  { %4703 = vmatpush1.bf16.msra.mxu1 %v4702_v33  ;;  %v4724_v33 = vpack.c.bf16 %v396_v27, %v388_v26  ;;  %v459_v26 = vld [vmem:[#allocation2 + $0x9f0] sm:$0xff]  ;;  %v516_v7 = vld [vmem:[#allocation2 + $0xbb8] sm:$0xff]  ;;  %v1034_v12 = vld [vmem:[#allocation2 + $0x1be8] sm:$0xff] }
 0x1fd   :  { %4705 = vmatprep.subr.bf16.mxu1 %v4704_v35  ;;  %v387_v35 = vld [vmem:[#allocation2 + $0x7b0] sm:$0xff]  ;;  %v524_v8 = vld [vmem:[#allocation2 + $0xbf8] sm:$0xff] }
 0x1fe   :  { %4575 = vmatpush1.bf16.msra.mxu0 %v4574_v34  ;;  %v897_v34 = vld [vmem:[#allocation2 + $0x17a0] sm:$0xff]  ;;  %v4726_v44 = vpack.c.bf16 %v395_v36, %v387_v35  ;;  %v4742_v35 = vpack.c.bf16 %v459_v26, %v451_v25  ;;  %v532_v25 = vld [vmem:[#allocation2 + $0xc38] sm:$0xff] }
 0x1ff   :  { %4577 = vmatprep.subr.bf16.mxu0 %v4576_v39  ;;  %v404_v39 = vld [vmem:[#allocation2 + $0x838] sm:$0xff]  ;;  %v4598_v45 = vpack.c.bf16 %v905_v38, %v897_v34  ;;  %v986_v34 = vld [vmem:[#allocation2 + $0x1a68] sm:$0xff]  ;;  %v977_v38 = vld [vmem:[#allocation2 + $0x1a20] sm:$0xff] }
 0x200   :  { %4707 = vmatpush1.bf16.msra.mxu1 %v4706_v46  ;;  %v4728_v46 = vpack.c.bf16 %v412_v40, %v404_v39  ;;  %v467_v39 = vld [vmem:[#allocation2 + $0xa30] sm:$0xff]  ;;  %v540_v26 = vld [vmem:[#allocation2 + $0xc78] sm:$0xff] }
 0x201   :  { %4709 = vmatprep.subr.bf16.mxu1 %v4708_v49  ;;  %v403_v49 = vld [vmem:[#allocation2 + $0x830] sm:$0xff] }
 0x202   :  { %4579 = vmatpush1.bf16.msra.mxu0 %v4578_v47  ;;  %v913_v47 = vld [vmem:[#allocation2 + $0x1820] sm:$0xff]  ;;  %v4730_v16 = vpack.c.bf16 %v411_v50, %v403_v49  ;;  %v475_v40 = vld [vmem:[#allocation2 + $0xa70] sm:$0xff]  ;;  %v994_v50 = vld [vmem:[#allocation2 + $0x1aa8] sm:$0xff] }
 0x203   :  { %4581 = vmatprep.subr.bf16.mxu0 %v4580_v52  ;;  %v420_v52 = vld [vmem:[#allocation2 + $0x8b8] sm:$0xff]  ;;  %v4602_v56 = vpack.c.bf16 %v921_v51, %v913_v47  ;;  %v1165_v47 = vld [vmem:[#allocation4] sm:$0xff]  ;;  %v4746_v51 = vpack.c.bf16 %v475_v40, %v467_v39 }
 0x204   :  { %4711 = vmatpush1.bf16.msra.mxu1 %v4710_v57  ;;  %v4732_v57 = vpack.c.bf16 %v428_v53, %v420_v52  ;;  %v548_v39 = vld [vmem:[#allocation2 + $0xcb8] sm:$0xff] }
 0x205   :  { %4713 = vmatprep.subr.bf16.mxu1 %v4712_v59  ;;  %v419_v59 = vld [vmem:[#allocation2 + $0x8b0] sm:$0xff]  ;;  %v556_v40 = vld [vmem:[#allocation2 + $0xcf8] sm:$0xff] }
 0x206   :  { %4583 = vmatpush1.bf16.msra.mxu0 %v4582_v58  ;;  %v929_v58 = vld [vmem:[#allocation2 + $0x18a0] sm:$0xff] }
 0x207   :  { %4585 = vmatprep.subr.bf16.mxu0 %v4584_v63  ;;  %v436_v63 = vld [vmem:[#allocation2 + $0x938] sm:$0xff] }
 0x208   :  { %4715 = vmatpush1.bf16.msra.mxu1 %v4714_v3  ;;  %v4734_v3 = vpack.c.bf16 %v427_v60, %v419_v59  ;;  %v500_v59 = vld [vmem:[#allocation2 + $0xb38] sm:$0xff] }
 0x209   :  { %4717 = vmatprep.subr.bf16.mxu1 %v4716_v5  ;;  %v4736_v5 = vpack.c.bf16 %v444_v0, %v436_v63  ;;  %v508_v60 = vld [vmem:[#allocation2 + $0xb78] sm:$0xff]  ;;  %v1018_v63 = vld [vmem:[#allocation2 + $0x1b68] sm:$0xff] }
 0x20a   :  { %4587 = vmatpush1.bf16.msra.mxu0 %v4586_v4  ;;  %v4606_v4 = vpack.c.bf16 %v937_v62, %v929_v58  ;;  %v1001_v58 = vld [vmem:[#allocation2 + $0x1ae0] sm:$0xff]  ;;  %v1010_v62 = vld [vmem:[#allocation2 + $0x1b28] sm:$0xff]  ;;  %v4752_v19 = vpack.c.bf16 %v508_v60, %v500_v59 }
 0x20b   :  { %4589 = vmatprep.subr.bf16.mxu0 %v4588_v9  ;;  %v1167_v9 = vlaneseq  ;;  %v1073_v60 = vld [vmem:[#allocation2 + $0x1d20] sm:$0xff] }
 0x20c   :  { %4719 = vmatpush1.bf16.msra.mxu1 %v4718_v15  ;;  %v962_v15 = vld [vmem:[#allocation2 + $0x19a8] sm:$0xff] }
 0x20d   :  { %4721 = vmatprep.subr.bf16.mxu1 %v4720_v20  ;;  %v5673_v20 = vld [vmem:[%s6238_s0 + $0x18] sm:$0xff]  ;;  %v6123_v27 = vshrl.u32 %v1167_v9, 7 }
 0x20e   :  { %4591 = vmatpush1.bf16.msra.mxu0 %v4590_v18  ;;  %v970_v18 = vld [vmem:[#allocation2 + $0x19e8] sm:$0xff] }
 0x20f   :  { %4593 = vmatprep.subr.bf16.mxu0 %v4592_v24  ;;  %v961_v24 = vld [vmem:[#allocation2 + $0x19a0] sm:$0xff]  ;;  %v4612_v29 = vpack.c.bf16 %v970_v18, %v962_v15  ;;  %v6126_v41 = vsub.s32 0, %v6123_v27  ;;  %v6129_v49 = vsub.s32 1, %v6123_v27 }
 0x210   :  { %4723 = vmatpush1.bf16.msra.mxu1 %v4722_v31  ;;  %v468_v31 = vld [vmem:[#allocation2 + $0xa38] sm:$0xff]  ;;  %v4614_v36 = vpack.c.bf16 %v969_v30, %v961_v24  ;;  %v4628_v24 = vpack.c.bf16 %v1034_v12, %v1026_v11  ;;  %v1050_v30 = vld [vmem:[#allocation2 + $0x1c68] sm:$0xff] }
 0x211   :  { %4725 = vmatprep.subr.bf16.mxu1 %v4724_v33  ;;  %v978_v33 = vld [vmem:[#allocation2 + $0x1a28] sm:$0xff]  ;;  %v596_v11 = vld [vmem:[#allocation2 + $0xe38] sm:$0xff] }
 0x212   :  { %4595 = vmatpush1.bf16.msra.mxu0 %v4594_v32  ;;  %v476_v32 = vld [vmem:[#allocation2 + $0xa78] sm:$0xff]  ;;  %v4616_v42 = vpack.c.bf16 %v986_v34, %v978_v33  ;;  %v4760_v33 = vpack.c.bf16 %v540_v26, %v532_v25  ;;  %v1041_v34 = vld [vmem:[#allocation2 + $0x1c20] sm:$0xff] }
 0x213   :  { %4597 = vmatprep.subr.bf16.mxu0 %v4596_v37  ;;  %v4744_v37 = vpack.c.bf16 %v476_v32, %v468_v31  ;;  %v604_v12 = vld [vmem:[#allocation2 + $0xe78] sm:$0xff]  ;;  %v1113_v25 = vld [vmem:[#allocation2 + $0x1e60] sm:$0xff] }
 0x214   :  { %4727 = vmatpush1.bf16.msra.mxu1 %v4726_v44  ;;  %v985_v44 = vld [vmem:[#allocation2 + $0x1a60] sm:$0xff]  ;;  %v612_v26 = vld [vmem:[#allocation2 + $0xeb8] sm:$0xff] }
 0x215   :  { %4729 = vmatprep.subr.bf16.mxu1 %v4728_v46  ;;  %v492_v46 = vld [vmem:[#allocation2 + $0xaf8] sm:$0xff]  ;;  %v4618_v52 = vpack.c.bf16 %v985_v44, %v977_v38  ;;  %v1049_v38 = vld [vmem:[#allocation2 + $0x1c60] sm:$0xff]  ;;  %v1066_v44 = vld [vmem:[#allocation2 + $0x1ce8] sm:$0xff] }
 0x216   :  { %4599 = vmatpush1.bf16.msra.mxu0 %v4598_v45  ;;  %v484_v45 = vld [vmem:[#allocation2 + $0xab8] sm:$0xff] }
 0x217   :  { %4601 = vmatprep.subr.bf16.mxu0 %v4600_v17  ;;  %2124 = vmatmul.mubr.f32.vlgmr.msra.gmra.mrb[4].mxu1 %v5670_v1  ;;  %v1002_v17 = vld [vmem:[#allocation2 + $0x1ae8] sm:$0xff]  ;;  %v4748_v53 = vpack.c.bf16 %v492_v46, %v484_v45  ;;  %v4622_v1 = vpack.c.bf16 %v1001_v58, %v993_v54  ;;  %v4634_v46 = vpack.c.bf16 %v1049_v38, %v1041_v34  ;;  %v564_v54 = vld [vmem:[#allocation2 + $0xd38] sm:$0xff] }
 0x218   :  { %4731 = vmatpush1.bf16.msra.mxu1 %v4730_v16  ;;  %2194 = vmatprep.mubr.f32.mxu1 %v5673_v20  ;;  %v491_v16 = vld [vmem:[#allocation2 + $0xaf0] sm:$0xff]  ;;  %v4756_v20 = vpack.c.bf16 %v524_v8, %v516_v7 }
 0x219   :  { %1982 = vmatmul.mubr.f32.vlgmr.msra.gmra.mrb[2].mxu0 %v5671_v2  ;;  %4733 = vmatprep.subr.bf16.mxu1 %v4732_v57  ;;  %v4620_v57 = vpack.c.bf16 %v1002_v17, %v994_v50  ;;  %v4750_v0 = vpack.c.bf16 %v491_v16, %v483_v55  ;;  %v499_v2 = vld [vmem:[#allocation2 + $0xb30] sm:$0xff]  ;;  %v1057_v50 = vld [vmem:[#allocation2 + $0x1ca0] sm:$0xff]  ;;  %v572_v55 = vld [vmem:[#allocation2 + $0xd78] sm:$0xff] }
 0x21a   :  { %4603 = vmatpush1.bf16.msra.mxu0 %v4602_v56  ;;  %2052 = vmatprep.mubr.f32.mxu0 %v5672_v14  ;;  %v1170_v56 = vrot.slane %v1165_v47, %v6126_v41  ;;  %v547_v17 = vld [vmem:[#allocation2 + $0xcb0] sm:$0xff]  ;;  %v1074_v16 = vld [vmem:[#allocation2 + $0x1d28] sm:$0xff]  ;;  %v4768_v59 = vpack.c.bf16 %v572_v55, %v564_v54  ;;  %v1145_v54 = vld [vmem:[#allocation2 + $0x1f60] sm:$0xff] }
 0x21b   :  { %4605 = vmatprep.subr.bf16.mxu0 %v4604_v61  ;;  %v1174_v61 = vrot.slane %v1165_v47, %v6129_v49  ;;  %v4764_v47 = vpack.c.bf16 %v556_v40, %v548_v39  ;;  %v579_v7 = vld [vmem:[#allocation2 + $0xdb0] sm:$0xff]  ;;  %v1129_v39 = vld [vmem:[#allocation2 + $0x1ee0] sm:$0xff]  ;;  %v628_v40 = vld [vmem:[#allocation2 + $0xf38] sm:$0xff] }
 0x21c   :  { %4735 = vmatpush1.bf16.msra.mxu1 %v4734_v3  ;;  %v507_v3 = vld [vmem:[#allocation2 + $0xb70] sm:$0xff]  ;;  %v644_v55 = vld [vmem:[#allocation2 + $0xfb8] sm:$0xff] }
 0x21d   :  { %4737 = vmatprep.subr.bf16.mxu1 %v4736_v5  ;;  %v4624_v5 = vpack.c.bf16 %v1018_v63, %v1010_v62  ;;  %v1276_v9 = vadd.f32 %v6097_v48, %v1174_v61  ;;  %v4754_v15 = vpack.c.bf16 %v507_v3, %v499_v2  ;;  %v1033_v48 = vld [vmem:[#allocation2 + $0x1be0] sm:$0xff]  ;;  %v563_v61 = vld [vmem:[#allocation2 + $0xd30] sm:$0xff]  ;;  %v1098_v2 = vld [vmem:[#allocation2 + $0x1de8] sm:$0xff] }
 0x21e   :  { %4607 = vmatpush1.bf16.msra.mxu0 %v4606_v4  ;;  %v1274_v4 = vadd.f32 %v6095_v43, %v1170_v56  ;;  %v4626_v43 = vpack.c.bf16 %v1017_v6, %v1009_v28  ;;  %v1082_v56 = vld [vmem:[#allocation2 + $0x1d68] sm:$0xff]  ;;  %v571_v62 = vld [vmem:[#allocation2 + $0xd70] sm:$0xff]  ;;  %v1089_v6 = vld [vmem:[#allocation2 + $0x1da0] sm:$0xff] }
 0x21f   :  { %4609 = vmatprep.subr.bf16.mxu0 %v4608_v10  ;;  %v4640_v63 = vpack.c.bf16 %v1082_v56, %v1074_v16  ;;  %v1090_v28 = vld [vmem:[#allocation2 + $0x1da8] sm:$0xff]  ;;  %v4770_v3 = vpack.c.bf16 %v571_v62, %v563_v61  ;;  %v587_v8 = vld [vmem:[#allocation2 + $0xdf0] sm:$0xff]  ;;  %v652_v16 = vld [vmem:[#allocation2 + $0xff8] sm:$0xff] }
 0x220   :  { %4739 = vmatpush1.bf16.msra.mxu1 %v4738_v21  ;;  %v1025_v21 = vld [vmem:[#allocation2 + $0x1ba0] sm:$0xff]  ;;  %v1154_v56 = vld [vmem:[#allocation2 + $0x1fa8] sm:$0xff]  ;;  %v643_v62 = vld [vmem:[#allocation2 + $0xfb0] sm:$0xff] }
 0x221   :  { %4741 = vmatprep.subr.bf16.mxu1 %v4740_v23  ;;  %v523_v23 = vld [vmem:[#allocation2 + $0xbf0] sm:$0xff]  ;;  %v4630_v32 = vpack.c.bf16 %v1033_v48, %v1025_v21  ;;  %v4776_v21 = vpack.c.bf16 %v604_v12, %v596_v11  ;;  %v1153_v61 = vld [vmem:[#allocation2 + $0x1fa0] sm:$0xff]  ;;  %v2355_v11 = vld [vmem:[#allocation6 + $0x20] sm:$0xff] }
 0x222   :  { %4611 = vmatpush1.bf16.msra.mxu0 %v4610_v22  ;;  %v515_v22 = vld [vmem:[#allocation2 + $0xbb0] sm:$0xff]  ;;  %v676_v12 = vld [vmem:[#allocation2 + $0x10b8] sm:$0xff] }
 0x223   :  { %4613 = vmatprep.subr.bf16.mxu0 %v4612_v29  ;;  %v1042_v29 = vld [vmem:[#allocation2 + $0x1c28] sm:$0xff]  ;;  %v4758_v31 = vpack.c.bf16 %v523_v23, %v515_v22  ;;  %v1105_v22 = vld [vmem:[#allocation2 + $0x1e20] sm:$0xff]  ;;  %v595_v23 = vld [vmem:[#allocation2 + $0xe30] sm:$0xff] }
 0x224   :  { %4743 = vmatpush1.bf16.msra.mxu1 %v4742_v35  ;;  %v531_v35 = vld [vmem:[#allocation2 + $0xc30] sm:$0xff] }
 0x225   :  { %4745 = vmatprep.subr.bf16.mxu1 %v4744_v37  ;;  %v4632_v37 = vpack.c.bf16 %v1050_v30, %v1042_v29  ;;  %v620_v29 = vld [vmem:[#allocation2 + $0xef8] sm:$0xff]  ;;  %v1122_v30 = vld [vmem:[#allocation2 + $0x1ea8] sm:$0xff] }
 0x226   :  { %4615 = vmatpush1.bf16.msra.mxu0 %v4614_v36  ;;  %v539_v36 = vld [vmem:[#allocation2 + $0xc70] sm:$0xff]  ;;  %v4780_v34 = vpack.c.bf16 %v620_v29, %v612_v26  ;;  %v2363_v26 = vld [vmem:[#allocation6 + $0x60] sm:$0xff]  ;;  %v692_v29 = vld [vmem:[#allocation2 + $0x1138] sm:$0xff] }
 0x227   :  { %4617 = vmatprep.subr.bf16.mxu0 %v4616_v42  ;;  %v1058_v42 = vld [vmem:[#allocation2 + $0x1ca8] sm:$0xff]  ;;  %v4762_v45 = vpack.c.bf16 %v539_v36, %v531_v35  ;;  %v1121_v35 = vld [vmem:[#allocation2 + $0x1ea0] sm:$0xff]  ;;  %v611_v36 = vld [vmem:[#allocation2 + $0xeb0] sm:$0xff] }
 0x228   :  { %4747 = vmatpush1.bf16.msra.mxu1 %v4746_v51  ;;  %v555_v51 = vld [vmem:[#allocation2 + $0xcf0] sm:$0xff] }
 0x229   :  { %4749 = vmatprep.subr.bf16.mxu1 %v4748_v53  ;;  %v1065_v53 = vld [vmem:[#allocation2 + $0x1ce0] sm:$0xff] }
 0x22a   :  { %4619 = vmatpush1.bf16.msra.mxu0 %v4618_v52  ;;  %v4636_v52 = vpack.c.bf16 %v1066_v44, %v1058_v42  ;;  %v4638_v58 = vpack.c.bf16 %v1065_v53, %v1057_v50  ;;  %v636_v42 = vld [vmem:[#allocation2 + $0xf78] sm:$0xff]  ;;  %v1138_v44 = vld [vmem:[#allocation2 + $0x1f28] sm:$0xff] }
 0x22b   :  { %4621 = vmatprep.subr.bf16.mxu0 %v4620_v57  ;;  %v4766_v57 = vpack.c.bf16 %v555_v51, %v547_v17  ;;  %v4784_v50 = vpack.c.bf16 %v636_v42, %v628_v40  ;;  %v1137_v17 = vld [vmem:[#allocation2 + $0x1f20] sm:$0xff]  ;;  %v627_v51 = vld [vmem:[#allocation2 + $0xf30] sm:$0xff]  ;;  %v2367_v42 = vld [vmem:[#allocation6 + $0x80] sm:$0xff] }
 0x22c   :  { %v1486_v10 = vpop.f32.mrb[0].mxu0  ;;  %4751 = vmatpush1.bf16.msra.mxu1 %v4750_v0  ;;  %v1081_v0 = vld [vmem:[#allocation2 + $0x1d60] sm:$0xff]  ;;  %v699_v40 = vld [vmem:[#allocation2 + $0x1170] sm:$0xff] }
 0x22d   :  { %v6135_v13 = vadd.f32 %v1486_v10, %v1274_v4  ;;  %v1488_v14 = vpop.f32.mrb[1].mxu0  ;;  %4753 = vmatprep.subr.bf16.mxu1 %v4752_v19  ;;  %v588_v19 = vld [vmem:[#allocation2 + $0xdf8] sm:$0xff]  ;;  %v4642_v4 = vpack.c.bf16 %v1081_v0, %v1073_v60  ;;  %v1097_v10 = vld [vmem:[#allocation2 + $0x1de0] sm:$0xff]  ;;  %v4788_v60 = vpack.c.bf16 %v652_v16, %v644_v55  ;;  %v707_v55 = vld [vmem:[#allocation2 + $0x11b0] sm:$0xff] }
 0x22e   :  { %v6137_v18 = vadd.f32 %v1488_v14, %v1276_v9  ;;  %4623 = vmatpush1.bf16.msra.mxu0 %v4622_v1  ;;  %v580_v1 = vld [vmem:[#allocation2 + $0xdb8] sm:$0xff]  ;;  %v4644_v9 = vpack.c.bf16 %v1098_v2, %v1090_v28  ;;  %v1106_v14 = vld [vmem:[#allocation2 + $0x1e28] sm:$0xff]  ;;  %v2352_v2 = vld [vmem:[#allocation6 + $0x8] sm:$0xff] }
 0x22f   :  { %4625 = vmatprep.subr.bf16.mxu0 %v4624_v5  ;;  %v4772_v5 = vpack.c.bf16 %v588_v19, %v580_v1  ;;  %v1161_v1 = vld [vmem:[#allocation2 + $0x1fe0] sm:$0xff]  ;;  %v660_v19 = vld [vmem:[#allocation2 + $0x1038] sm:$0xff]  ;;  %v715_v16 = vld [vmem:[#allocation2 + $0x11f0] sm:$0xff] }
 0x230   :  { %4755 = vmatpush1.bf16.msra.mxu1 %v4754_v15  ;;  %v1114_v15 = vld [vmem:[#allocation2 + $0x1e68] sm:$0xff]  ;;  %v668_v28 = vld [vmem:[#allocation2 + $0x1078] sm:$0xff] }
 0x231   :  { %4757 = vmatprep.subr.bf16.mxu1 %v4756_v20  ;;  %v4646_v20 = vpack.c.bf16 %v1097_v10, %v1089_v6  ;;  %v4648_v48 = vpack.c.bf16 %v1114_v15, %v1106_v14  ;;  %v4792_v6 = vpack.c.bf16 %v668_v28, %v660_v19  ;;  %v2351_v10 = vld [vmem:[#allocation6] sm:$0xff]  ;;  %v684_v14 = vld [vmem:[#allocation2 + $0x10f8] sm:$0xff]  ;;  %v2360_v15 = vld [vmem:[#allocation6 + $0x48] sm:$0xff] }
 0x232   :  { %4627 = vmatpush1.bf16.msra.mxu0 %v4626_v43  ;;  %v4774_v43 = vpack.c.bf16 %v587_v8, %v579_v7  ;;  %v659_v7 = vld [vmem:[#allocation2 + $0x1030] sm:$0xff] }
 0x233   :  { %4629 = vmatprep.subr.bf16.mxu0 %v4628_v24  ;;  %v603_v24 = vld [vmem:[#allocation2 + $0xe70] sm:$0xff] }
 0x234   :  { %4759 = vmatpush1.bf16.msra.mxu1 %v4758_v31  ;;  %v1130_v31 = vld [vmem:[#allocation2 + $0x1ee8] sm:$0xff]  ;;  %v667_v8 = vld [vmem:[#allocation2 + $0x1070] sm:$0xff] }
 0x235   :  { %4761 = vmatprep.subr.bf16.mxu1 %v4760_v33  ;;  %v4650_v33 = vpack.c.bf16 %v1113_v25, %v1105_v22  ;;  %v4652_v38 = vpack.c.bf16 %v1130_v31, %v1122_v30  ;;  %v675_v22 = vld [vmem:[#allocation2 + $0x10b0] sm:$0xff]  ;;  %v700_v30 = vld [vmem:[#allocation2 + $0x1178] sm:$0xff]  ;;  %v2344_v31 = vmax.f32 %v6137_v18, 0.0 }
 0x236   :  { %4631 = vmatpush1.bf16.msra.mxu0 %v4630_v32  ;;  %v4778_v32 = vpack.c.bf16 %v603_v24, %v595_v23  ;;  %v683_v23 = vld [vmem:[#allocation2 + $0x10f0] sm:$0xff]  ;;  %v2359_v24 = vld [vmem:[#allocation6 + $0x40] sm:$0xff]  ;;  %v2377_v18 = vld [vmem:[#allocation6 + $0xd0] sm:$0xff] }
 0x237   :  { %4633 = vmatprep.subr.bf16.mxu0 %v4632_v37  ;;  %v619_v37 = vld [vmem:[#allocation2 + $0xef0] sm:$0xff] }
 0x238   :  { %4763 = vmatpush1.bf16.msra.mxu1 %v4762_v45  ;;  %v1146_v45 = vld [vmem:[#allocation2 + $0x1f68] sm:$0xff]  ;;  %v723_v19 = vld [vmem:[#allocation2 + $0x1230] sm:$0xff] }
 0x239   :  { %4765 = vmatprep.subr.bf16.mxu1 %v4764_v47  ;;  %v4654_v47 = vpack.c.bf16 %v1129_v39, %v1121_v35  ;;  %v4656_v53 = vpack.c.bf16 %v1146_v45, %v1138_v44  ;;  %v5675_v35 = vld [vmem:[%s6238_s0 + $0x30] sm:$0xff]  ;;  %v2371_v45 = vld [vmem:[#allocation6 + $0xa0] sm:$0xff] }
 0x23a   :  { %4635 = vmatpush1.bf16.msra.mxu0 %v4634_v46  ;;  %v4782_v46 = vpack.c.bf16 %v619_v37, %v611_v36  ;;  %v4798_v36 = vpack.c.bf16 %v683_v23, %v675_v22  ;;  %v4926_v37 = vpack.c.bf16 %v2363_v26, %v2359_v24  ;;  %v691_v39 = vld [vmem:[#allocation2 + $0x1130] sm:$0xff]  ;;  %v764_v22 = vld [vmem:[#allocation2 + $0x1378] sm:$0xff] }
 0x23b   :  { %4637 = vmatprep.subr.bf16.mxu0 %v4636_v52  ;;  %v635_v52 = vld [vmem:[#allocation2 + $0xf70] sm:$0xff] }
 0x23c   :  { %4767 = vmatpush1.bf16.msra.mxu1 %v4766_v57  ;;  %v1162_v57 = vld [vmem:[#allocation2 + $0x1fe8] sm:$0xff]  ;;  %v731_v28 = vld [vmem:[#allocation2 + $0x1270] sm:$0xff] }
 0x23d   :  { %4769 = vmatprep.subr.bf16.mxu1 %v4768_v59  ;;  %v4658_v59 = vpack.c.bf16 %v1145_v54, %v1137_v17  ;;  %v4660_v0 = vpack.c.bf16 %v1162_v57, %v1154_v56  ;;  %v2380_v17 = vld [vmem:[#allocation6 + $0xe8] sm:$0xff]  ;;  %v2375_v56 = vld [vmem:[#allocation6 + $0xc0] sm:$0xff] }
 0x23e   :  { %4639 = vmatpush1.bf16.msra.mxu0 %v4638_v58  ;;  %v4786_v58 = vpack.c.bf16 %v635_v52, %v627_v51  ;;  %v5676_v51 = vld [vmem:[%s6238_s0 + $0x28] sm:$0xff]  ;;  %v4802_v52 = vpack.c.bf16 %v699_v40, %v691_v39  ;;  %v2400_v23 = vld [vmem:[#allocation6 + $0x188] sm:$0xff] }
 0x23f   :  { %4641 = vmatprep.subr.bf16.mxu0 %v4640_v63  ;;  %v651_v63 = vld [vmem:[#allocation2 + $0xff0] sm:$0xff] }
 0x240   :  { %4771 = vmatpush1.bf16.msra.mxu1 %v4770_v3  ;;  %v2356_v3 = vld [vmem:[#allocation6 + $0x28] sm:$0xff] }
 0x241   :  { %4773 = vmatprep.subr.bf16.mxu1 %v4772_v5  ;;  %v4662_v5 = vpack.c.bf16 %v1161_v1, %v1153_v61  ;;  %v2384_v61 = vld [vmem:[#allocation6 + $0x108] sm:$0xff] }
 0x242   :  { %4643 = vmatpush1.bf16.msra.mxu0 %v4642_v4  ;;  %v4790_v4 = vpack.c.bf16 %v651_v63, %v643_v62  ;;  %v2388_v62 = vld [vmem:[#allocation6 + $0x128] sm:$0xff]  ;;  %v4806_v63 = vpack.c.bf16 %v715_v16, %v707_v55 }
 0x243   :  { %4645 = vmatprep.subr.bf16.mxu0 %v4644_v9  ;;  %v4920_v9 = vpack.c.bf16 %v2356_v3, %v2352_v2  ;;  %v2383_v2 = vld [vmem:[#allocation6 + $0x100] sm:$0xff]  ;;  %v4936_v3 = vpack.c.bf16 %v2388_v62, %v2384_v61  ;;  %v2404_v24 = vld [vmem:[#allocation6 + $0x1a8] sm:$0xff]  ;;  %v804_v61 = vld [vmem:[#allocation2 + $0x14b8] sm:$0xff] }
 0x244   :  { %4775 = vmatpush1.bf16.msra.mxu1 %v4774_v43  ;;  %v2364_v43 = vld [vmem:[#allocation6 + $0x68] sm:$0xff]  ;;  %v812_v62 = vld [vmem:[#allocation2 + $0x14f8] sm:$0xff] }
 0x245   :  { %4777 = vmatprep.subr.bf16.mxu1 %v4776_v21  ;;  %v4922_v21 = vpack.c.bf16 %v2355_v11, %v2351_v10  ;;  %v4924_v25 = vpack.c.bf16 %v2364_v43, %v2360_v15  ;;  %v2391_v15 = vld [vmem:[#allocation6 + $0x140] sm:$0xff] }
 0x246   :  { %4647 = vmatpush1.bf16.msra.mxu0 %v4646_v20  ;;  %v4794_v20 = vpack.c.bf16 %v667_v8, %v659_v7  ;;  %v2392_v7 = vld [vmem:[#allocation6 + $0x148] sm:$0xff] }
 0x247   :  { %4649 = vmatprep.subr.bf16.mxu0 %v4648_v48  ;;  %v4796_v48 = vpack.c.bf16 %v684_v14, %v676_v12  ;;  %v2396_v8 = vld [vmem:[#allocation6 + $0x168] sm:$0xff] }
 0x248   :  { %4779 = vmatpush1.bf16.msra.mxu1 %v4778_v32  ;;  %v5674_v32 = vld [vmem:[%s6238_s0 + $0x10] sm:$0xff]  ;;  %v4940_v43 = vpack.c.bf16 %v2396_v8, %v2392_v7  ;;  %v820_v7 = vld [vmem:[#allocation2 + $0x1538] sm:$0xff] }
 0x249   :  { %4781 = vmatprep.subr.bf16.mxu1 %v4780_v34  ;;  %v2372_v34 = vld [vmem:[#allocation6 + $0xa8] sm:$0xff]  ;;  %v828_v8 = vld [vmem:[#allocation2 + $0x1578] sm:$0xff] }
 0x24a   :  { %4651 = vmatpush1.bf16.msra.mxu0 %v4650_v33  ;;  %v2368_v33 = vld [vmem:[#allocation6 + $0x88] sm:$0xff] }
 0x24b   :  { %4653 = vmatprep.subr.bf16.mxu0 %v4652_v38  ;;  %v4800_v38 = vpack.c.bf16 %v700_v30, %v692_v29  ;;  %v4928_v44 = vpack.c.bf16 %v2372_v34, %v2368_v33  ;;  %v739_v12 = vld [vmem:[#allocation2 + $0x12b0] sm:$0xff]  ;;  %v4944_v33 = vpack.c.bf16 %v2404_v24, %v2400_v23  ;;  %v2403_v34 = vld [vmem:[#allocation6 + $0x1a0] sm:$0xff]  ;;  %v836_v23 = vld [vmem:[#allocation2 + $0x15b8] sm:$0xff] }
 0x24c   :  { %4783 = vmatpush1.bf16.msra.mxu1 %v4782_v46  ;;  %v708_v46 = vld [vmem:[#allocation2 + $0x11b8] sm:$0xff]  ;;  %v747_v14 = vld [vmem:[#allocation2 + $0x12f0] sm:$0xff] }
 0x24d   :  { %4785 = vmatprep.subr.bf16.mxu1 %v4784_v50  ;;  %v2376_v50 = vld [vmem:[#allocation6 + $0xc8] sm:$0xff]  ;;  %v844_v24 = vld [vmem:[#allocation2 + $0x15f8] sm:$0xff] }
 0x24e   :  { %4655 = vmatpush1.bf16.msra.mxu0 %v4654_v47  ;;  %v716_v47 = vld [vmem:[#allocation2 + $0x11f8] sm:$0xff]  ;;  %v4932_v57 = vpack.c.bf16 %v2380_v17, %v2376_v50  ;;  %v755_v29 = vld [vmem:[#allocation2 + $0x1330] sm:$0xff]  ;;  %v2411_v50 = vld [vmem:[#allocation6 + $0x1e0] sm:$0xff] }
 0x24f   :  { %4657 = vmatprep.subr.bf16.mxu0 %v4656_v53  ;;  %v4930_v53 = vpack.c.bf16 %v2371_v45, %v2367_v42  ;;  %v4804_v54 = vpack.c.bf16 %v716_v47, %v708_v46  ;;  %v763_v30 = vld [vmem:[#allocation2 + $0x1370] sm:$0xff]  ;;  %v2407_v46 = vld [vmem:[#allocation6 + $0x1c0] sm:$0xff]  ;;  %v788_v17 = vld [vmem:[#allocation2 + $0x1438] sm:$0xff] }
 0x250   :  { %4787 = vmatpush1.bf16.msra.mxu1 %v4786_v58  ;;  %v2379_v58 = vld [vmem:[#allocation6 + $0xe0] sm:$0xff]  ;;  %v4818_v39 = vpack.c.bf16 %v763_v30, %v755_v29  ;;  %v779_v45 = vld [vmem:[#allocation2 + $0x13f0] sm:$0xff]  ;;  %v4950_v55 = vpack.c.bf16 %v2411_v50, %v2407_v46  ;;  %v4836_v30 = vpack.c.bf16 %v844_v24, %v836_v23 }
 0x251   :  { %4789 = vmatprep.subr.bf16.mxu1 %v4788_v60  ;;  %v732_v60 = vld [vmem:[#allocation2 + $0x1278] sm:$0xff]  ;;  %v851_v46 = vld [vmem:[#allocation2 + $0x1630] sm:$0xff]  ;;  %v2447_v50 = vld [vmem:[#allocation6 + $0x300] sm:$0xff] }
 0x252   :  { %4659 = vmatpush1.bf16.msra.mxu0 %v4658_v59  ;;  %v724_v59 = vld [vmem:[#allocation2 + $0x1238] sm:$0xff]  ;;  %v2475_v24 = vld [vmem:[#allocation6 + $0x3e0] sm:$0xff] }
 0x253   :  { %4661 = vmatprep.subr.bf16.mxu0 %v4660_v0  ;;  %v4934_v0 = vpack.c.bf16 %v2379_v58, %v2375_v56  ;;  %v4808_v1 = vpack.c.bf16 %v732_v60, %v724_v59  ;;  %v787_v56 = vld [vmem:[#allocation2 + $0x1430] sm:$0xff]  ;;  %v2415_v58 = vld [vmem:[#allocation6 + $0x200] sm:$0xff] }
 0x254   :  { %4791 = vmatpush1.bf16.msra.mxu1 %v4790_v4  ;;  %v2387_v4 = vld [vmem:[#allocation6 + $0x120] sm:$0xff] }
 0x255   :  { %4793 = vmatprep.subr.bf16.mxu1 %v4792_v6  ;;  %v748_v6 = vld [vmem:[#allocation2 + $0x12f8] sm:$0xff]  ;;  %v4938_v10 = vpack.c.bf16 %v2387_v4, %v2383_v2  ;;  %v2419_v60 = vld [vmem:[#allocation6 + $0x220] sm:$0xff]  ;;  %v803_v2 = vld [vmem:[#allocation2 + $0x14b0] sm:$0xff] }
 0x256   :  { %4663 = vmatpush1.bf16.msra.mxu0 %v4662_v5  ;;  %v740_v5 = vld [vmem:[#allocation2 + $0x12b8] sm:$0xff]  ;;  %v2423_v4 = vld [vmem:[#allocation6 + $0x240] sm:$0xff] }
 0x257   :  { %4921 = vmatprep.subr.bf16.mxu0 %v4920_v9  ;;  %2195 = vmatmul.mubr.f32.vlgmr.msra.gmra.mrb[4].mxu1 %v5674_v32  ;;  %v4810_v9 = vpack.c.bf16 %v731_v28, %v723_v19  ;;  %v4812_v11 = vpack.c.bf16 %v748_v6, %v740_v5  ;;  %v2399_v32 = vld [vmem:[#allocation6 + $0x180] sm:$0xff]  ;;  %v4954_v19 = vpack.c.bf16 %v2419_v60, %v2415_v58  ;;  %v867_v58 = vld [vmem:[#allocation2 + $0x16b0] sm:$0xff] }
 0x258   :  { %4795 = vmatpush1.bf16.msra.mxu1 %v4794_v20  ;;  %2265 = vmatprep.mubr.f32.mxu1 %v5676_v51  ;;  %v2395_v20 = vld [vmem:[#allocation6 + $0x160] sm:$0xff]  ;;  %v4946_v40 = vpack.c.bf16 %v2403_v34, %v2399_v32  ;;  %v796_v51 = vld [vmem:[#allocation2 + $0x1478] sm:$0xff]  ;;  %v4828_v28 = vpack.c.bf16 %v812_v62, %v804_v61  ;;  %v835_v32 = vld [vmem:[#allocation2 + $0x15b0] sm:$0xff] }
 0x259   :  { %2053 = vmatmul.mubr.f32.vlgmr.msra.gmra.mrb[2].mxu0 %v5675_v35  ;;  %4797 = vmatprep.subr.bf16.mxu1 %v4796_v48  ;;  %v4814_v48 = vpack.c.bf16 %v747_v14, %v739_v12  ;;  %v772_v35 = vld [vmem:[#allocation2 + $0x13b8] sm:$0xff]  ;;  %v4824_v16 = vpack.c.bf16 %v796_v51, %v788_v17  ;;  %v2427_v6 = vld [vmem:[#allocation6 + $0x260] sm:$0xff]  ;;  %v4832_v14 = vpack.c.bf16 %v828_v8, %v820_v7 }
 0x25a   :  { %4923 = vmatpush1.bf16.msra.mxu0 %v4922_v21  ;;  %2949 = vmatprep.mubr.f32.mxu0 %v2344_v31  ;;  %v756_v21 = vld [vmem:[#allocation2 + $0x1338] sm:$0xff]  ;;  %v4958_v12 = vpack.c.bf16 %v2427_v6, %v2423_v4  ;;  %v2439_v34 = vld [vmem:[#allocation6 + $0x2c0] sm:$0xff]  ;;  %v883_v4 = vld [vmem:[#allocation2 + $0x1730] sm:$0xff] }
 0x25b   :  { %4925 = vmatprep.subr.bf16.mxu0 %v4924_v25  ;;  %v4942_v25 = vpack.c.bf16 %v2395_v20, %v2391_v15  ;;  %v4816_v26 = vpack.c.bf16 %v764_v22, %v756_v21  ;;  %v819_v15 = vld [vmem:[#allocation2 + $0x1530] sm:$0xff]  ;;  %v2431_v20 = vld [vmem:[#allocation6 + $0x280] sm:$0xff] }
 0x25c   :  { %4799 = vmatpush1.bf16.msra.mxu1 %v4798_v36  ;;  %v780_v36 = vld [vmem:[#allocation2 + $0x13f8] sm:$0xff]  ;;  %v2435_v22 = vld [vmem:[#allocation6 + $0x2a0] sm:$0xff] }
 0x25d   :  { %4801 = vmatprep.subr.bf16.mxu1 %v4800_v38  ;;  %v2412_v38 = vld [vmem:[#allocation6 + $0x1e8] sm:$0xff]  ;;  %v4820_v42 = vpack.c.bf16 %v780_v36, %v772_v35  ;;  %v4962_v29 = vpack.c.bf16 %v2435_v22, %v2431_v20  ;;  %v2443_v36 = vld [vmem:[#allocation6 + $0x2e0] sm:$0xff] }
 0x25e   :  { %4927 = vmatpush1.bf16.msra.mxu0 %v4926_v37  ;;  %v2408_v37 = vld [vmem:[#allocation6 + $0x1c8] sm:$0xff]  ;;  %v2451_v51 = vld [vmem:[#allocation6 + $0x320] sm:$0xff] }
 0x25f   :  { %4929 = vmatprep.subr.bf16.mxu0 %v4928_v44  ;;  %v771_v44 = vld [vmem:[#allocation2 + $0x13b0] sm:$0xff]  ;;  %v4948_v47 = vpack.c.bf16 %v2412_v38, %v2408_v37  ;;  %v852_v37 = vld [vmem:[#allocation2 + $0x1638] sm:$0xff]  ;;  %v2455_v60 = vld [vmem:[#allocation6 + $0x340] sm:$0xff] }
 0x260   :  { %4803 = vmatpush1.bf16.msra.mxu1 %v4802_v52  ;;  %v2416_v52 = vld [vmem:[#allocation6 + $0x208] sm:$0xff]  ;;  %v860_v38 = vld [vmem:[#allocation2 + $0x1678] sm:$0xff]  ;;  %v2459_v62 = vld [vmem:[#allocation6 + $0x360] sm:$0xff] }
 0x261   :  { %4805 = vmatprep.subr.bf16.mxu1 %v4804_v54  ;;  %v4822_v54 = vpack.c.bf16 %v779_v45, %v771_v44  ;;  %v4966_v44 = vpack.c.bf16 %v2443_v36, %v2439_v34  ;;  %v4840_v45 = vpack.c.bf16 %v860_v38, %v852_v37  ;;  %v2463_v6 = vld [vmem:[#allocation6 + $0x380] sm:$0xff]  ;;  %v899_v20 = vld [vmem:[#allocation2 + $0x17b0] sm:$0xff] }
 0x262   :  { %4931 = vmatpush1.bf16.msra.mxu0 %v4930_v53  ;;  %v2420_v53 = vld [vmem:[#allocation6 + $0x228] sm:$0xff]  ;;  %v2467_v8 = vld [vmem:[#allocation6 + $0x3a0] sm:$0xff] }
 0x263   :  { %4933 = vmatprep.subr.bf16.mxu0 %v4932_v57  ;;  %v795_v57 = vld [vmem:[#allocation2 + $0x1470] sm:$0xff]  ;;  %v4952_v59 = vpack.c.bf16 %v2420_v53, %v2416_v52  ;;  %v868_v52 = vld [vmem:[#allocation2 + $0x16b8] sm:$0xff]  ;;  %v2471_v22 = vld [vmem:[#allocation6 + $0x3c0] sm:$0xff] }
 0x264   :  { %4807 = vmatpush1.bf16.msra.mxu1 %v4806_v63  ;;  %v2424_v63 = vld [vmem:[#allocation6 + $0x248] sm:$0xff]  ;;  %v876_v53 = vld [vmem:[#allocation2 + $0x16f8] sm:$0xff]  ;;  %v2479_v36 = vld [vmem:[#allocation6 + $0x400] sm:$0xff] }
 0x265   :  { %4809 = vmatprep.subr.bf16.mxu1 %v4808_v1  ;;  %v4826_v1 = vpack.c.bf16 %v795_v57, %v787_v56  ;;  %v4970_v56 = vpack.c.bf16 %v2451_v51, %v2447_v50  ;;  %v4844_v57 = vpack.c.bf16 %v876_v53, %v868_v52  ;;  %v915_v34 = vld [vmem:[#allocation2 + $0x1830] sm:$0xff]  ;;  %v2483_v38 = vld [vmem:[#allocation6 + $0x420] sm:$0xff]  ;;  %v2343_v52 = vmax.f32 %v6135_v13, 0.0  ;;  %v2514_v13 = vld [vmem:[#allocation6 + $0x518] sm:$0xff] }
 0x266   :  { %4935 = vmatpush1.bf16.msra.mxu0 %v4934_v0  ;;  %v2428_v0 = vld [vmem:[#allocation6 + $0x268] sm:$0xff]  ;;  %v2487_v51 = vld [vmem:[#allocation6 + $0x440] sm:$0xff] }
 0x267   :  { %4937 = vmatprep.subr.bf16.mxu0 %v4936_v3  ;;  %v811_v3 = vld [vmem:[#allocation2 + $0x14f0] sm:$0xff]  ;;  %v4956_v5 = vpack.c.bf16 %v2428_v0, %v2424_v63  ;;  %v884_v63 = vld [vmem:[#allocation2 + $0x1738] sm:$0xff] }
 0x268   :  { %4811 = vmatpush1.bf16.msra.mxu1 %v4810_v9  ;;  %v2432_v9 = vld [vmem:[#allocation6 + $0x288] sm:$0xff]  ;;  %v892_v0 = vld [vmem:[#allocation2 + $0x1778] sm:$0xff] }
 0x269   :  { %4813 = vmatprep.subr.bf16.mxu1 %v4812_v11  ;;  %v4830_v11 = vpack.c.bf16 %v811_v3, %v803_v2  ;;  %v4974_v2 = vpack.c.bf16 %v2459_v62, %v2455_v60  ;;  %v4848_v3 = vpack.c.bf16 %v892_v0, %v884_v63  ;;  %v931_v50 = vld [vmem:[#allocation2 + $0x18b0] sm:$0xff]  ;;  %v2495_v0 = vld [vmem:[#allocation6 + $0x480] sm:$0xff] }
 0x26a   :  { %4939 = vmatpush1.bf16.msra.mxu0 %v4938_v10  ;;  %v2436_v10 = vld [vmem:[#allocation6 + $0x2a8] sm:$0xff] }
 0x26b   :  { %4941 = vmatprep.subr.bf16.mxu0 %v4940_v43  ;;  %v827_v43 = vld [vmem:[#allocation2 + $0x1570] sm:$0xff]  ;;  %v4960_v21 = vpack.c.bf16 %v2436_v10, %v2432_v9  ;;  %v900_v9 = vld [vmem:[#allocation2 + $0x17b8] sm:$0xff] }
 0x26c   :  { %4815 = vmatpush1.bf16.msra.mxu1 %v4814_v48  ;;  %v2440_v48 = vld [vmem:[#allocation6 + $0x2c8] sm:$0xff]  ;;  %v908_v10 = vld [vmem:[#allocation2 + $0x17f8] sm:$0xff] }
 0x26d   :  { %4817 = vmatprep.subr.bf16.mxu1 %v4816_v26  ;;  %v4834_v26 = vpack.c.bf16 %v827_v43, %v819_v15  ;;  %v4978_v15 = vpack.c.bf16 %v2467_v8, %v2463_v6  ;;  %v4852_v43 = vpack.c.bf16 %v908_v10, %v900_v9  ;;  %v947_v62 = vld [vmem:[#allocation2 + $0x1930] sm:$0xff] }
 0x26e   :  { %4943 = vmatpush1.bf16.msra.mxu0 %v4942_v25  ;;  %v2444_v25 = vld [vmem:[#allocation6 + $0x2e8] sm:$0xff] }
 0x26f   :  { %4945 = vmatprep.subr.bf16.mxu0 %v4944_v33  ;;  %v843_v33 = vld [vmem:[#allocation2 + $0x15f0] sm:$0xff]  ;;  %v4964_v35 = vpack.c.bf16 %v2444_v25, %v2440_v48  ;;  %v916_v48 = vld [vmem:[#allocation2 + $0x1838] sm:$0xff] }
 0x270   :  { %4819 = vmatpush1.bf16.msra.mxu1 %v4818_v39  ;;  %v2448_v39 = vld [vmem:[#allocation6 + $0x308] sm:$0xff]  ;;  %v924_v25 = vld [vmem:[#allocation2 + $0x1878] sm:$0xff] }
 0x271   :  { %4821 = vmatprep.subr.bf16.mxu1 %v4820_v42  ;;  %v4838_v42 = vpack.c.bf16 %v843_v33, %v835_v32  ;;  %v4982_v32 = vpack.c.bf16 %v2475_v24, %v2471_v22  ;;  %v4856_v33 = vpack.c.bf16 %v924_v25, %v916_v48  ;;  %v955_v63 = vld [vmem:[#allocation2 + $0x1970] sm:$0xff] }
 0x272   :  { %4947 = vmatpush1.bf16.msra.mxu0 %v4946_v40  ;;  %v2452_v40 = vld [vmem:[#allocation6 + $0x328] sm:$0xff]  ;;  %v4866_v6 = vpack.c.bf16 %v955_v63, %v947_v62  ;;  %v2531_v62 = vld [vmem:[#allocation6 + $0x5a0] sm:$0xff]  ;;  %v1028_v63 = vld [vmem:[#allocation2 + $0x1bb8] sm:$0xff] }
 0x273   :  { %4949 = vmatprep.subr.bf16.mxu0 %v4948_v47  ;;  %v859_v47 = vld [vmem:[#allocation2 + $0x1670] sm:$0xff]  ;;  %v4968_v17 = vpack.c.bf16 %v2452_v40, %v2448_v39  ;;  %v932_v39 = vld [vmem:[#allocation2 + $0x18b8] sm:$0xff] }
 0x274   :  { %4823 = vmatpush1.bf16.msra.mxu1 %v4822_v54  ;;  %v2456_v54 = vld [vmem:[#allocation6 + $0x348] sm:$0xff]  ;;  %v940_v40 = vld [vmem:[#allocation2 + $0x18f8] sm:$0xff] }
 0x275   :  { %4825 = vmatprep.subr.bf16.mxu1 %v4824_v16  ;;  %v4842_v16 = vpack.c.bf16 %v859_v47, %v851_v46  ;;  %v4986_v46 = vpack.c.bf16 %v2483_v38, %v2479_v36  ;;  %v4860_v47 = vpack.c.bf16 %v940_v40, %v932_v39  ;;  %v963_v9 = vld [vmem:[#allocation2 + $0x19b0] sm:$0xff] }
 0x276   :  { %4951 = vmatpush1.bf16.msra.mxu0 %v4950_v55  ;;  %v2460_v55 = vld [vmem:[#allocation6 + $0x368] sm:$0xff] }
 0x277   :  { %4953 = vmatprep.subr.bf16.mxu0 %v4952_v59  ;;  %v875_v59 = vld [vmem:[#allocation2 + $0x16f0] sm:$0xff]  ;;  %v4972_v61 = vpack.c.bf16 %v2460_v55, %v2456_v54  ;;  %v2491_v54 = vld [vmem:[#allocation6 + $0x460] sm:$0xff]  ;;  %v948_v55 = vld [vmem:[#allocation2 + $0x1938] sm:$0xff] }
 0x278   :  { %4827 = vmatpush1.bf16.msra.mxu1 %v4826_v1  ;;  %v2464_v1 = vld [vmem:[#allocation6 + $0x388] sm:$0xff]  ;;  %v4990_v60 = vpack.c.bf16 %v2491_v54, %v2487_v51 }
 0x279   :  { %4829 = vmatprep.subr.bf16.mxu1 %v4828_v28  ;;  %v4846_v28 = vpack.c.bf16 %v875_v59, %v867_v58  ;;  %v2500_v58 = vld [vmem:[#allocation6 + $0x4a8] sm:$0xff] }
 0x27a   :  { %4955 = vmatpush1.bf16.msra.mxu0 %v4954_v19  ;;  %v2468_v19 = vld [vmem:[#allocation6 + $0x3a8] sm:$0xff] }
 0x27b   :  { %4957 = vmatprep.subr.bf16.mxu0 %v4956_v5  ;;  %v891_v5 = vld [vmem:[#allocation2 + $0x1770] sm:$0xff]  ;;  %v4976_v7 = vpack.c.bf16 %v2468_v19, %v2464_v1  ;;  %v2499_v19 = vld [vmem:[#allocation6 + $0x4a0] sm:$0xff] }
 0x27c   :  { %4831 = vmatpush1.bf16.msra.mxu1 %v4830_v11  ;;  %v2472_v11 = vld [vmem:[#allocation6 + $0x3c8] sm:$0xff] }
 0x27d   :  { %4833 = vmatprep.subr.bf16.mxu1 %v4832_v14  ;;  %v4850_v14 = vpack.c.bf16 %v891_v5, %v883_v4  ;;  %v2504_v4 = vld [vmem:[#allocation6 + $0x4c8] sm:$0xff] }
 0x27e   :  { %4959 = vmatpush1.bf16.msra.mxu0 %v4958_v12  ;;  %v2476_v12 = vld [vmem:[#allocation6 + $0x3e8] sm:$0xff] }
 0x27f   :  { %4961 = vmatprep.subr.bf16.mxu0 %v4960_v21  ;;  %v907_v21 = vld [vmem:[#allocation2 + $0x17f0] sm:$0xff]  ;;  %v4980_v23 = vpack.c.bf16 %v2476_v12, %v2472_v11  ;;  %v2503_v11 = vld [vmem:[#allocation6 + $0x4c0] sm:$0xff] }
 0x280   :  { %4835 = vmatpush1.bf16.msra.mxu1 %v4834_v26  ;;  %v2480_v26 = vld [vmem:[#allocation6 + $0x408] sm:$0xff] }
 0x281   :  { %4837 = vmatprep.subr.bf16.mxu1 %v4836_v30  ;;  %v4854_v30 = vpack.c.bf16 %v907_v21, %v899_v20  ;;  %v2508_v5 = vld [vmem:[#allocation6 + $0x4e8] sm:$0xff] }
 0x282   :  { %4963 = vmatpush1.bf16.msra.mxu0 %v4962_v29  ;;  %v2484_v29 = vld [vmem:[#allocation6 + $0x428] sm:$0xff]  ;;  %v4996_v12 = vpack.c.bf16 %v2508_v5, %v2504_v4 }
 0x283   :  { %4965 = vmatprep.subr.bf16.mxu0 %v4964_v35  ;;  %v923_v35 = vld [vmem:[#allocation2 + $0x1870] sm:$0xff]  ;;  %v4984_v37 = vpack.c.bf16 %v2484_v29, %v2480_v26  ;;  %v2511_v26 = vld [vmem:[#allocation6 + $0x500] sm:$0xff] }
 0x284   :  { %4839 = vmatpush1.bf16.msra.mxu1 %v4838_v42  ;;  %v2488_v42 = vld [vmem:[#allocation6 + $0x448] sm:$0xff] }
 0x285   :  { %4841 = vmatprep.subr.bf16.mxu1 %v4840_v45  ;;  %v4858_v45 = vpack.c.bf16 %v923_v35, %v915_v34  ;;  %v971_v10 = vld [vmem:[#allocation2 + $0x19f0] sm:$0xff] }
 0x286   :  { %4967 = vmatpush1.bf16.msra.mxu0 %v4966_v44  ;;  %v2492_v44 = vld [vmem:[#allocation6 + $0x468] sm:$0xff]  ;;  %v4870_v22 = vpack.c.bf16 %v971_v10, %v963_v9 }
 0x287   :  { %4969 = vmatprep.subr.bf16.mxu0 %v4968_v17  ;;  %v939_v17 = vld [vmem:[#allocation2 + $0x18f0] sm:$0xff]  ;;  %v4988_v53 = vpack.c.bf16 %v2492_v44, %v2488_v42  ;;  %v2519_v44 = vld [vmem:[#allocation6 + $0x540] sm:$0xff] }
 0x288   :  { %4843 = vmatpush1.bf16.msra.mxu1 %v4842_v16  ;;  %v956_v16 = vld [vmem:[#allocation2 + $0x1978] sm:$0xff]  ;;  %v4862_v59 = vpack.c.bf16 %v939_v17, %v931_v50  ;;  %v2512_v20 = vld [vmem:[#allocation6 + $0x508] sm:$0xff] }
 0x289   :  { %4845 = vmatprep.subr.bf16.mxu1 %v4844_v57  ;;  %v2496_v57 = vld [vmem:[#allocation6 + $0x488] sm:$0xff]  ;;  %v1020_v50 = vld [vmem:[#allocation2 + $0x1b78] sm:$0xff] }
 0x28a   :  { %4971 = vmatpush1.bf16.msra.mxu0 %v4970_v56  ;;  %v5677_v56 = vld [vmem:[%s6238_s0 + $0x20] sm:$0xff]  ;;  %v4992_v1 = vpack.c.bf16 %v2500_v58, %v2496_v57  ;;  %v2516_v21 = vld [vmem:[#allocation6 + $0x528] sm:$0xff] }
 0x28b   :  { %4973 = vmatprep.subr.bf16.mxu0 %v4972_v61  ;;  %v4864_v61 = vpack.c.bf16 %v956_v16, %v948_v55  ;;  %v979_v48 = vld [vmem:[#allocation2 + $0x1a30] sm:$0xff]  ;;  %v5000_v29 = vpack.c.bf16 %v2516_v21, %v2512_v20 }
 0x28c   :  { %4847 = vmatpush1.bf16.msra.mxu1 %v4846_v28  ;;  %v964_v28 = vld [vmem:[#allocation2 + $0x19b8] sm:$0xff]  ;;  %v987_v25 = vld [vmem:[#allocation2 + $0x1a70] sm:$0xff] }
 0x28d   :  { %4849 = vmatprep.subr.bf16.mxu1 %v4848_v3  ;;  %v5678_v3 = vld [vmem:[%s6238_s0 + $0x38] sm:$0xff]  ;;  %v2520_v34 = vld [vmem:[#allocation6 + $0x548] sm:$0xff]  ;;  %v4874_v36 = vpack.c.bf16 %v987_v25, %v979_v48  ;;  %v2543_v48 = vld [vmem:[#allocation6 + $0x600] sm:$0xff] }
 0x28e   :  { %4975 = vmatpush1.bf16.msra.mxu0 %v4974_v2  ;;  %v972_v2 = vld [vmem:[#allocation2 + $0x19f8] sm:$0xff]  ;;  %v2524_v35 = vld [vmem:[#allocation6 + $0x568] sm:$0xff] }
 0x28f   :  { %4977 = vmatprep.subr.bf16.mxu0 %v4976_v7  ;;  %v4994_v7 = vpack.c.bf16 %v2499_v19, %v2495_v0  ;;  %v4868_v8 = vpack.c.bf16 %v972_v2, %v964_v28  ;;  %v995_v40 = vld [vmem:[#allocation2 + $0x1ab0] sm:$0xff]  ;;  %v1036_v0 = vld [vmem:[#allocation2 + $0x1bf8] sm:$0xff] }
 0x290   :  { %4851 = vmatpush1.bf16.msra.mxu1 %v4850_v14  ;;  %v2507_v14 = vld [vmem:[#allocation6 + $0x4e0] sm:$0xff]  ;;  %v1003_v42 = vld [vmem:[#allocation2 + $0x1af0] sm:$0xff]  ;;  %v4884_v5 = vpack.c.bf16 %v1036_v0, %v1028_v63 }
 0x291   :  { %4853 = vmatprep.subr.bf16.mxu1 %v4852_v43  ;;  %v988_v43 = vld [vmem:[#allocation2 + $0x1a78] sm:$0xff]  ;;  %v2528_v17 = vld [vmem:[#allocation6 + $0x588] sm:$0xff]  ;;  %v4878_v55 = vpack.c.bf16 %v1003_v42, %v995_v40  ;;  %v2551_v40 = vld [vmem:[#allocation6 + $0x640] sm:$0xff] }
 0x292   :  { %4979 = vmatpush1.bf16.msra.mxu0 %v4978_v15  ;;  %v980_v15 = vld [vmem:[#allocation2 + $0x1a38] sm:$0xff]  ;;  %v2532_v51 = vld [vmem:[#allocation6 + $0x5a8] sm:$0xff] }
 0x293   :  { %4981 = vmatprep.subr.bf16.mxu0 %v4980_v23  ;;  %v4998_v23 = vpack.c.bf16 %v2507_v14, %v2503_v11  ;;  %v4872_v24 = vpack.c.bf16 %v988_v43, %v980_v15  ;;  %v1011_v57 = vld [vmem:[#allocation2 + $0x1b30] sm:$0xff]  ;;  %v2539_v11 = vld [vmem:[#allocation6 + $0x5e0] sm:$0xff]  ;;  %v1052_v14 = vld [vmem:[#allocation2 + $0x1c78] sm:$0xff] }
 0x294   :  { %4855 = vmatpush1.bf16.msra.mxu1 %v4854_v30  ;;  %v2515_v30 = vld [vmem:[#allocation6 + $0x520] sm:$0xff]  ;;  %v1019_v58 = vld [vmem:[#allocation2 + $0x1b70] sm:$0xff] }
 0x295   :  { %4857 = vmatprep.subr.bf16.mxu1 %v4856_v33  ;;  %v1004_v33 = vld [vmem:[#allocation2 + $0x1af8] sm:$0xff]  ;;  %v5002_v38 = vpack.c.bf16 %v2515_v30, %v2511_v26  ;;  %v2536_v19 = vld [vmem:[#allocation6 + $0x5c8] sm:$0xff]  ;;  %v2547_v26 = vld [vmem:[#allocation6 + $0x620] sm:$0xff] }
 0x296   :  { %4983 = vmatpush1.bf16.msra.mxu0 %v4982_v32  ;;  %v996_v32 = vld [vmem:[#allocation2 + $0x1ab8] sm:$0xff]  ;;  %v2540_v28 = vld [vmem:[#allocation6 + $0x5e8] sm:$0xff] }
 0x297   :  { %4985 = vmatprep.subr.bf16.mxu0 %v4984_v37  ;;  %2266 = vmatmul.mubr.f32.vlgmr.msra.gmra.mrb[4].mxu1 %v5677_v56  ;;  %v1181_v37 = vsub.s32 3, %v6123_v27  ;;  %v4876_v39 = vpack.c.bf16 %v1004_v33, %v996_v32  ;;  %v5012_v10 = vpack.c.bf16 %v2540_v28, %v2536_v19  ;;  %v2544_v15 = vld [vmem:[#allocation6 + $0x608] sm:$0xff]  ;;  %v1068_v30 = vld [vmem:[#allocation2 + $0x1cf8] sm:$0xff] }
 0x298   :  { %4859 = vmatpush1.bf16.msra.mxu1 %v4858_v45  ;;  %2336 = vmatprep.mubr.f32.mxu1 %v5678_v3  ;;  %v5004_v45 = vpack.c.bf16 %v2524_v35, %v2520_v34  ;;  %v4882_v3 = vpack.c.bf16 %v1019_v58, %v1011_v57  ;;  %v2548_v43 = vld [vmem:[#allocation6 + $0x628] sm:$0xff]  ;;  %v5018_v35 = vpack.c.bf16 %v2547_v26, %v2543_v48  ;;  %v2563_v58 = vld [vmem:[#allocation6 + $0x6a0] sm:$0xff]  ;;  %v1132_v48 = vld [vmem:[#allocation2 + $0x1ef8] sm:$0xff] }
 0x299   :  { %2950 = vmatmul.mubr.f32.vlgmr.msra.gmra.mrb[4].mxu0 %v2343_v52  ;;  %4861 = vmatprep.subr.bf16.mxu1 %v4860_v47  ;;  %v1012_v47 = vld [vmem:[#allocation2 + $0x1b38] sm:$0xff]  ;;  %v5016_v25 = vpack.c.bf16 %v2548_v43, %v2544_v15  ;;  %v2552_v32 = vld [vmem:[#allocation6 + $0x648] sm:$0xff] }
 0x29a   :  { %4987 = vmatpush1.bf16.msra.mxu0 %v4986_v46  ;;  %v2523_v46 = vld [vmem:[#allocation6 + $0x560] sm:$0xff]  ;;  %v4880_v56 = vpack.c.bf16 %v1020_v50, %v1012_v47  ;;  %v2556_v33 = vld [vmem:[#allocation6 + $0x668] sm:$0xff] }
 0x29b   :  { %4989 = vmatprep.subr.bf16.mxu0 %v4988_v53  ;;  %v6161_v53 = vld [vmem:[#allocation4] sm:$0xff]  ;;  %v5006_v16 = vpack.c.bf16 %v2523_v46, %v2519_v44  ;;  %v5020_v42 = vpack.c.bf16 %v2556_v33, %v2552_v32  ;;  %v2555_v44 = vld [vmem:[#allocation6 + $0x660] sm:$0xff]  ;;  %v1084_v46 = vld [vmem:[#allocation2 + $0x1d78] sm:$0xff] }
 0x29c   :  { %4863 = vmatpush1.bf16.msra.mxu1 %v4862_v59  ;;  %v1182_v54 = vrot.slane %v6161_v53, %v1181_v37  ;;  %v2527_v59 = vld [vmem:[#allocation6 + $0x580] sm:$0xff]  ;;  %v2560_v47 = vld [vmem:[#allocation6 + $0x688] sm:$0xff] }
 0x29d   :  { %4865 = vmatprep.subr.bf16.mxu1 %v4864_v61  ;;  %v5008_v61 = vpack.c.bf16 %v2532_v51, %v2528_v17  ;;  %v5010_v4 = vpack.c.bf16 %v2531_v62, %v2527_v59  ;;  %v2564_v50 = vld [vmem:[#allocation6 + $0x6a8] sm:$0xff]  ;;  %v5022_v51 = vpack.c.bf16 %v2555_v44, %v2551_v40  ;;  %v1092_v59 = vld [vmem:[#allocation2 + $0x1db8] sm:$0xff] }
 0x29e   :  { %4991 = vmatpush1.bf16.msra.mxu0 %v4990_v60  ;;  %v5024_v57 = vpack.c.bf16 %v2564_v50, %v2560_v47  ;;  %v2568_v62 = vld [vmem:[#allocation6 + $0x6c8] sm:$0xff]  ;;  %v1148_v40 = vld [vmem:[#allocation2 + $0x1f78] sm:$0xff] }
 0x29f   :  { %4993 = vmatprep.subr.bf16.mxu0 %v4992_v1  ;;  %v2572_v63 = vld [vmem:[#allocation6 + $0x6e8] sm:$0xff] }
 0x2a0   :  { %4867 = vmatpush1.bf16.msra.mxu1 %v4866_v6  ;;  %v1027_v6 = vld [vmem:[#allocation2 + $0x1bb0] sm:$0xff] }
 0x2a1   :  { %4869 = vmatprep.subr.bf16.mxu1 %v4868_v8  ;;  %v2535_v8 = vld [vmem:[#allocation6 + $0x5c0] sm:$0xff]  ;;  %v1091_v28 = vld [vmem:[#allocation2 + $0x1db0] sm:$0xff] }
 0x2a2   :  { %4995 = vmatpush1.bf16.msra.mxu0 %v4994_v7  ;;  %v1035_v7 = vld [vmem:[#allocation2 + $0x1bf0] sm:$0xff]  ;;  %v5014_v21 = vpack.c.bf16 %v2539_v11, %v2535_v8  ;;  %v1116_v8 = vld [vmem:[#allocation2 + $0x1e78] sm:$0xff] }
 0x2a3   :  { %4997 = vmatprep.subr.bf16.mxu0 %v4996_v12  ;;  %v1044_v12 = vld [vmem:[#allocation2 + $0x1c38] sm:$0xff]  ;;  %v4886_v20 = vpack.c.bf16 %v1035_v7, %v1027_v6  ;;  %v2571_v6 = vld [vmem:[#allocation6 + $0x6e0] sm:$0xff]  ;;  %v2580_v11 = vld [vmem:[#allocation6 + $0x728] sm:$0xff] }
 0x2a4   :  { %4871 = vmatpush1.bf16.msra.mxu1 %v4870_v22  ;;  %v4888_v22 = vpack.c.bf16 %v1052_v14, %v1044_v12  ;;  %v1108_v7 = vld [vmem:[#allocation2 + $0x1e38] sm:$0xff]  ;;  %v1107_v43 = vld [vmem:[#allocation2 + $0x1e30] sm:$0xff] }
 0x2a5   :  { %4873 = vmatprep.subr.bf16.mxu1 %v4872_v24  ;;  %v1051_v24 = vld [vmem:[#allocation2 + $0x1c70] sm:$0xff]  ;;  %v4904_v15 = vpack.c.bf16 %v1116_v8, %v1108_v7 }
 0x2a6   :  { %4999 = vmatpush1.bf16.msra.mxu0 %v4998_v23  ;;  %v1043_v23 = vld [vmem:[#allocation2 + $0x1c30] sm:$0xff] }
 0x2a7   :  { %5001 = vmatprep.subr.bf16.mxu0 %v5000_v29  ;;  %v1060_v29 = vld [vmem:[#allocation2 + $0x1cb8] sm:$0xff]  ;;  %v4890_v34 = vpack.c.bf16 %v1051_v24, %v1043_v23  ;;  %v2579_v23 = vld [vmem:[#allocation6 + $0x720] sm:$0xff]  ;;  %v2588_v26 = vld [vmem:[#allocation6 + $0x768] sm:$0xff] }
 0x2a8   :  { %4875 = vmatpush1.bf16.msra.mxu1 %v4874_v36  ;;  %v4892_v36 = vpack.c.bf16 %v1068_v30, %v1060_v29  ;;  %v1124_v24 = vld [vmem:[#allocation2 + $0x1eb8] sm:$0xff]  ;;  %v1123_v33 = vld [vmem:[#allocation2 + $0x1eb0] sm:$0xff] }
 0x2a9   :  { %4877 = vmatprep.subr.bf16.mxu1 %v4876_v39  ;;  %v1067_v39 = vld [vmem:[#allocation2 + $0x1cf0] sm:$0xff]  ;;  %v4908_v32 = vpack.c.bf16 %v1132_v48, %v1124_v24  ;;  %v2611_v24 = vld [vmem:[#allocation6 + $0x820] sm:$0xff] }
 0x2aa   :  { %5003 = vmatpush1.bf16.msra.mxu0 %v5002_v38  ;;  %v6166_v60 = vpop.f32.mrb[2].mxu1  ;;  %v1059_v38 = vld [vmem:[#allocation2 + $0x1cb0] sm:$0xff] }
 0x2ab   :  { %5005 = vmatprep.subr.bf16.mxu0 %v5004_v45  ;;  %v1772_v1 = vpop.f32.mrb[3].mxu1  ;;  %v1076_v45 = vld [vmem:[#allocation2 + $0x1d38] sm:$0xff]  ;;  %v4894_v17 = vpack.c.bf16 %v1067_v39, %v1059_v38  ;;  %v2587_v38 = vld [vmem:[#allocation6 + $0x760] sm:$0xff]  ;;  %v2596_v44 = vld [vmem:[#allocation6 + $0x7a8] sm:$0xff] }
 0x2ac   :  { %v6168_v2 = vadd.f32 %v1772_v1, %v1182_v54  ;;  %4879 = vmatpush1.bf16.msra.mxu1 %v4878_v55  ;;  %v4896_v54 = vpack.c.bf16 %v1084_v46, %v1076_v45  ;;  %v1075_v55 = vld [vmem:[#allocation2 + $0x1d30] sm:$0xff]  ;;  %v1140_v39 = vld [vmem:[#allocation2 + $0x1f38] sm:$0xff] }
 0x2ad   :  { %4881 = vmatprep.subr.bf16.mxu1 %v4880_v56  ;;  %v2559_v56 = vld [vmem:[#allocation6 + $0x680] sm:$0xff]  ;;  %v4912_v47 = vpack.c.bf16 %v1148_v40, %v1140_v39  ;;  %v1139_v50 = vld [vmem:[#allocation2 + $0x1f30] sm:$0xff] }
 0x2ae   :  { %5007 = vmatpush1.bf16.msra.mxu0 %v5006_v16  ;;  %v2346_v9 = vmax.f32 %v6168_v2, 0.0  ;;  %v1083_v16 = vld [vmem:[#allocation2 + $0x1d70] sm:$0xff]  ;;  %v5026_v1 = vpack.c.bf16 %v2563_v58, %v2559_v56  ;;  %v1156_v56 = vld [vmem:[#allocation2 + $0x1fb8] sm:$0xff]  ;;  %v2615_v39 = vld [vmem:[#allocation6 + $0x840] sm:$0xff] }
 0x2af   :  { %5009 = vmatprep.subr.bf16.mxu0 %v5008_v61  ;;  %v1100_v61 = vld [vmem:[#allocation2 + $0x1df8] sm:$0xff]  ;;  %v4898_v0 = vpack.c.bf16 %v1083_v16, %v1075_v55  ;;  %v2595_v16 = vld [vmem:[#allocation6 + $0x7a0] sm:$0xff]  ;;  %v2600_v58 = vld [vmem:[#allocation6 + $0x7c8] sm:$0xff] }
 0x2b0   :  { %4883 = vmatpush1.bf16.msra.mxu1 %v4882_v3  ;;  %3020 = vmatprep.mubr.f32.mxu0 %v2346_v9  ;;  %v4900_v19 = vpack.c.bf16 %v1100_v61, %v1092_v59  ;;  %v1099_v3 = vld [vmem:[#allocation2 + $0x1df0] sm:$0xff]  ;;  %v2619_v40 = vld [vmem:[#allocation6 + $0x860] sm:$0xff] }
 0x2b1   :  { %4885 = vmatprep.subr.bf16.mxu1 %v4884_v5  ;;  %v5028_v5 = vpack.c.bf16 %v2572_v63, %v2568_v62  ;;  %v4902_v12 = vpack.c.bf16 %v1099_v3, %v1091_v28  ;;  %v2604_v59 = vld [vmem:[#allocation6 + $0x7e8] sm:$0xff] }
 0x2b2   :  { %5011 = vmatpush1.bf16.msra.mxu0 %v5010_v4  ;;  %v2567_v4 = vld [vmem:[#allocation6 + $0x6c0] sm:$0xff]  ;;  %v5044_v3 = vpack.c.bf16 %v2604_v59, %v2600_v58  ;;  %v2608_v7 = vld [vmem:[#allocation6 + $0x808] sm:$0xff] }
 0x2b3   :  { %5013 = vmatprep.subr.bf16.mxu0 %v5012_v10  ;;  %v2576_v10 = vld [vmem:[#allocation6 + $0x708] sm:$0xff]  ;;  %v5030_v14 = vpack.c.bf16 %v2571_v6, %v2567_v4  ;;  %v2603_v4 = vld [vmem:[#allocation6 + $0x7e0] sm:$0xff]  ;;  %v2358_v6 = vld [vmem:[#allocation6 + $0x38] sm:$0xff] }
 0x2b4   :  { %4887 = vmatpush1.bf16.msra.mxu1 %v4886_v20  ;;  %v1115_v20 = vld [vmem:[#allocation2 + $0x1e70] sm:$0xff] }
 0x2b5   :  { %4889 = vmatprep.subr.bf16.mxu1 %v4888_v22  ;;  %v5032_v22 = vpack.c.bf16 %v2580_v11, %v2576_v10  ;;  %v4906_v29 = vpack.c.bf16 %v1115_v20, %v1107_v43  ;;  %v2612_v8 = vld [vmem:[#allocation6 + $0x828] sm:$0xff]  ;;  %v2362_v20 = vld [vmem:[#allocation6 + $0x58] sm:$0xff] }
 0x2b6   :  { %5015 = vmatpush1.bf16.msra.mxu0 %v5014_v21  ;;  %v2575_v21 = vld [vmem:[#allocation6 + $0x700] sm:$0xff]  ;;  %v2632_v59 = vld [vmem:[#allocation6 + $0x8c8] sm:$0xff] }
 0x2b7   :  { %5017 = vmatprep.subr.bf16.mxu0 %v5016_v25  ;;  %v2584_v25 = vld [vmem:[#allocation6 + $0x748] sm:$0xff]  ;;  %v5034_v30 = vpack.c.bf16 %v2579_v23, %v2575_v21  ;;  %v2366_v21 = vld [vmem:[#allocation6 + $0x78] sm:$0xff]  ;;  %v2607_v23 = vld [vmem:[#allocation6 + $0x800] sm:$0xff] }
 0x2b8   :  { %4891 = vmatpush1.bf16.msra.mxu1 %v4890_v34  ;;  %v1131_v34 = vld [vmem:[#allocation2 + $0x1ef0] sm:$0xff] }
 0x2b9   :  { %4893 = vmatprep.subr.bf16.mxu1 %v4892_v36  ;;  %v5036_v36 = vpack.c.bf16 %v2588_v26, %v2584_v25  ;;  %v4910_v45 = vpack.c.bf16 %v1131_v34, %v1123_v33  ;;  %v2616_v25 = vld [vmem:[#allocation6 + $0x848] sm:$0xff]  ;;  %v2370_v34 = vld [vmem:[#allocation6 + $0x98] sm:$0xff] }
 0x2ba   :  { %5019 = vmatpush1.bf16.msra.mxu0 %v5018_v35  ;;  %v2583_v35 = vld [vmem:[#allocation6 + $0x740] sm:$0xff]  ;;  %v2620_v26 = vld [vmem:[#allocation6 + $0x868] sm:$0xff] }
 0x2bb   :  { %5021 = vmatprep.subr.bf16.mxu0 %v5020_v42  ;;  %v2592_v42 = vld [vmem:[#allocation6 + $0x788] sm:$0xff]  ;;  %v5038_v46 = vpack.c.bf16 %v2587_v38, %v2583_v35  ;;  %v5050_v35 = vpack.c.bf16 %v2611_v24, %v2607_v23  ;;  %v5052_v38 = vpack.c.bf16 %v2620_v26, %v2616_v25  ;;  %v2393_v25 = vld [vmem:[#allocation6 + $0x150] sm:$0xff] }
 0x2bc   :  { %4895 = vmatpush1.bf16.msra.mxu1 %v4894_v17  ;;  %v1147_v17 = vld [vmem:[#allocation2 + $0x1f70] sm:$0xff]  ;;  %v5040_v55 = vpack.c.bf16 %v2596_v44, %v2592_v42  ;;  %v2397_v26 = vld [vmem:[#allocation6 + $0x170] sm:$0xff] }
 0x2bd   :  { %4897 = vmatprep.subr.bf16.mxu1 %v4896_v54  ;;  %v1177_v54 = vsub.s32 2, %v6123_v27  ;;  %v4914_v61 = vpack.c.bf16 %v1147_v17, %v1139_v50  ;;  %v2624_v44 = vld [vmem:[#allocation6 + $0x888] sm:$0xff]  ;;  %v2373_v50 = vld [vmem:[#allocation6 + $0xb0] sm:$0xff]  ;;  %v2378_v17 = vld [vmem:[#allocation6 + $0xd8] sm:$0xff] }
 0x2be   :  { %5023 = vmatpush1.bf16.msra.mxu0 %v5022_v51  ;;  %v2591_v51 = vld [vmem:[#allocation6 + $0x780] sm:$0xff]  ;;  %v2648_v23 = vld [vmem:[#allocation6 + $0x948] sm:$0xff] }
 0x2bf   :  { %5025 = vmatprep.subr.bf16.mxu0 %v5024_v57  ;;  %v1164_v57 = vld [vmem:[#allocation2 + $0x1ff8] sm:$0xff]  ;;  %v5042_v62 = vpack.c.bf16 %v2595_v16, %v2591_v51  ;;  %v1178_v28 = vrot.slane %v6161_v53, %v1177_v54  ;;  %v2382_v51 = vld [vmem:[#allocation6 + $0xf8] sm:$0xff]  ;;  %v2652_v24 = vld [vmem:[#allocation6 + $0x968] sm:$0xff] }
 0x2c0   :  { %4899 = vmatpush1.bf16.msra.mxu1 %v4898_v0  ;;  %v4916_v63 = vpack.c.bf16 %v1164_v57, %v1156_v56  ;;  %v1155_v0 = vld [vmem:[#allocation2 + $0x1fb0] sm:$0xff]  ;;  %v2623_v56 = vld [vmem:[#allocation6 + $0x880] sm:$0xff] }
 0x2c1   :  { %4901 = vmatprep.subr.bf16.mxu1 %v4900_v19  ;;  %v2599_v19 = vld [vmem:[#allocation6 + $0x7c0] sm:$0xff]  ;;  %v6178_v43 = vadd.f32 %v6166_v60, %v1178_v28  ;;  %v2374_v60 = vld [vmem:[#allocation6 + $0xb8] sm:$0xff] }
 0x2c2   :  { %5027 = vmatpush1.bf16.msra.mxu0 %v5026_v1  ;;  %v1163_v1 = vld [vmem:[#allocation2 + $0x1ff0] sm:$0xff]  ;;  %v5046_v11 = vpack.c.bf16 %v2603_v4, %v2599_v19  ;;  %v2627_v57 = vld [vmem:[#allocation6 + $0x8a0] sm:$0xff] }
 0x2c3   :  { %5029 = vmatprep.subr.bf16.mxu0 %v5028_v5  ;;  %v2354_v5 = vld [vmem:[#allocation6 + $0x18] sm:$0xff]  ;;  %v4918_v10 = vpack.c.bf16 %v1163_v1, %v1155_v0  ;;  %v2345_v33 = vmax.f32 %v6178_v43, 0.0  ;;  %v5058_v1 = vpack.c.bf16 %v2627_v57, %v2623_v56  ;;  %v2631_v28 = vld [vmem:[#allocation6 + $0x8c0] sm:$0xff]  ;;  %v2668_v56 = vld [vmem:[#allocation6 + $0x9e8] sm:$0xff] }
 0x2c4   :  { %4903 = vmatpush1.bf16.msra.mxu1 %v4902_v12  ;;  %v5176_v12 = vpack.c.bf16 %v2358_v6, %v2354_v5  ;;  %v2390_v0 = vld [vmem:[#allocation6 + $0x138] sm:$0xff]  ;;  %v2640_v5 = vld [vmem:[#allocation6 + $0x908] sm:$0xff] }
 0x2c5   :  { %4905 = vmatprep.subr.bf16.mxu1 %v4904_v15  ;;  %v2357_v15 = vld [vmem:[#allocation6 + $0x30] sm:$0xff]  ;;  %v2644_v6 = vld [vmem:[#allocation6 + $0x928] sm:$0xff]  ;;  %v2638_v43 = vld [vmem:[#allocation6 + $0x8f8] sm:$0xff] }
 0x2c6   :  { %5031 = vmatpush1.bf16.msra.mxu0 %v5030_v14  ;;  %v2353_v14 = vld [vmem:[#allocation6 + $0x10] sm:$0xff] }
 0x2c7   :  { %5033 = vmatprep.subr.bf16.mxu0 %v5032_v22  ;;  %v5048_v22 = vpack.c.bf16 %v2612_v8, %v2608_v7  ;;  %v5178_v48 = vpack.c.bf16 %v2357_v15, %v2353_v14  ;;  %v2385_v8 = vld [vmem:[#allocation6 + $0x110] sm:$0xff]  ;;  %v5064_v15 = vpack.c.bf16 %v2644_v6, %v2640_v5  ;;  %v2426_v6 = vld [vmem:[#allocation6 + $0x258] sm:$0xff] }
 0x2c8   :  { %4907 = vmatpush1.bf16.msra.mxu1 %v4906_v29  ;;  %v5180_v29 = vpack.c.bf16 %v2366_v21, %v2362_v20  ;;  %v2639_v20 = vld [vmem:[#allocation6 + $0x900] sm:$0xff]  ;;  %v2421_v5 = vld [vmem:[#allocation6 + $0x230] sm:$0xff] }
 0x2c9   :  { %4909 = vmatprep.subr.bf16.mxu1 %v4908_v32  ;;  %v2365_v32 = vld [vmem:[#allocation6 + $0x70] sm:$0xff]  ;;  %v2643_v21 = vld [vmem:[#allocation6 + $0x920] sm:$0xff] }
 0x2ca   :  { %5035 = vmatpush1.bf16.msra.mxu0 %v5034_v30  ;;  %v2361_v30 = vld [vmem:[#allocation6 + $0x50] sm:$0xff] }
 0x2cb   :  { %5037 = vmatprep.subr.bf16.mxu0 %v5036_v36  ;;  %v5680_v36 = vld [vmem:[%s6238_s0 + $0x30] sm:$0xff]  ;;  %v5182_v42 = vpack.c.bf16 %v2365_v32, %v2361_v30  ;;  %v2406_v30 = vld [vmem:[#allocation6 + $0x1b8] sm:$0xff]  ;;  %v5066_v32 = vpack.c.bf16 %v2643_v21, %v2639_v20 }
 0x2cc   :  { %4911 = vmatpush1.bf16.msra.mxu1 %v4910_v45  ;;  %v2628_v45 = vld [vmem:[#allocation6 + $0x8a8] sm:$0xff] }
 0x2cd   :  { %4913 = vmatprep.subr.bf16.mxu1 %v4912_v47  ;;  %v2369_v47 = vld [vmem:[#allocation6 + $0x90] sm:$0xff]  ;;  %v5056_v16 = vpack.c.bf16 %v2628_v45, %v2624_v44  ;;  %v2410_v45 = vld [vmem:[#allocation6 + $0x1d8] sm:$0xff]  ;;  %v2684_v20 = vld [vmem:[#allocation6 + $0xa68] sm:$0xff] }
 0x2ce   :  { %5039 = vmatpush1.bf16.msra.mxu0 %v5038_v46  ;;  %v5184_v46 = vpack.c.bf16 %v2374_v60, %v2370_v34  ;;  %v5186_v58 = vpack.c.bf16 %v2373_v50, %v2369_v47  ;;  %v5068_v34 = vpack.c.bf16 %v2652_v24, %v2648_v23  ;;  %v2647_v60 = vld [vmem:[#allocation6 + $0x940] sm:$0xff]  ;;  %v2405_v44 = vld [vmem:[#allocation6 + $0x1b0] sm:$0xff]  ;;  %v2434_v24 = vld [vmem:[#allocation6 + $0x298] sm:$0xff] }
 0x2cf   :  { %5041 = vmatprep.subr.bf16.mxu0 %v5040_v55  ;;  %v5054_v55 = vpack.c.bf16 %v2619_v40, %v2615_v39  ;;  %v2660_v39 = vld [vmem:[#allocation6 + $0x9a8] sm:$0xff]  ;;  %v2429_v23 = vld [vmem:[#allocation6 + $0x270] sm:$0xff] }
 0x2d0   :  { %4915 = vmatpush1.bf16.msra.mxu1 %v4914_v61  ;;  %v2636_v61 = vld [vmem:[#allocation6 + $0x8e8] sm:$0xff] }
 0x2d1   :  { %4917 = vmatprep.subr.bf16.mxu1 %v4916_v63  ;;  %v2386_v63 = vld [vmem:[#allocation6 + $0x118] sm:$0xff]  ;;  %v5060_v19 = vpack.c.bf16 %v2636_v61, %v2632_v59  ;;  %v2413_v59 = vld [vmem:[#allocation6 + $0x1f0] sm:$0xff] }
 0x2d2   :  { %5043 = vmatpush1.bf16.msra.mxu0 %v5042_v62  ;;  %v5188_v62 = vpack.c.bf16 %v2382_v51, %v2378_v17  ;;  %v5192_v7 = vpack.c.bf16 %v2390_v0, %v2386_v63  ;;  %v2655_v17 = vld [vmem:[#allocation6 + $0x980] sm:$0xff]  ;;  %v2418_v61 = vld [vmem:[#allocation6 + $0x218] sm:$0xff] }
 0x2d3   :  { %5045 = vmatprep.subr.bf16.mxu0 %v5044_v3  ;;  %v2635_v3 = vld [vmem:[#allocation6 + $0x8e0] sm:$0xff] }
 0x2d4   :  { %4919 = vmatpush1.bf16.msra.mxu1 %v4918_v10  ;;  %v2389_v10 = vld [vmem:[#allocation6 + $0x130] sm:$0xff]  ;;  %v5062_v14 = vpack.c.bf16 %v2635_v3, %v2631_v28  ;;  %v2659_v51 = vld [vmem:[#allocation6 + $0x9a0] sm:$0xff]  ;;  %v2676_v28 = vld [vmem:[#allocation6 + $0xa28] sm:$0xff] }
 0x2d5   :  { %5177 = vmatprep.subr.bf16.mxu1 %v5176_v12  ;;  %v2398_v12 = vld [vmem:[#allocation6 + $0x178] sm:$0xff]  ;;  %v2663_v63 = vld [vmem:[#allocation6 + $0x9c0] sm:$0xff] }
 0x2d6   :  { %5047 = vmatpush1.bf16.msra.mxu0 %v5046_v11  ;;  %v2394_v11 = vld [vmem:[#allocation6 + $0x158] sm:$0xff]  ;;  %v2667_v0 = vld [vmem:[#allocation6 + $0x9e0] sm:$0xff] }
 0x2d7   :  { %5049 = vmatprep.subr.bf16.mxu0 %v5048_v22  ;;  %2337 = vmatmul.mubr.f32.vlgmr.msra.gmra.mrb[4].mxu1 %v5680_v36  ;;  %v5194_v22 = vpack.c.bf16 %v2389_v10, %v2385_v8  ;;  %v5198_v36 = vpack.c.bf16 %v2397_v26, %v2393_v25  ;;  %v5078_v8 = vpack.c.bf16 %v2667_v0, %v2663_v63  ;;  %v2708_v63 = vld [vmem:[#allocation6 + $0xb28] sm:$0xff] }
 0x2d8   :  { %5179 = vmatpush1.bf16.msra.mxu1 %v5178_v48  ;;  %3233 = vmatprep.mubr.f32.mxu1 %v2344_v31  ;;  %v2381_v31 = vld [vmem:[#allocation6 + $0xf0] sm:$0xff]  ;;  %v5196_v48 = vpack.c.bf16 %v2398_v12, %v2394_v11  ;;  %v2671_v11 = vld [vmem:[#allocation6 + $0xa00] sm:$0xff] }
 0x2d9   :  { %3021 = vmatmul.mubr.f32.vlgmr.msra.gmra.mrb[4].mxu0 %v2345_v33  ;;  %5181 = vmatprep.subr.bf16.mxu1 %v5180_v29  ;;  %v5190_v4 = vpack.c.bf16 %v2381_v31, %v2377_v18  ;;  %v2402_v29 = vld [vmem:[#allocation6 + $0x198] sm:$0xff]  ;;  %v5074_v18 = vpack.c.bf16 %v2659_v51, %v2655_v17  ;;  %v2675_v12 = vld [vmem:[#allocation6 + $0xa20] sm:$0xff]  ;;  %v2700_v17 = vld [vmem:[#allocation6 + $0xae8] sm:$0xff] }
 0x2da   :  { %5051 = vmatpush1.bf16.msra.mxu0 %v5050_v35  ;;  %v2651_v35 = vld [vmem:[#allocation6 + $0x960] sm:$0xff]  ;;  %v5200_v40 = vpack.c.bf16 %v2406_v30, %v2402_v29  ;;  %v5082_v25 = vpack.c.bf16 %v2675_v12, %v2671_v11  ;;  %v2716_v11 = vld [vmem:[#allocation6 + $0xb68] sm:$0xff] }
 0x2db   :  { %5053 = vmatprep.subr.bf16.mxu0 %v5052_v38  ;;  %v2656_v38 = vld [vmem:[#allocation6 + $0x988] sm:$0xff]  ;;  %v5070_v47 = vpack.c.bf16 %v2651_v35, %v2647_v60  ;;  %v2679_v29 = vld [vmem:[#allocation6 + $0xa40] sm:$0xff] }
 0x2dc   :  { %5183 = vmatpush1.bf16.msra.mxu1 %v5182_v42  ;;  %v2401_v42 = vld [vmem:[#allocation6 + $0x190] sm:$0xff]  ;;  %v5072_v50 = vpack.c.bf16 %v2660_v39, %v2656_v38  ;;  %v2683_v30 = vld [vmem:[#allocation6 + $0xa60] sm:$0xff]  ;;  %v2692_v60 = vld [vmem:[#allocation6 + $0xaa8] sm:$0xff] }
 0x2dd   :  { %5185 = vmatprep.subr.bf16.mxu1 %v5184_v46  ;;  %v2414_v46 = vld [vmem:[#allocation6 + $0x1f8] sm:$0xff]  ;;  %v2437_v38 = vld [vmem:[#allocation6 + $0x2b0] sm:$0xff] }
 0x2de   :  { %5055 = vmatpush1.bf16.msra.mxu0 %v5054_v55  ;;  %v5202_v55 = vpack.c.bf16 %v2405_v44, %v2401_v42  ;;  %v5204_v57 = vpack.c.bf16 %v2414_v46, %v2410_v45  ;;  %v2442_v39 = vld [vmem:[#allocation6 + $0x2d8] sm:$0xff]  ;;  %v5086_v42 = vpack.c.bf16 %v2683_v30, %v2679_v29  ;;  %v2687_v45 = vld [vmem:[#allocation6 + $0xa80] sm:$0xff]  ;;  %v2724_v29 = vld [vmem:[#allocation6 + $0xba8] sm:$0xff] }
 0x2df   :  { %5057 = vmatprep.subr.bf16.mxu0 %v5056_v16  ;;  %v2664_v16 = vld [vmem:[#allocation6 + $0x9c8] sm:$0xff]  ;;  %v2691_v46 = vld [vmem:[#allocation6 + $0xaa0] sm:$0xff] }
 0x2e0   :  { %5187 = vmatpush1.bf16.msra.mxu1 %v5186_v58  ;;  %v2409_v58 = vld [vmem:[#allocation6 + $0x1d0] sm:$0xff]  ;;  %v5076_v31 = vpack.c.bf16 %v2668_v56, %v2664_v16  ;;  %v2450_v56 = vld [vmem:[#allocation6 + $0x318] sm:$0xff] }
 0x2e1   :  { %5189 = vmatprep.subr.bf16.mxu1 %v5188_v62  ;;  %v2422_v62 = vld [vmem:[#allocation6 + $0x238] sm:$0xff]  ;;  %v2445_v16 = vld [vmem:[#allocation6 + $0x2f0] sm:$0xff] }
 0x2e2   :  { %5059 = vmatpush1.bf16.msra.mxu0 %v5058_v1  ;;  %v5206_v1 = vpack.c.bf16 %v2413_v59, %v2409_v58  ;;  %v5208_v3 = vpack.c.bf16 %v2422_v62, %v2418_v61  ;;  %v5090_v58 = vpack.c.bf16 %v2691_v46, %v2687_v45  ;;  %v2695_v61 = vld [vmem:[#allocation6 + $0xac0] sm:$0xff]  ;;  %v2732_v45 = vld [vmem:[#allocation6 + $0xbe8] sm:$0xff] }
 0x2e3   :  { %5061 = vmatprep.subr.bf16.mxu0 %v5060_v19  ;;  %v2672_v19 = vld [vmem:[#allocation6 + $0xa08] sm:$0xff]  ;;  %v2699_v62 = vld [vmem:[#allocation6 + $0xae0] sm:$0xff] }
 0x2e4   :  { %5191 = vmatpush1.bf16.msra.mxu1 %v5190_v4  ;;  %v2417_v4 = vld [vmem:[#allocation6 + $0x210] sm:$0xff]  ;;  %v5080_v10 = vpack.c.bf16 %v2676_v28, %v2672_v19  ;;  %v2458_v28 = vld [vmem:[#allocation6 + $0x358] sm:$0xff] }
 0x2e5   :  { %5193 = vmatprep.subr.bf16.mxu1 %v5192_v7  ;;  %v2430_v7 = vld [vmem:[#allocation6 + $0x278] sm:$0xff]  ;;  %v2453_v19 = vld [vmem:[#allocation6 + $0x330] sm:$0xff] }
 0x2e6   :  { %5063 = vmatpush1.bf16.msra.mxu0 %v5062_v14  ;;  %v5210_v14 = vpack.c.bf16 %v2421_v5, %v2417_v4  ;;  %v5212_v21 = vpack.c.bf16 %v2430_v7, %v2426_v6  ;;  %v5094_v4 = vpack.c.bf16 %v2699_v62, %v2695_v61  ;;  %v2703_v6 = vld [vmem:[#allocation6 + $0xb00] sm:$0xff]  ;;  %v2740_v61 = vld [vmem:[#allocation6 + $0xc28] sm:$0xff] }
 0x2e7   :  { %5065 = vmatprep.subr.bf16.mxu0 %v5064_v15  ;;  %v2680_v15 = vld [vmem:[#allocation6 + $0xa48] sm:$0xff]  ;;  %v2707_v7 = vld [vmem:[#allocation6 + $0xb20] sm:$0xff] }
 0x2e8   :  { %5195 = vmatpush1.bf16.msra.mxu1 %v5194_v22  ;;  %v2425_v22 = vld [vmem:[#allocation6 + $0x250] sm:$0xff]  ;;  %v5084_v26 = vpack.c.bf16 %v2684_v20, %v2680_v15  ;;  %v2466_v20 = vld [vmem:[#allocation6 + $0x398] sm:$0xff] }
 0x2e9   :  { %5197 = vmatprep.subr.bf16.mxu1 %v5196_v48  ;;  %v2438_v48 = vld [vmem:[#allocation6 + $0x2b8] sm:$0xff]  ;;  %v2461_v15 = vld [vmem:[#allocation6 + $0x370] sm:$0xff] }
 0x2ea   :  { %5067 = vmatpush1.bf16.msra.mxu0 %v5066_v32  ;;  %v5214_v32 = vpack.c.bf16 %v2429_v23, %v2425_v22  ;;  %v5216_v35 = vpack.c.bf16 %v2438_v48, %v2434_v24  ;;  %v5098_v22 = vpack.c.bf16 %v2707_v7, %v2703_v6  ;;  %v2711_v24 = vld [vmem:[#allocation6 + $0xb40] sm:$0xff]  ;;  %v2498_v6 = vld [vmem:[#allocation6 + $0x498] sm:$0xff] }
 0x2eb   :  { %5069 = vmatprep.subr.bf16.mxu0 %v5068_v34  ;;  %v2688_v34 = vld [vmem:[#allocation6 + $0xa88] sm:$0xff]  ;;  %v2715_v48 = vld [vmem:[#allocation6 + $0xb60] sm:$0xff]  ;;  %v2502_v7 = vld [vmem:[#allocation6 + $0x4b8] sm:$0xff] }
 0x2ec   :  { %5199 = vmatpush1.bf16.msra.mxu1 %v5198_v36  ;;  %v2433_v36 = vld [vmem:[#allocation6 + $0x290] sm:$0xff]  ;;  %v5088_v44 = vpack.c.bf16 %v2692_v60, %v2688_v34  ;;  %v2474_v60 = vld [vmem:[#allocation6 + $0x3d8] sm:$0xff] }
 0x2ed   :  { %5201 = vmatprep.subr.bf16.mxu1 %v5200_v40  ;;  %v2446_v40 = vld [vmem:[#allocation6 + $0x2f8] sm:$0xff]  ;;  %v2469_v34 = vld [vmem:[#allocation6 + $0x3b0] sm:$0xff] }
 0x2ee   :  { %5071 = vmatpush1.bf16.msra.mxu0 %v5070_v47  ;;  %v5218_v47 = vpack.c.bf16 %v2437_v38, %v2433_v36  ;;  %v5220_v51 = vpack.c.bf16 %v2446_v40, %v2442_v39  ;;  %v5102_v36 = vpack.c.bf16 %v2715_v48, %v2711_v24  ;;  %v2719_v39 = vld [vmem:[#allocation6 + $0xb80] sm:$0xff]  ;;  %v2517_v48 = vld [vmem:[#allocation6 + $0x530] sm:$0xff] }
 0x2ef   :  { %5073 = vmatprep.subr.bf16.mxu0 %v5072_v50  ;;  %v2696_v50 = vld [vmem:[#allocation6 + $0xac8] sm:$0xff]  ;;  %v2723_v40 = vld [vmem:[#allocation6 + $0xba0] sm:$0xff] }
 0x2f0   :  { %5203 = vmatpush1.bf16.msra.mxu1 %v5202_v55  ;;  %v2441_v55 = vld [vmem:[#allocation6 + $0x2d0] sm:$0xff]  ;;  %v5092_v59 = vpack.c.bf16 %v2700_v17, %v2696_v50  ;;  %v2482_v17 = vld [vmem:[#allocation6 + $0x418] sm:$0xff] }
 0x2f1   :  { %5205 = vmatprep.subr.bf16.mxu1 %v5204_v57  ;;  %v2454_v57 = vld [vmem:[#allocation6 + $0x338] sm:$0xff]  ;;  %v2477_v50 = vld [vmem:[#allocation6 + $0x3f0] sm:$0xff] }
 0x2f2   :  { %5075 = vmatpush1.bf16.msra.mxu0 %v5074_v18  ;;  %v5222_v18 = vpack.c.bf16 %v2445_v16, %v2441_v55  ;;  %v5224_v0 = vpack.c.bf16 %v2454_v57, %v2450_v56  ;;  %v5106_v55 = vpack.c.bf16 %v2723_v40, %v2719_v39  ;;  %v2727_v56 = vld [vmem:[#allocation6 + $0xbc0] sm:$0xff] }
 0x2f3   :  { %5077 = vmatprep.subr.bf16.mxu0 %v5076_v31  ;;  %v2704_v31 = vld [vmem:[#allocation6 + $0xb08] sm:$0xff]  ;;  %v2731_v57 = vld [vmem:[#allocation6 + $0xbe0] sm:$0xff] }
 0x2f4   :  { %5207 = vmatpush1.bf16.msra.mxu1 %v5206_v1  ;;  %v2449_v1 = vld [vmem:[#allocation6 + $0x310] sm:$0xff]  ;;  %v5096_v5 = vpack.c.bf16 %v2708_v63, %v2704_v31  ;;  %v2490_v63 = vld [vmem:[#allocation6 + $0x458] sm:$0xff] }
 0x2f5   :  { %5209 = vmatprep.subr.bf16.mxu1 %v5208_v3  ;;  %v2462_v3 = vld [vmem:[#allocation6 + $0x378] sm:$0xff]  ;;  %v2485_v31 = vld [vmem:[#allocation6 + $0x430] sm:$0xff] }
 0x2f6   :  { %5079 = vmatpush1.bf16.msra.mxu0 %v5078_v8  ;;  %v5226_v8 = vpack.c.bf16 %v2453_v19, %v2449_v1  ;;  %v5228_v12 = vpack.c.bf16 %v2462_v3, %v2458_v28  ;;  %v5110_v1 = vpack.c.bf16 %v2731_v57, %v2727_v56  ;;  %v2537_v56 = vld [vmem:[#allocation6 + $0x5d0] sm:$0xff]  ;;  %v2735_v57 = vld [vmem:[#allocation6 + $0xc00] sm:$0xff] }
 0x2f7   :  { %5081 = vmatprep.subr.bf16.mxu0 %v5080_v10  ;;  %v2712_v10 = vld [vmem:[#allocation6 + $0xb48] sm:$0xff] }
 0x2f8   :  { %5211 = vmatpush1.bf16.msra.mxu1 %v5210_v14  ;;  %v2457_v14 = vld [vmem:[#allocation6 + $0x350] sm:$0xff]  ;;  %v5100_v23 = vpack.c.bf16 %v2716_v11, %v2712_v10  ;;  %v5248_v10 = vpack.c.bf16 %v2502_v7, %v2498_v6  ;;  %v2747_v6 = vld [vmem:[#allocation6 + $0xc60] sm:$0xff] }
 0x2f9   :  { %5213 = vmatprep.subr.bf16.mxu1 %v5212_v21  ;;  %v2470_v21 = vld [vmem:[#allocation6 + $0x3b8] sm:$0xff]  ;;  %v2497_v11 = vld [vmem:[#allocation6 + $0x490] sm:$0xff] }
 0x2fa   :  { %5083 = vmatpush1.bf16.msra.mxu0 %v5082_v25  ;;  %v5230_v25 = vpack.c.bf16 %v2461_v15, %v2457_v14  ;;  %v5232_v30 = vpack.c.bf16 %v2470_v21, %v2466_v20  ;;  %v2506_v14 = vld [vmem:[#allocation6 + $0x4d8] sm:$0xff] }
 0x2fb   :  { %5085 = vmatprep.subr.bf16.mxu0 %v5084_v26  ;;  %v2720_v26 = vld [vmem:[#allocation6 + $0xb88] sm:$0xff]  ;;  %v2510_v15 = vld [vmem:[#allocation6 + $0x4f8] sm:$0xff] }
 0x2fc   :  { %5215 = vmatpush1.bf16.msra.mxu1 %v5214_v32  ;;  %v2465_v32 = vld [vmem:[#allocation6 + $0x390] sm:$0xff]  ;;  %v5104_v38 = vpack.c.bf16 %v2724_v29, %v2720_v26  ;;  %v5252_v21 = vpack.c.bf16 %v2510_v15, %v2506_v14  ;;  %v2526_v26 = vld [vmem:[#allocation6 + $0x578] sm:$0xff] }
 0x2fd   :  { %5217 = vmatprep.subr.bf16.mxu1 %v5216_v35  ;;  %v2478_v35 = vld [vmem:[#allocation6 + $0x3f8] sm:$0xff] }
 0x2fe   :  { %5087 = vmatpush1.bf16.msra.mxu0 %v5086_v42  ;;  %v5234_v42 = vpack.c.bf16 %v2469_v34, %v2465_v32  ;;  %v5236_v46 = vpack.c.bf16 %v2478_v35, %v2474_v60  ;;  %v1189_v32 = vsub.s32 5, %v6123_v27  ;;  %v2521_v60 = vld [vmem:[#allocation6 + $0x550] sm:$0xff]  ;;  %v2558_v14 = vld [vmem:[#allocation6 + $0x678] sm:$0xff] }
 0x2ff   :  { %5089 = vmatprep.subr.bf16.mxu0 %v5088_v44  ;;  %v2728_v44 = vld [vmem:[#allocation6 + $0xbc8] sm:$0xff]  ;;  %v2525_v35 = vld [vmem:[#allocation6 + $0x570] sm:$0xff] }
 0x300   :  { %5219 = vmatpush1.bf16.msra.mxu1 %v5218_v47  ;;  %v2473_v47 = vld [vmem:[#allocation6 + $0x3d0] sm:$0xff]  ;;  %v5108_v16 = vpack.c.bf16 %v2732_v45, %v2728_v44  ;;  %v5262_v40 = vpack.c.bf16 %v2525_v35, %v2521_v60  ;;  %v2763_v60 = vld [vmem:[#allocation6 + $0xce0] sm:$0xff] }
 0x301   :  { %5221 = vmatprep.subr.bf16.mxu1 %v5220_v51  ;;  %v2486_v51 = vld [vmem:[#allocation6 + $0x438] sm:$0xff]  ;;  %v2529_v45 = vld [vmem:[#allocation6 + $0x590] sm:$0xff] }
 0x302   :  { %5091 = vmatpush1.bf16.msra.mxu0 %v5090_v58  ;;  %v5238_v58 = vpack.c.bf16 %v2477_v50, %v2473_v47  ;;  %v5240_v62 = vpack.c.bf16 %v2486_v51, %v2482_v17  ;;  %v2538_v47 = vld [vmem:[#allocation6 + $0x5d8] sm:$0xff] }
 0x303   :  { %5093 = vmatprep.subr.bf16.mxu0 %v5092_v59  ;;  %v2736_v59 = vld [vmem:[#allocation6 + $0xc08] sm:$0xff]  ;;  %v2542_v50 = vld [vmem:[#allocation6 + $0x5f8] sm:$0xff] }
 0x304   :  { %5223 = vmatpush1.bf16.msra.mxu1 %v5222_v18  ;;  %v2481_v18 = vld [vmem:[#allocation6 + $0x410] sm:$0xff]  ;;  %v5112_v19 = vpack.c.bf16 %v2740_v61, %v2736_v59  ;;  %v5268_v61 = vpack.c.bf16 %v2542_v50, %v2538_v47  ;;  %v2767_v50 = vld [vmem:[#allocation6 + $0xd00] sm:$0xff] }
 0x305   :  { %5225 = vmatprep.subr.bf16.mxu1 %v5224_v0  ;;  %v2494_v0 = vld [vmem:[#allocation6 + $0x478] sm:$0xff]  ;;  %v5242_v28 = vpack.c.bf16 %v2485_v31, %v2481_v18  ;;  %v2748_v18 = vld [vmem:[#allocation6 + $0xc68] sm:$0xff] }
 0x306   :  { %5095 = vmatpush1.bf16.msra.mxu0 %v5094_v4  ;;  %v5244_v3 = vpack.c.bf16 %v2494_v0, %v2490_v63  ;;  %v2489_v4 = vld [vmem:[#allocation6 + $0x450] sm:$0xff]  ;;  %v2546_v31 = vld [vmem:[#allocation6 + $0x618] sm:$0xff] }
 0x307   :  { %5097 = vmatprep.subr.bf16.mxu0 %v5096_v5  ;;  %v2493_v5 = vld [vmem:[#allocation6 + $0x470] sm:$0xff]  ;;  %v2550_v63 = vld [vmem:[#allocation6 + $0x638] sm:$0xff] }
 0x308   :  { %5227 = vmatpush1.bf16.msra.mxu1 %v5226_v8  ;;  %v5246_v8 = vpack.c.bf16 %v2493_v5, %v2489_v4  ;;  %v2743_v5 = vld [vmem:[#allocation6 + $0xc40] sm:$0xff]  ;;  %v5272_v7 = vpack.c.bf16 %v2550_v63, %v2546_v31 }
 0x309   :  { %5229 = vmatprep.subr.bf16.mxu1 %v5228_v12  ;;  %v2501_v12 = vld [vmem:[#allocation6 + $0x4b0] sm:$0xff]  ;;  %v5118_v15 = vpack.c.bf16 %v2747_v6, %v2743_v5  ;;  %v2775_v63 = vld [vmem:[#allocation6 + $0xd40] sm:$0xff]  ;;  %v2788_v5 = vld [vmem:[#allocation6 + $0xda8] sm:$0xff] }
 0x30a   :  { %5099 = vmatpush1.bf16.msra.mxu0 %v5098_v22  ;;  %v5250_v20 = vpack.c.bf16 %v2501_v12, %v2497_v11  ;;  %v2505_v22 = vld [vmem:[#allocation6 + $0x4d0] sm:$0xff]  ;;  %v2756_v11 = vld [vmem:[#allocation6 + $0xca8] sm:$0xff]  ;;  %v2554_v12 = vld [vmem:[#allocation6 + $0x658] sm:$0xff] }
 0x30b   :  { %5101 = vmatprep.subr.bf16.mxu0 %v5100_v23  ;;  %v2509_v23 = vld [vmem:[#allocation6 + $0x4f0] sm:$0xff]  ;;  %v2586_v6 = vld [vmem:[#allocation6 + $0x758] sm:$0xff] }
 0x30c   :  { %5231 = vmatpush1.bf16.msra.mxu1 %v5230_v25  ;;  %v5254_v24 = vpack.c.bf16 %v2509_v23, %v2505_v22  ;;  %v2522_v25 = vld [vmem:[#allocation6 + $0x558] sm:$0xff]  ;;  %v2751_v23 = vld [vmem:[#allocation6 + $0xc80] sm:$0xff] }
 0x30d   :  { %5233 = vmatprep.subr.bf16.mxu1 %v5232_v30  ;;  %v1185_v30 = vsub.s32 4, %v6123_v27  ;;  %v5260_v34 = vpack.c.bf16 %v2526_v26, %v2522_v25  ;;  %v2566_v25 = vld [vmem:[#allocation6 + $0x6b8] sm:$0xff] }
 0x30e   :  { %5103 = vmatpush1.bf16.msra.mxu0 %v5102_v36  ;;  %v2530_v36 = vld [vmem:[#allocation6 + $0x598] sm:$0xff] }
 0x30f   :  { %5105 = vmatprep.subr.bf16.mxu0 %v5104_v38  ;;  %v2534_v38 = vld [vmem:[#allocation6 + $0x5b8] sm:$0xff]  ;;  %v1186_v39 = vrot.slane %v6161_v53, %v1185_v30  ;;  %v2561_v30 = vld [vmem:[#allocation6 + $0x690] sm:$0xff] }
 0x310   :  { %5235 = vmatpush1.bf16.msra.mxu1 %v5234_v42  ;;  %v1190_v42 = vrot.slane %v6161_v53, %v1189_v32  ;;  %v5264_v44 = vpack.c.bf16 %v2534_v38, %v2530_v36  ;;  %v2541_v53 = vld [vmem:[#allocation6 + $0x5f0] sm:$0xff]  ;;  %v2768_v38 = vld [vmem:[#allocation6 + $0xd08] sm:$0xff] }
 0x311   :  { %5237 = vmatprep.subr.bf16.mxu1 %v5236_v46  ;;  %v2533_v46 = vld [vmem:[#allocation6 + $0x5b0] sm:$0xff] }
 0x312   :  { %5107 = vmatpush1.bf16.msra.mxu0 %v5106_v55  ;;  %v2565_v36 = vld [vmem:[#allocation6 + $0x6b0] sm:$0xff] }
 0x313   :  { %5109 = vmatprep.subr.bf16.mxu0 %v5108_v16  ;;  %v5266_v16 = vpack.c.bf16 %v2533_v46, %v2529_v45  ;;  %v5282_v45 = vpack.c.bf16 %v2565_v36, %v2561_v30  ;;  %v2569_v46 = vld [vmem:[#allocation6 + $0x6d0] sm:$0xff] }
 0x314   :  { %5239 = vmatpush1.bf16.msra.mxu1 %v5238_v58  ;;  %v2739_v58 = vld [vmem:[#allocation6 + $0xc20] sm:$0xff]  ;;  %v2597_v30 = vld [vmem:[#allocation6 + $0x7b0] sm:$0xff] }
 0x315   :  { %5241 = vmatprep.subr.bf16.mxu1 %v5240_v62  ;;  %v2744_v62 = vld [vmem:[#allocation6 + $0xc48] sm:$0xff] }
 0x316   :  { %5111 = vmatpush1.bf16.msra.mxu0 %v5110_v1  ;;  %v5114_v1 = vpack.c.bf16 %v2739_v58, %v2735_v57  ;;  %v5116_v4 = vpack.c.bf16 %v2748_v18, %v2744_v62  ;;  %v2780_v57 = vld [vmem:[#allocation6 + $0xd68] sm:$0xff]  ;;  %v2578_v58 = vld [vmem:[#allocation6 + $0x718] sm:$0xff]  ;;  %v2577_v18 = vld [vmem:[#allocation6 + $0x710] sm:$0xff] }
 0x317   :  { %3234 = vmatmul.mubr.f32.vlgmr.msra.gmra.mrb[6].mxu1 %v2343_v52  ;;  %5113 = vmatprep.subr.bf16.mxu0 %v5112_v19  ;;  %v2518_v52 = vld [vmem:[#allocation6 + $0x538] sm:$0xff] }
 0x318   :  { %5243 = vmatpush1.bf16.msra.mxu1 %v5242_v28  ;;  %3304 = vmatprep.mubr.f32.mxu1 %v2346_v9  ;;  %v5256_v2 = vpack.c.bf16 %v2518_v52, %v2514_v13  ;;  %v2513_v9 = vld [vmem:[#allocation6 + $0x510] sm:$0xff]  ;;  %v5270_v28 = vpack.c.bf16 %v2541_v53, %v2537_v56  ;;  %v2755_v13 = vld [vmem:[#allocation6 + $0xca0] sm:$0xff]  ;;  %v5276_v52 = vpack.c.bf16 %v2558_v14, %v2554_v12  ;;  %v2776_v56 = vld [vmem:[#allocation6 + $0xd48] sm:$0xff] }
 0x319   :  { %5245 = vmatprep.subr.bf16.mxu1 %v5244_v3  ;;  %v5258_v29 = vpack.c.bf16 %v2517_v48, %v2513_v9  ;;  %v2545_v3 = vld [vmem:[#allocation6 + $0x610] sm:$0xff]  ;;  %v2764_v9 = vld [vmem:[#allocation6 + $0xce8] sm:$0xff]  ;;  %v2562_v48 = vld [vmem:[#allocation6 + $0x698] sm:$0xff]  ;;  %v5122_v26 = vpack.c.bf16 %v2755_v13, %v2751_v23  ;;  %v5132_v31 = vpack.c.bf16 %v2780_v57, %v2776_v56 }
 0x31a   :  { %v5280_v35 = vpack.c.bf16 %v2566_v25, %v2562_v48  ;;  %v2783_v14 = vld [vmem:[#allocation6 + $0xd80] sm:$0xff]  ;;  %v2796_v23 = vld [vmem:[#allocation6 + $0xde8] sm:$0xff]  ;;  %v2594_v13 = vld [vmem:[#allocation6 + $0x798] sm:$0xff] }
 0x31b   :  { %v2791_v25 = vld [vmem:[#allocation6 + $0xdc0] sm:$0xff] }
 0x31c   :  { %5247 = vmatpush1.bf16.msra.mxu1 %v5246_v8  ;;  %v2549_v8 = vld [vmem:[#allocation6 + $0x630] sm:$0xff] }
 0x31d   :  { %5249 = vmatprep.subr.bf16.mxu1 %v5248_v10  ;;  %v2752_v10 = vld [vmem:[#allocation6 + $0xc88] sm:$0xff] }
 0x31e   :  { %v5120_v22 = vpack.c.bf16 %v2756_v11, %v2752_v10  ;;  %v2585_v11 = vld [vmem:[#allocation6 + $0x750] sm:$0xff] }
 0x320   :  { %5251 = vmatpush1.bf16.msra.mxu1 %v5250_v20  ;;  %v5274_v20 = vpack.c.bf16 %v2549_v8, %v2545_v3  ;;  %v2581_v3 = vld [vmem:[#allocation6 + $0x730] sm:$0xff] }
 0x321   :  { %5253 = vmatprep.subr.bf16.mxu1 %v5252_v21  ;;  %v2553_v21 = vld [vmem:[#allocation6 + $0x650] sm:$0xff]  ;;  %v5290_v10 = vpack.c.bf16 %v2581_v3, %v2577_v18 }
 0x322   :  { %v2613_v18 = vld [vmem:[#allocation6 + $0x830] sm:$0xff] }
 0x324   :  { %5255 = vmatpush1.bf16.msra.mxu1 %v5254_v24  ;;  %v2557_v24 = vld [vmem:[#allocation6 + $0x670] sm:$0xff] }
 0x325   :  { %5257 = vmatprep.subr.bf16.mxu1 %v5256_v2  ;;  %v2760_v2 = vld [vmem:[#allocation6 + $0xcc8] sm:$0xff] }
 0x326   :  { %v5124_v32 = vpack.c.bf16 %v2764_v9, %v2760_v2  ;;  %v2593_v9 = vld [vmem:[#allocation6 + $0x790] sm:$0xff] }
 0x328   :  { %5259 = vmatpush1.bf16.msra.mxu1 %v5258_v29  ;;  %v5278_v29 = vpack.c.bf16 %v2557_v24, %v2553_v21  ;;  %v2589_v21 = vld [vmem:[#allocation6 + $0x770] sm:$0xff] }
 0x329   :  { %5261 = vmatprep.subr.bf16.mxu1 %v5260_v34  ;;  %v2759_v34 = vld [vmem:[#allocation6 + $0xcc0] sm:$0xff]  ;;  %v5294_v2 = vpack.c.bf16 %v2589_v21, %v2585_v11 }
 0x32c   :  { %v2054_v17 = vpop.f32.mrb[2].mxu0  ;;  %5263 = vmatpush1.bf16.msra.mxu1 %v5262_v40  ;;  %v2570_v40 = vld [vmem:[#allocation6 + $0x6d8] sm:$0xff] }
 0x32d   :  { %v6196_v51 = vadd.f32 %v2054_v17, %v1186_v39  ;;  %v2056_v55 = vpop.f32.mrb[3].mxu0  ;;  %5265 = vmatprep.subr.bf16.mxu1 %v5264_v44  ;;  %v2772_v39 = vld [vmem:[#allocation6 + $0xd28] sm:$0xff]  ;;  %v5126_v44 = vpack.c.bf16 %v2763_v60, %v2759_v34  ;;  %v2771_v17 = vld [vmem:[#allocation6 + $0xd20] sm:$0xff]  ;;  %v2602_v60 = vld [vmem:[#allocation6 + $0x7d8] sm:$0xff] }
 0x32e   :  { %v6198_v59 = vadd.f32 %v2056_v55, %v1190_v42  ;;  %v2574_v42 = vld [vmem:[#allocation6 + $0x6f8] sm:$0xff]  ;;  %v5128_v47 = vpack.c.bf16 %v2772_v39, %v2768_v38  ;;  %v5130_v53 = vpack.c.bf16 %v2771_v17, %v2767_v50  ;;  %v2804_v34 = vld [vmem:[#allocation6 + $0xe28] sm:$0xff]  ;;  %v5298_v38 = vpack.c.bf16 %v2597_v30, %v2593_v9  ;;  %v2601_v39 = vld [vmem:[#allocation6 + $0x7d0] sm:$0xff] }
 0x32f   :  { %v2347_v19 = vmax.f32 %v6196_v51, 0.0  ;;  %v5284_v55 = vpack.c.bf16 %v2574_v42, %v2570_v40  ;;  %v2799_v42 = vld [vmem:[#allocation6 + $0xe00] sm:$0xff]  ;;  %v2812_v50 = vld [vmem:[#allocation6 + $0xe68] sm:$0xff]  ;;  %v2610_v17 = vld [vmem:[#allocation6 + $0x818] sm:$0xff] }
 0x330   :  { %v2348_v0 = vmax.f32 %v6198_v59, 0.0  ;;  %5267 = vmatpush1.bf16.msra.mxu1 %v5266_v16  ;;  %v2573_v16 = vld [vmem:[#allocation6 + $0x6f0] sm:$0xff] }
 0x331   :  { %5269 = vmatprep.subr.bf16.mxu1 %v5268_v61  ;;  %v2582_v61 = vld [vmem:[#allocation6 + $0x738] sm:$0xff]  ;;  %v5286_v62 = vpack.c.bf16 %v2573_v16, %v2569_v46  ;;  %v2605_v46 = vld [vmem:[#allocation6 + $0x7f0] sm:$0xff] }
 0x332   :  { %3091 = vmatprep.mubr.f32.mxu0 %v2348_v0  ;;  %v5302_v56 = vpack.c.bf16 %v2605_v46, %v2601_v39  ;;  %v2629_v9 = vld [vmem:[#allocation6 + $0x8b0] sm:$0xff]  ;;  %v2646_v39 = vld [vmem:[#allocation6 + $0x938] sm:$0xff]  ;;  %v2839_v46 = vld [vmem:[#allocation6 + $0xf40] sm:$0xff] }
 0x333   :  { %3092 = vmatmul.mubr.f32.vlgmr.msra.gmra.mrb[4].mxu0 %v2347_v19  ;;  %v2633_v30 = vld [vmem:[#allocation6 + $0x8d0] sm:$0xff] }
 0x334   :  { %5115 = vmatpush1.bf16.msra.mxu0 %v5114_v1  ;;  %5271 = vmatpush1.bf16.msra.mxu1 %v5270_v28  ;;  %v2779_v1 = vld [vmem:[#allocation6 + $0xd60] sm:$0xff]  ;;  %v5288_v28 = vpack.c.bf16 %v2582_v61, %v2578_v58 }
 0x335   :  { %5117 = vmatprep.subr.bf16.mxu0 %v5116_v4  ;;  %5273 = vmatprep.subr.bf16.mxu1 %v5272_v7  ;;  %v2784_v4 = vld [vmem:[#allocation6 + $0xd88] sm:$0xff]  ;;  %v2590_v7 = vld [vmem:[#allocation6 + $0x778] sm:$0xff]  ;;  %v5134_v8 = vpack.c.bf16 %v2779_v1, %v2775_v63  ;;  %v2807_v58 = vld [vmem:[#allocation6 + $0xe40] sm:$0xff] }
 0x336   :  { %v5136_v12 = vpack.c.bf16 %v2788_v5, %v2784_v4  ;;  %v2811_v61 = vld [vmem:[#allocation6 + $0xe60] sm:$0xff]  ;;  %v2622_v63 = vld [vmem:[#allocation6 + $0x878] sm:$0xff]  ;;  %v2816_v1 = vld [vmem:[#allocation6 + $0xe88] sm:$0xff] }
 0x337   :  { %v5150_v3 = vpack.c.bf16 %v2811_v61, %v2807_v58  ;;  %v2617_v5 = vld [vmem:[#allocation6 + $0x850] sm:$0xff] }
 0x338   :  { %5119 = vmatpush1.bf16.msra.mxu0 %v5118_v15  ;;  %5275 = vmatpush1.bf16.msra.mxu1 %v5274_v20  ;;  %v2787_v15 = vld [vmem:[#allocation6 + $0xda0] sm:$0xff]  ;;  %v5292_v20 = vpack.c.bf16 %v2590_v7, %v2586_v6 }
 0x339   :  { %5121 = vmatprep.subr.bf16.mxu0 %v5120_v22  ;;  %5277 = vmatprep.subr.bf16.mxu1 %v5276_v52  ;;  %v2792_v22 = vld [vmem:[#allocation6 + $0xdc8] sm:$0xff]  ;;  %v2598_v52 = vld [vmem:[#allocation6 + $0x7b8] sm:$0xff]  ;;  %v5138_v24 = vpack.c.bf16 %v2787_v15, %v2783_v14  ;;  %v2815_v6 = vld [vmem:[#allocation6 + $0xe80] sm:$0xff] }
 0x33a   :  { %v5140_v48 = vpack.c.bf16 %v2796_v23, %v2792_v22  ;;  %v2819_v7 = vld [vmem:[#allocation6 + $0xea0] sm:$0xff]  ;;  %v2828_v14 = vld [vmem:[#allocation6 + $0xee8] sm:$0xff]  ;;  %v2626_v15 = vld [vmem:[#allocation6 + $0x898] sm:$0xff] }
 0x33b   :  { %v5154_v21 = vpack.c.bf16 %v2819_v7, %v2815_v6  ;;  %v2625_v23 = vld [vmem:[#allocation6 + $0x890] sm:$0xff] }
 0x33c   :  { %5123 = vmatpush1.bf16.msra.mxu0 %v5122_v26  ;;  %5279 = vmatpush1.bf16.msra.mxu1 %v5278_v29  ;;  %v2795_v26 = vld [vmem:[#allocation6 + $0xde0] sm:$0xff]  ;;  %v5296_v29 = vpack.c.bf16 %v2598_v52, %v2594_v13 }
 0x33d   :  { %5125 = vmatprep.subr.bf16.mxu0 %v5124_v32  ;;  %5281 = vmatprep.subr.bf16.mxu1 %v5280_v35  ;;  %v2800_v32 = vld [vmem:[#allocation6 + $0xe08] sm:$0xff]  ;;  %v2606_v35 = vld [vmem:[#allocation6 + $0x7f8] sm:$0xff]  ;;  %v5142_v36 = vpack.c.bf16 %v2795_v26, %v2791_v25  ;;  %v2823_v52 = vld [vmem:[#allocation6 + $0xec0] sm:$0xff] }
 0x33e   :  { %v5144_v40 = vpack.c.bf16 %v2804_v34, %v2800_v32  ;;  %v2836_v25 = vld [vmem:[#allocation6 + $0xf28] sm:$0xff]  ;;  %v2634_v26 = vld [vmem:[#allocation6 + $0x8d8] sm:$0xff]  ;;  %v2835_v32 = vld [vmem:[#allocation6 + $0xf20] sm:$0xff] }
 0x33f   :  { %v5316_v34 = vpack.c.bf16 %v2638_v43, %v2634_v26  ;;  %v2678_v26 = vld [vmem:[#allocation6 + $0xa38] sm:$0xff] }
 0x340   :  { %5127 = vmatpush1.bf16.msra.mxu0 %v5126_v44  ;;  %5283 = vmatpush1.bf16.msra.mxu1 %v5282_v45  ;;  %v2803_v44 = vld [vmem:[#allocation6 + $0xe20] sm:$0xff]  ;;  %v5300_v45 = vpack.c.bf16 %v2606_v35, %v2602_v60  ;;  %v2637_v60 = vld [vmem:[#allocation6 + $0x8f0] sm:$0xff]  ;;  %v2840_v35 = vld [vmem:[#allocation6 + $0xf48] sm:$0xff] }
 0x341   :  { %5129 = vmatprep.subr.bf16.mxu0 %v5128_v47  ;;  %5285 = vmatprep.subr.bf16.mxu1 %v5284_v55  ;;  %v2808_v47 = vld [vmem:[#allocation6 + $0xe48] sm:$0xff]  ;;  %v2614_v55 = vld [vmem:[#allocation6 + $0x838] sm:$0xff]  ;;  %v5146_v16 = vpack.c.bf16 %v2803_v44, %v2799_v42  ;;  %v5318_v42 = vpack.c.bf16 %v2637_v60, %v2633_v30  ;;  %v2641_v44 = vld [vmem:[#allocation6 + $0x910] sm:$0xff] }
 0x342   :  { %v5148_v57 = vpack.c.bf16 %v2812_v50, %v2808_v47  ;;  %v2843_v47 = vld [vmem:[#allocation6 + $0xf60] sm:$0xff]  ;;  %v2677_v30 = vld [vmem:[#allocation6 + $0xa30] sm:$0xff] }
 0x343   :  { %v5166_v58 = vpack.c.bf16 %v2843_v47, %v2839_v46  ;;  %v2681_v60 = vld [vmem:[#allocation6 + $0xa50] sm:$0xff]  ;;  %v2702_v46 = vld [vmem:[#allocation6 + $0xaf8] sm:$0xff] }
 0x344   :  { %5131 = vmatpush1.bf16.msra.mxu0 %v5130_v53  ;;  %5287 = vmatpush1.bf16.msra.mxu1 %v5286_v62  ;;  %v5304_v53 = vpack.c.bf16 %v2614_v55, %v2610_v17  ;;  %v2609_v62 = vld [vmem:[#allocation6 + $0x810] sm:$0xff]  ;;  %v2848_v55 = vld [vmem:[#allocation6 + $0xf88] sm:$0xff] }
 0x345   :  { %5133 = vmatprep.subr.bf16.mxu0 %v5132_v31  ;;  %5289 = vmatprep.subr.bf16.mxu1 %v5288_v28  ;;  %v2618_v31 = vld [vmem:[#allocation6 + $0x858] sm:$0xff]  ;;  %v2820_v28 = vld [vmem:[#allocation6 + $0xea8] sm:$0xff]  ;;  %v5306_v4 = vpack.c.bf16 %v2613_v18, %v2609_v62  ;;  %v2645_v17 = vld [vmem:[#allocation6 + $0x930] sm:$0xff] }
 0x346   :  { %v5152_v11 = vpack.c.bf16 %v2820_v28, %v2816_v1  ;;  %v5322_v61 = vpack.c.bf16 %v2645_v17, %v2641_v44  ;;  %v2847_v18 = vld [vmem:[#allocation6 + $0xf80] sm:$0xff]  ;;  %v2653_v1 = vld [vmem:[#allocation6 + $0x970] sm:$0xff]  ;;  %v2856_v28 = vld [vmem:[#allocation6 + $0xfc8] sm:$0xff] }
 0x347   :  { %v2693_v44 = vld [vmem:[#allocation6 + $0xab0] sm:$0xff] }
 0x348   :  { %5135 = vmatpush1.bf16.msra.mxu0 %v5134_v8  ;;  %5291 = vmatpush1.bf16.msra.mxu1 %v5290_v10  ;;  %v5308_v8 = vpack.c.bf16 %v2622_v63, %v2618_v31  ;;  %v2621_v10 = vld [vmem:[#allocation6 + $0x870] sm:$0xff]  ;;  %v2851_v31 = vld [vmem:[#allocation6 + $0xfa0] sm:$0xff] }
 0x349   :  { %5137 = vmatprep.subr.bf16.mxu0 %v5136_v12  ;;  %5293 = vmatprep.subr.bf16.mxu1 %v5292_v20  ;;  %v2824_v12 = vld [vmem:[#allocation6 + $0xec8] sm:$0xff]  ;;  %v2630_v20 = vld [vmem:[#allocation6 + $0x8b8] sm:$0xff]  ;;  %v5310_v22 = vpack.c.bf16 %v2621_v10, %v2617_v5  ;;  %v5170_v6 = vpack.c.bf16 %v2851_v31, %v2847_v18  ;;  %v2697_v17 = vld [vmem:[#allocation6 + $0xad0] sm:$0xff] }
 0x34a   :  { %v5156_v13 = vpack.c.bf16 %v2828_v14, %v2824_v12  ;;  %v2662_v5 = vld [vmem:[#allocation6 + $0x9b8] sm:$0xff]  ;;  %v2859_v12 = vld [vmem:[#allocation6 + $0xfe0] sm:$0xff] }
 0x34b   :  { %v2718_v18 = vld [vmem:[#allocation6 + $0xb78] sm:$0xff] }
 0x34c   :  { %5139 = vmatpush1.bf16.msra.mxu0 %v5138_v24  ;;  %5295 = vmatpush1.bf16.msra.mxu1 %v5294_v2  ;;  %v2827_v24 = vld [vmem:[#allocation6 + $0xee0] sm:$0xff]  ;;  %v5312_v2 = vpack.c.bf16 %v2630_v20, %v2626_v15  ;;  %v2661_v15 = vld [vmem:[#allocation6 + $0x9b0] sm:$0xff] }
 0x34d   :  { %5141 = vmatprep.subr.bf16.mxu0 %v5140_v48  ;;  %5297 = vmatprep.subr.bf16.mxu1 %v5296_v29  ;;  %v2832_v48 = vld [vmem:[#allocation6 + $0xf08] sm:$0xff]  ;;  %v5314_v29 = vpack.c.bf16 %v2629_v9, %v2625_v23  ;;  %v2670_v23 = vld [vmem:[#allocation6 + $0x9f8] sm:$0xff]  ;;  %v2665_v9 = vld [vmem:[#allocation6 + $0x9d0] sm:$0xff] }
 0x34e   :  { %v5160_v59 = vpack.c.bf16 %v2836_v25, %v2832_v48  ;;  %v3458_v20 = vld [vmem:[#allocation9 + $0x8] sm:$0xff]  ;;  %v2674_v25 = vld [vmem:[#allocation6 + $0xa18] sm:$0xff] }
 0x34f   :  { %v2669_v48 = vld [vmem:[#allocation6 + $0x9f0] sm:$0xff] }
 0x350   :  { %5143 = vmatpush1.bf16.msra.mxu0 %v5142_v36  ;;  %5299 = vmatpush1.bf16.msra.mxu1 %v5298_v38  ;;  %v2844_v36 = vld [vmem:[#allocation6 + $0xf68] sm:$0xff]  ;;  %v2642_v38 = vld [vmem:[#allocation6 + $0x918] sm:$0xff]  ;;  %v5334_v43 = vpack.c.bf16 %v2669_v48, %v2665_v9 }
 0x351   :  { %5145 = vmatprep.subr.bf16.mxu0 %v5144_v40  ;;  %5301 = vmatprep.subr.bf16.mxu1 %v5300_v45  ;;  %v5164_v45 = vpack.c.bf16 %v2844_v36, %v2840_v35  ;;  %v5320_v50 = vpack.c.bf16 %v2646_v39, %v2642_v38  ;;  %v2685_v35 = vld [vmem:[#allocation6 + $0xa70] sm:$0xff]  ;;  %v2690_v36 = vld [vmem:[#allocation6 + $0xa98] sm:$0xff] }
 0x352   :  { %v2694_v38 = vld [vmem:[#allocation6 + $0xab8] sm:$0xff]  ;;  %v5342_v39 = vpack.c.bf16 %v2685_v35, %v2681_v60 }
 0x353   :  { %v2750_v9 = vld [vmem:[#allocation6 + $0xc78] sm:$0xff] }
 0x354   :  { %5147 = vmatpush1.bf16.msra.mxu0 %v5146_v16  ;;  %5303 = vmatpush1.bf16.msra.mxu1 %v5302_v56  ;;  %v2852_v16 = vld [vmem:[#allocation6 + $0xfa8] sm:$0xff]  ;;  %v2650_v56 = vld [vmem:[#allocation6 + $0x958] sm:$0xff] }
 0x355   :  { %5149 = vmatprep.subr.bf16.mxu0 %v5148_v57  ;;  %5305 = vmatprep.subr.bf16.mxu1 %v5304_v53  ;;  %v2654_v57 = vld [vmem:[#allocation6 + $0x978] sm:$0xff]  ;;  %v2649_v53 = vld [vmem:[#allocation6 + $0x950] sm:$0xff]  ;;  %v5168_v62 = vpack.c.bf16 %v2852_v16, %v2848_v55 }
 0x356   :  { %v5324_v63 = vpack.c.bf16 %v2654_v57, %v2650_v56  ;;  %v5326_v7 = vpack.c.bf16 %v2653_v1, %v2649_v53  ;;  %v2701_v55 = vld [vmem:[#allocation6 + $0xaf0] sm:$0xff]  ;;  %v2706_v16 = vld [vmem:[#allocation6 + $0xb18] sm:$0xff] }
 0x357   :  { %3305 = vmatmul.mubr.f32.vlgmr.msra.gmra.mrb[6].mxu1 %v2345_v33  ;;  %v5158_v33 = vpack.c.bf16 %v2827_v24, %v2823_v52  ;;  %v2710_v56 = vld [vmem:[#allocation6 + $0xb38] sm:$0xff]  ;;  %v5350_v57 = vpack.c.bf16 %v2701_v55, %v2697_v17  ;;  %v2709_v53 = vld [vmem:[#allocation6 + $0xb30] sm:$0xff]  ;;  %v1197_v55 = vsub.s32 7, %v6123_v27 }
 0x358   :  { %5151 = vmatpush1.bf16.msra.mxu0 %v5150_v3  ;;  %5307 = vmatpush1.bf16.msra.mxu1 %v5306_v4  ;;  %v2860_v3 = vld [vmem:[#allocation6 + $0xfe8] sm:$0xff]  ;;  %v2658_v4 = vld [vmem:[#allocation6 + $0x998] sm:$0xff]  ;;  %v2713_v1 = vld [vmem:[#allocation6 + $0xb50] sm:$0xff] }
 0x359   :  { %3375 = vmatprep.mubr.f32.mxu1 %v2348_v0  ;;  %5309 = vmatprep.subr.bf16.mxu1 %v5308_v8  ;;  %v2831_v0 = vld [vmem:[#allocation6 + $0xf00] sm:$0xff]  ;;  %v2657_v8 = vld [vmem:[#allocation6 + $0x990] sm:$0xff]  ;;  %v5172_v10 = vpack.c.bf16 %v2860_v3, %v2856_v28  ;;  %v5328_v14 = vpack.c.bf16 %v2662_v5, %v2658_v4  ;;  %v2722_v3 = vld [vmem:[#allocation6 + $0xb98] sm:$0xff] }
 0x35a   :  { %5153 = vmatprep.subr.bf16.mxu0 %v5152_v11  ;;  %v5162_v40 = vpack.c.bf16 %v2835_v32, %v2831_v0  ;;  %v2855_v11 = vld [vmem:[#allocation6 + $0xfc0] sm:$0xff]  ;;  %v5330_v52 = vpack.c.bf16 %v2661_v15, %v2657_v8  ;;  %v2686_v0 = vld [vmem:[#allocation6 + $0xa78] sm:$0xff]  ;;  %v2717_v28 = vld [vmem:[#allocation6 + $0xb70] sm:$0xff] }
 0x35b   :  { %v2726_v4 = vld [vmem:[#allocation6 + $0xbb8] sm:$0xff]  ;;  %v5358_v5 = vpack.c.bf16 %v2717_v28, %v2713_v1  ;;  %v2725_v8 = vld [vmem:[#allocation6 + $0xbb0] sm:$0xff] }
 0x35c   :  { %5155 = vmatpush1.bf16.msra.mxu0 %v5154_v21  ;;  %5311 = vmatpush1.bf16.msra.mxu1 %v5310_v22  ;;  %v3460_v21 = vld [vmem:[#allocation9 + $0x18] sm:$0xff]  ;;  %v2729_v15 = vld [vmem:[#allocation6 + $0xbd0] sm:$0xff] }
 0x35d   :  { %5157 = vmatprep.subr.bf16.mxu0 %v5156_v13  ;;  %5313 = vmatprep.subr.bf16.mxu1 %v5312_v2  ;;  %v2666_v22 = vld [vmem:[#allocation6 + $0x9d8] sm:$0xff]  ;;  %v5174_v13 = vpack.c.bf16 %v2859_v12, %v2855_v11  ;;  %v5432_v24 = vpack.c.bf16 %v3460_v21, %v3458_v20  ;;  %v2733_v20 = vld [vmem:[#allocation6 + $0xbf0] sm:$0xff] }
 0x35e   :  { %v5332_v2 = vpack.c.bf16 %v2670_v23, %v2666_v22  ;;  %v2734_v11 = vld [vmem:[#allocation6 + $0xbf8] sm:$0xff]  ;;  %v5366_v23 = vpack.c.bf16 %v2733_v20, %v2729_v15  ;;  %v2785_v1 = vld [vmem:[#allocation6 + $0xd90] sm:$0xff] }
 0x35f   :  { %v2738_v21 = vld [vmem:[#allocation6 + $0xc18] sm:$0xff]  ;;  %v2789_v28 = vld [vmem:[#allocation6 + $0xdb0] sm:$0xff] }
 0x360   :  { %5159 = vmatpush1.bf16.msra.mxu0 %v5158_v33  ;;  %5315 = vmatpush1.bf16.msra.mxu1 %v5314_v29  ;;  %v5336_v33 = vpack.c.bf16 %v2678_v26, %v2674_v25  ;;  %v2673_v29 = vld [vmem:[#allocation6 + $0xa10] sm:$0xff]  ;;  %v2742_v22 = vld [vmem:[#allocation6 + $0xc38] sm:$0xff] }
 0x361   :  { %5161 = vmatprep.subr.bf16.mxu0 %v5160_v59  ;;  %5317 = vmatprep.subr.bf16.mxu1 %v5316_v34  ;;  %v2682_v59 = vld [vmem:[#allocation6 + $0xa58] sm:$0xff]  ;;  %v5338_v32 = vpack.c.bf16 %v2677_v30, %v2673_v29  ;;  %v2745_v26 = vld [vmem:[#allocation6 + $0xc50] sm:$0xff] }
 0x362   :  { %v5340_v34 = vpack.c.bf16 %v2686_v0, %v2682_v59  ;;  %v2758_v29 = vld [vmem:[#allocation6 + $0xcb8] sm:$0xff]  ;;  %v2753_v0 = vld [vmem:[#allocation6 + $0xc90] sm:$0xff] }
 0x363   :  { %v2766_v60 = vld [vmem:[#allocation6 + $0xcf8] sm:$0xff]  ;;  %v2793_v20 = vld [vmem:[#allocation6 + $0xdd0] sm:$0xff] }
 0x364   :  { %5163 = vmatpush1.bf16.msra.mxu0 %v5162_v40  ;;  %5319 = vmatpush1.bf16.msra.mxu1 %v5318_v42  ;;  %v5344_v40 = vpack.c.bf16 %v2694_v38, %v2690_v36  ;;  %v2689_v42 = vld [vmem:[#allocation6 + $0xa90] sm:$0xff]  ;;  %v3464_v15 = vld [vmem:[#allocation9 + $0x38] sm:$0xff] }
 0x365   :  { %5165 = vmatprep.subr.bf16.mxu0 %v5164_v45  ;;  %5321 = vmatprep.subr.bf16.mxu1 %v5320_v50  ;;  %v2698_v45 = vld [vmem:[#allocation6 + $0xad8] sm:$0xff]  ;;  %v5346_v47 = vpack.c.bf16 %v2693_v44, %v2689_v42  ;;  %v2761_v38 = vld [vmem:[#allocation6 + $0xcd0] sm:$0xff] }
 0x366   :  { %v5348_v50 = vpack.c.bf16 %v2702_v46, %v2698_v45  ;;  %v2774_v42 = vld [vmem:[#allocation6 + $0xd38] sm:$0xff]  ;;  %v2773_v45 = vld [vmem:[#allocation6 + $0xd30] sm:$0xff] }
 0x367   :  { %v2778_v46 = vld [vmem:[#allocation6 + $0xd58] sm:$0xff] }
 0x368   :  { %5167 = vmatpush1.bf16.msra.mxu0 %v5166_v58  ;;  %5323 = vmatpush1.bf16.msra.mxu1 %v5322_v61  ;;  %v5352_v58 = vpack.c.bf16 %v2710_v56, %v2706_v16  ;;  %v2705_v61 = vld [vmem:[#allocation6 + $0xb10] sm:$0xff] }
 0x369   :  { %5169 = vmatprep.subr.bf16.mxu0 %v5168_v62  ;;  %5325 = vmatprep.subr.bf16.mxu1 %v5324_v63  ;;  %v2714_v62 = vld [vmem:[#allocation6 + $0xb58] sm:$0xff]  ;;  %v5354_v31 = vpack.c.bf16 %v2709_v53, %v2705_v61  ;;  %v2777_v56 = vld [vmem:[#allocation6 + $0xd50] sm:$0xff] }
 0x36a   :  { %v5356_v63 = vpack.c.bf16 %v2718_v18, %v2714_v62  ;;  %v2790_v61 = vld [vmem:[#allocation6 + $0xdb8] sm:$0xff] }
 0x36b   :  { %v5681_v53 = vld [vmem:[#allocation4] sm:$0xff] }
 0x36c   :  { %5171 = vmatpush1.bf16.msra.mxu0 %v5170_v6  ;;  %5327 = vmatpush1.bf16.msra.mxu1 %v5326_v7  ;;  %v5360_v6 = vpack.c.bf16 %v2726_v4, %v2722_v3  ;;  %v2721_v7 = vld [vmem:[#allocation6 + $0xb90] sm:$0xff]  ;;  %v1198_v18 = vrot.slane %v5681_v53, %v1197_v55  ;;  %v2794_v4 = vld [vmem:[#allocation6 + $0xdd8] sm:$0xff] }
 0x36d   :  { %5173 = vmatprep.subr.bf16.mxu0 %v5172_v10  ;;  %5329 = vmatprep.subr.bf16.mxu1 %v5328_v14  ;;  %v2730_v10 = vld [vmem:[#allocation6 + $0xbd8] sm:$0xff]  ;;  %v5362_v12 = vpack.c.bf16 %v2725_v8, %v2721_v7  ;;  %v3457_v8 = vld [vmem:[#allocation9] sm:$0xff] }
 0x36e   :  { %v5364_v14 = vpack.c.bf16 %v2734_v11, %v2730_v10  ;;  %v2798_v7 = vld [vmem:[#allocation6 + $0xdf8] sm:$0xff] }
 0x36f   :  { %v3459_v10 = vld [vmem:[#allocation9 + $0x10] sm:$0xff] }
 0x370   :  { %5175 = vmatpush1.bf16.msra.mxu0 %v5174_v13  ;;  %5331 = vmatpush1.bf16.msra.mxu1 %v5330_v52  ;;  %v5368_v13 = vpack.c.bf16 %v2742_v22, %v2738_v21  ;;  %v2737_v52 = vld [vmem:[#allocation6 + $0xc10] sm:$0xff] }
 0x371   :  { %5433 = vmatprep.subr.bf16.mxu0 %v5432_v24  ;;  %5333 = vmatprep.subr.bf16.mxu1 %v5332_v2  ;;  %v2741_v24 = vld [vmem:[#allocation6 + $0xc30] sm:$0xff]  ;;  %v2746_v2 = vld [vmem:[#allocation6 + $0xc58] sm:$0xff] }
 0x372   :  { %v5370_v48 = vpack.c.bf16 %v2741_v24, %v2737_v52  ;;  %v5372_v25 = vpack.c.bf16 %v2750_v9, %v2746_v2  ;;  %v2797_v21 = vld [vmem:[#allocation6 + $0xdf0] sm:$0xff]  ;;  %v2806_v52 = vld [vmem:[#allocation6 + $0xe38] sm:$0xff]  ;;  %v5434_v24 = vpack.c.bf16 %v3459_v10, %v3457_v8 }
 0x373   :  { %v2829_v8 = vld [vmem:[#allocation6 + $0xef0] sm:$0xff]  ;;  %v2834_v10 = vld [vmem:[#allocation6 + $0xf18] sm:$0xff] }
 0x374   :  { %5335 = vmatpush1.bf16.msra.mxu1 %v5334_v43  ;;  %v2749_v43 = vld [vmem:[#allocation6 + $0xc70] sm:$0xff] }
 0x375   :  { %5337 = vmatprep.subr.bf16.mxu1 %v5336_v33  ;;  %v2754_v33 = vld [vmem:[#allocation6 + $0xc98] sm:$0xff]  ;;  %v5374_v30 = vpack.c.bf16 %v2749_v43, %v2745_v26  ;;  %v5398_v26 = vpack.c.bf16 %v2797_v21, %v2793_v20  ;;  %v3466_v43 = vld [vmem:[#allocation9 + $0x48] sm:$0xff] }
 0x376   :  { %v5376_v59 = vpack.c.bf16 %v2758_v29, %v2754_v33  ;;  %v3468_v33 = vld [vmem:[#allocation9 + $0x58] sm:$0xff]  ;;  %v3479_v20 = vld [vmem:[#allocation9 + $0xb0] sm:$0xff] }
 0x378   :  { %5339 = vmatpush1.bf16.msra.mxu1 %v5338_v32  ;;  %v2757_v32 = vld [vmem:[#allocation6 + $0xcb0] sm:$0xff] }
 0x379   :  { %5341 = vmatprep.subr.bf16.mxu1 %v5340_v34  ;;  %v2762_v34 = vld [vmem:[#allocation6 + $0xcd8] sm:$0xff]  ;;  %v5378_v35 = vpack.c.bf16 %v2757_v32, %v2753_v0 }
 0x37a   :  { %v5380_v36 = vpack.c.bf16 %v2766_v60, %v2762_v34  ;;  %v2810_v0 = vld [vmem:[#allocation6 + $0xe58] sm:$0xff]  ;;  %v5440_v60 = vpack.c.bf16 %v3468_v33, %v3466_v43  ;;  %v3481_v43 = vld [vmem:[#allocation9 + $0xc0] sm:$0xff] }
 0x37b   :  { %v2814_v32 = vld [vmem:[#allocation6 + $0xe78] sm:$0xff] }
 0x37c   :  { %5343 = vmatpush1.bf16.msra.mxu1 %v5342_v39  ;;  %v2765_v39 = vld [vmem:[#allocation6 + $0xcf0] sm:$0xff] }
 0x37d   :  { %5345 = vmatprep.subr.bf16.mxu1 %v5344_v40  ;;  %v2770_v40 = vld [vmem:[#allocation6 + $0xd18] sm:$0xff]  ;;  %v5382_v44 = vpack.c.bf16 %v2765_v39, %v2761_v38  ;;  %v3470_v39 = vld [vmem:[#allocation9 + $0x68] sm:$0xff] }
 0x37e   :  { %v5384_v51 = vpack.c.bf16 %v2774_v42, %v2770_v40  ;;  %v3472_v40 = vld [vmem:[#allocation9 + $0x78] sm:$0xff]  ;;  %v5404_v42 = vpack.c.bf16 %v2814_v32, %v2810_v0  ;;  %v3483_v33 = vld [vmem:[#allocation9 + $0xd0] sm:$0xff] }
 0x37f   :  { %v2841_v32 = vld [vmem:[#allocation6 + $0xf50] sm:$0xff] }
 0x380   :  { %5347 = vmatpush1.bf16.msra.mxu1 %v5346_v47  ;;  %v2782_v47 = vld [vmem:[#allocation6 + $0xd78] sm:$0xff] }
 0x381   :  { %5349 = vmatprep.subr.bf16.mxu1 %v5348_v50  ;;  %v1193_v50 = vsub.s32 6, %v6123_v27  ;;  %v5388_v16 = vpack.c.bf16 %v2782_v47, %v2778_v46  ;;  %v5444_v47 = vpack.c.bf16 %v3472_v40, %v3470_v39  ;;  %v3485_v39 = vld [vmem:[#allocation9 + $0xe0] sm:$0xff]  ;;  %v3487_v40 = vld [vmem:[#allocation9 + $0xf0] sm:$0xff] }
 0x383   :  { %v1194_v62 = vrot.slane %v5681_v53, %v1193_v50  ;;  %v3469_v50 = vld [vmem:[#allocation9 + $0x60] sm:$0xff]  ;;  %v2826_v53 = vld [vmem:[#allocation6 + $0xed8] sm:$0xff] }
 0x384   :  { %5351 = vmatpush1.bf16.msra.mxu1 %v5350_v57  ;;  %v2781_v57 = vld [vmem:[#allocation6 + $0xd70] sm:$0xff] }
 0x385   :  { %5353 = vmatprep.subr.bf16.mxu1 %v5352_v58  ;;  %v2786_v58 = vld [vmem:[#allocation6 + $0xd98] sm:$0xff] }
 0x388   :  { %5355 = vmatpush1.bf16.msra.mxu1 %v5354_v31  ;;  %v5390_v31 = vpack.c.bf16 %v2781_v57, %v2777_v56  ;;  %v3476_v56 = vld [vmem:[#allocation9 + $0x98] sm:$0xff] }
 0x389   :  { %5357 = vmatprep.subr.bf16.mxu1 %v5356_v63  ;;  %v5392_v63 = vpack.c.bf16 %v2790_v61, %v2786_v58  ;;  %v2817_v58 = vld [vmem:[#allocation6 + $0xe90] sm:$0xff] }
 0x38a   :  { %v2821_v61 = vld [vmem:[#allocation6 + $0xeb0] sm:$0xff] }
 0x38c   :  { %5359 = vmatpush1.bf16.msra.mxu1 %v5358_v5 }
 0x38d   :  { %5361 = vmatprep.subr.bf16.mxu1 %v5360_v6 }
 0x390   :  { %5363 = vmatpush1.bf16.msra.mxu1 %v5362_v12  ;;  %v5394_v12 = vpack.c.bf16 %v2789_v28, %v2785_v1  ;;  %v3475_v1 = vld [vmem:[#allocation9 + $0x90] sm:$0xff]  ;;  %v5410_v28 = vpack.c.bf16 %v2821_v61, %v2817_v58  ;;  %v3494_v58 = vld [vmem:[#allocation9 + $0x128] sm:$0xff]  ;;  %v3496_v61 = vld [vmem:[#allocation9 + $0x138] sm:$0xff] }
 0x391   :  { %5365 = vmatprep.subr.bf16.mxu1 %v5364_v14  ;;  %v3462_v14 = vld [vmem:[#allocation9 + $0x28] sm:$0xff] }
 0x392   :  { %v5436_v9 = vpack.c.bf16 %v3464_v15, %v3462_v14  ;;  %v3477_v15 = vld [vmem:[#allocation9 + $0xa0] sm:$0xff] }
 0x394   :  { %5367 = vmatpush1.bf16.msra.mxu1 %v5366_v23  ;;  %v5396_v23 = vpack.c.bf16 %v2798_v7, %v2794_v4  ;;  %v3480_v4 = vld [vmem:[#allocation9 + $0xb8] sm:$0xff]  ;;  %v2825_v7 = vld [vmem:[#allocation6 + $0xed0] sm:$0xff] }
 0x395   :  { %5369 = vmatprep.subr.bf16.mxu1 %v5368_v13  ;;  %v2802_v13 = vld [vmem:[#allocation6 + $0xe18] sm:$0xff]  ;;  %v5414_v21 = vpack.c.bf16 %v2829_v8, %v2825_v7 }
 0x396   :  { %v5400_v29 = vpack.c.bf16 %v2806_v52, %v2802_v13  ;;  %v2833_v52 = vld [vmem:[#allocation6 + $0xf10] sm:$0xff] }
 0x397   :  { %3376 = vmatmul.mubr.f32.vlgmr.msra.gmra.mrb[6].mxu1 %v2347_v19  ;;  %v2769_v19 = vld [vmem:[#allocation6 + $0xd10] sm:$0xff] }
 0x398   :  { %5371 = vmatpush1.bf16.msra.mxu1 %v5370_v48  ;;  %v5386_v17 = vpack.c.bf16 %v2773_v45, %v2769_v19  ;;  %v3461_v48 = vld [vmem:[#allocation9 + $0x20] sm:$0xff]  ;;  %v2818_v19 = vld [vmem:[#allocation6 + $0xe98] sm:$0xff] }
 0x399   :  { %5373 = vmatprep.subr.bf16.mxu1 %v5372_v25  ;;  %v3463_v25 = vld [vmem:[#allocation9 + $0x30] sm:$0xff] }
 0x39a   :  { %v5438_v34 = vpack.c.bf16 %v3463_v25, %v3461_v48  ;;  %v2822_v45 = vld [vmem:[#allocation6 + $0xeb8] sm:$0xff]  ;;  %v5454_v25 = vpack.c.bf16 %v3479_v20, %v3477_v15 }
 0x39b   :  { %v5408_v57 = vpack.c.bf16 %v2822_v45, %v2818_v19  ;;  %v2846_v48 = vld [vmem:[#allocation6 + $0xf78] sm:$0xff]  ;;  %v2849_v45 = vld [vmem:[#allocation6 + $0xf90] sm:$0xff] }
 0x39c   :  { %5375 = vmatpush1.bf16.msra.mxu1 %v5374_v30  ;;  %v2801_v30 = vld [vmem:[#allocation6 + $0xe10] sm:$0xff] }
 0x39d   :  { %5377 = vmatprep.subr.bf16.mxu1 %v5376_v59  ;;  %v2805_v59 = vld [vmem:[#allocation6 + $0xe30] sm:$0xff] }
 0x39e   :  { %v5402_v38 = vpack.c.bf16 %v2805_v59, %v2801_v30  ;;  %v3486_v30 = vld [vmem:[#allocation9 + $0xe8] sm:$0xff]  ;;  %v3488_v59 = vld [vmem:[#allocation9 + $0xf8] sm:$0xff] }
 0x3a0   :  { %5379 = vmatpush1.bf16.msra.mxu1 %v5378_v35  ;;  %v3465_v35 = vld [vmem:[#allocation9 + $0x40] sm:$0xff] }
 0x3a1   :  { %5381 = vmatprep.subr.bf16.mxu1 %v5380_v36  ;;  %v3467_v36 = vld [vmem:[#allocation9 + $0x50] sm:$0xff] }
 0x3a2   :  { %v5442_v46 = vpack.c.bf16 %v3467_v36, %v3465_v35  ;;  %v2854_v35 = vld [vmem:[#allocation6 + $0xfb8] sm:$0xff]  ;;  %v5458_v36 = vpack.c.bf16 %v3483_v33, %v3481_v43 }
 0x3a4   :  { %5383 = vmatpush1.bf16.msra.mxu1 %v5382_v44  ;;  %v2809_v44 = vld [vmem:[#allocation6 + $0xe50] sm:$0xff] }
 0x3a5   :  { %5385 = vmatprep.subr.bf16.mxu1 %v5384_v51  ;;  %v2813_v51 = vld [vmem:[#allocation6 + $0xe70] sm:$0xff] }
 0x3a6   :  { %v5406_v55 = vpack.c.bf16 %v2813_v51, %v2809_v44  ;;  %v3490_v44 = vld [vmem:[#allocation9 + $0x108] sm:$0xff]  ;;  %v3492_v51 = vld [vmem:[#allocation9 + $0x118] sm:$0xff] }
 0x3a8   :  { %5387 = vmatpush1.bf16.msra.mxu1 %v5386_v17  ;;  %v3471_v17 = vld [vmem:[#allocation9 + $0x70] sm:$0xff] }
 0x3a9   :  { %5389 = vmatprep.subr.bf16.mxu1 %v5388_v16  ;;  %v3474_v16 = vld [vmem:[#allocation9 + $0x88] sm:$0xff] }
 0x3aa   :  { %v2338_v3 = vpop.f32.mrb[4].mxu1 }
 0x3ab   :  { %v6214_v5 = vadd.f32 %v2338_v3, %v1194_v62  ;;  %v2340_v6 = vpop.f32.mrb[5].mxu1  ;;  %v2830_v62 = vld [vmem:[#allocation6 + $0xef8] sm:$0xff]  ;;  %v3478_v3 = vld [vmem:[#allocation9 + $0xa8] sm:$0xff] }
 0x3ac   :  { %v5601_v11 = vadd.f32 %v2340_v6, %v1198_v18  ;;  %5391 = vmatpush1.bf16.msra.mxu1 %v5390_v31  ;;  %v5446_v18 = vpack.c.bf16 %v3471_v17, %v3469_v50  ;;  %v5448_v31 = vpack.c.bf16 %v3476_v56, %v3474_v16  ;;  %v5412_v6 = vpack.c.bf16 %v2830_v62, %v2826_v53  ;;  %v2862_v50 = vld [vmem:[#allocation6 + $0xff8] sm:$0xff]  ;;  %v3489_v16 = vld [vmem:[#allocation9 + $0x100] sm:$0xff]  ;;  %v2857_v62 = vld [vmem:[#allocation6 + $0xfd0] sm:$0xff] }
 0x3ad   :  { %5393 = vmatprep.subr.bf16.mxu1 %v5392_v63  ;;  %v2349_v2 = vmax.f32 %v6214_v5, 0.0  ;;  %v3473_v63 = vld [vmem:[#allocation9 + $0x80] sm:$0xff]  ;;  %v5452_v14 = vpack.c.bf16 %v3480_v4, %v3478_v3  ;;  %v5462_v17 = vpack.c.bf16 %v3487_v40, %v3485_v39  ;;  %v3491_v56 = vld [vmem:[#allocation9 + $0x110] sm:$0xff]  ;;  %v3498_v4 = vld [vmem:[#allocation9 + $0x148] sm:$0xff] }
 0x3ae   :  { %v2350_v22 = vmax.f32 %v5601_v11, 0.0  ;;  %v2838_v11 = vld [vmem:[#allocation6 + $0xf38] sm:$0xff]  ;;  %v3509_v5 = vld [vmem:[#allocation9 + $0x1a0] sm:$0xff] }
 0x3af   :  { %v5416_v13 = vpack.c.bf16 %v2838_v11, %v2834_v10  ;;  %v3497_v10 = vld [vmem:[#allocation9 + $0x140] sm:$0xff]  ;;  %v3499_v11 = vld [vmem:[#allocation9 + $0x150] sm:$0xff] }
 0x3b0   :  { %3162 = vmatprep.mubr.f32.mxu0 %v2350_v22  ;;  %5395 = vmatpush1.bf16.msra.mxu1 %v5394_v12  ;;  %v5450_v12 = vpack.c.bf16 %v3475_v1, %v3473_v63  ;;  %v5468_v63 = vpack.c.bf16 %v3496_v61, %v3494_v58  ;;  %v3493_v1 = vld [vmem:[#allocation9 + $0x120] sm:$0xff]  ;;  %v5474_v15 = vpack.c.bf16 %v3499_v11, %v3497_v10  ;;  %v3519_v40 = vld [vmem:[#allocation9 + $0x1f0] sm:$0xff] }
 0x3b1   :  { %3446 = vmatprep.mubr.f32.mxu1 %v2350_v22  ;;  %3163 = vmatmul.mubr.f32.vlgmr.msra.gmra.mrb[4].mxu0 %v2349_v2  ;;  %v3482_v22 = vld [vmem:[#allocation9 + $0xc8] sm:$0xff]  ;;  %v3517_v39 = vld [vmem:[#allocation9 + $0x1e0] sm:$0xff]  ;;  %v3743_v58 = vld [vmem:[#allocation12 + $0x10] sm:$0xff] }
 0x3b2   :  { %5397 = vmatprep.subr.bf16.mxu1 %v5396_v23  ;;  %5435 = vmatpush1.bf16.msra.mxu0 %v5434_v24  ;;  %v3484_v23 = vld [vmem:[#allocation9 + $0xd8] sm:$0xff]  ;;  %v2837_v24 = vld [vmem:[#allocation6 + $0xf30] sm:$0xff]  ;;  %v3765_v10 = vld [vmem:[#allocation12 + $0xc0] sm:$0xff] }
 0x3b3   :  { %5437 = vmatprep.subr.bf16.mxu0 %v5436_v9  ;;  %v2842_v9 = vld [vmem:[#allocation6 + $0xf58] sm:$0xff]  ;;  %v3766_v11 = vld [vmem:[#allocation12 + $0xc8] sm:$0xff] }
 0x3b4   :  { %5399 = vmatpush1.bf16.msra.mxu1 %v5398_v26  ;;  %v5456_v26 = vpack.c.bf16 %v3484_v23, %v3482_v22  ;;  %v5420_v0 = vpack.c.bf16 %v2846_v48, %v2842_v9  ;;  %v3503_v22 = vld [vmem:[#allocation9 + $0x170] sm:$0xff]  ;;  %v3506_v23 = vld [vmem:[#allocation9 + $0x188] sm:$0xff]  ;;  %v3505_v9 = vld [vmem:[#allocation9 + $0x180] sm:$0xff] }
 0x3b5   :  { %5401 = vmatprep.subr.bf16.mxu1 %v5400_v29  ;;  %v5418_v29 = vpack.c.bf16 %v2837_v24, %v2833_v52  ;;  %v3507_v48 = vld [vmem:[#allocation9 + $0x190] sm:$0xff]  ;;  %v3744_v61 = vld [vmem:[#allocation12 + $0x18] sm:$0xff] }
 0x3b6   :  { %5439 = vmatpush1.bf16.msra.mxu0 %v5438_v34  ;;  %v2845_v34 = vld [vmem:[#allocation6 + $0xf70] sm:$0xff]  ;;  %v5482_v43 = vpack.c.bf16 %v3507_v48, %v3505_v9  ;;  %v3769_v9 = vld [vmem:[#allocation12 + $0xe0] sm:$0xff] }
 0x3b7   :  { %5441 = vmatprep.subr.bf16.mxu0 %v5440_v60  ;;  %v2850_v60 = vld [vmem:[#allocation6 + $0xf98] sm:$0xff]  ;;  %v3770_v48 = vld [vmem:[#allocation12 + $0xe8] sm:$0xff] }
 0x3b8   :  { %5403 = vmatpush1.bf16.msra.mxu1 %v5402_v38  ;;  %v5460_v38 = vpack.c.bf16 %v3488_v59, %v3486_v30  ;;  %v5424_v19 = vpack.c.bf16 %v2854_v35, %v2850_v60  ;;  %v3516_v30 = vld [vmem:[#allocation9 + $0x1d8] sm:$0xff]  ;;  %v3518_v35 = vld [vmem:[#allocation9 + $0x1e8] sm:$0xff] }
 0x3b9   :  { %5405 = vmatprep.subr.bf16.mxu1 %v5404_v42  ;;  %v5422_v42 = vpack.c.bf16 %v2845_v34, %v2841_v32  ;;  %v3513_v32 = vld [vmem:[#allocation9 + $0x1c0] sm:$0xff]  ;;  %v3515_v34 = vld [vmem:[#allocation9 + $0x1d0] sm:$0xff] }
 0x3ba   :  { %5443 = vmatpush1.bf16.msra.mxu0 %v5442_v46  ;;  %v2853_v46 = vld [vmem:[#allocation6 + $0xfb0] sm:$0xff]  ;;  %v5490_v60 = vpack.c.bf16 %v3515_v34, %v3513_v32 }
 0x3bb   :  { %5445 = vmatprep.subr.bf16.mxu0 %v5444_v47  ;;  %v2858_v47 = vld [vmem:[#allocation6 + $0xfd8] sm:$0xff]  ;;  %v3526_v34 = vld [vmem:[#allocation9 + $0x228] sm:$0xff] }
 0x3bc   :  { %5407 = vmatpush1.bf16.msra.mxu1 %v5406_v55  ;;  %v5464_v55 = vpack.c.bf16 %v3492_v51, %v3490_v44  ;;  %v5428_v53 = vpack.c.bf16 %v2862_v50, %v2858_v47  ;;  %v3522_v44 = vld [vmem:[#allocation9 + $0x208] sm:$0xff]  ;;  %v3524_v51 = vld [vmem:[#allocation9 + $0x218] sm:$0xff] }
 0x3bd   :  { %5409 = vmatprep.subr.bf16.mxu1 %v5408_v57  ;;  %v5426_v57 = vpack.c.bf16 %v2853_v46, %v2849_v45  ;;  %v3757_v45 = vld [vmem:[#allocation12 + $0x80] sm:$0xff]  ;;  %v3758_v46 = vld [vmem:[#allocation12 + $0x88] sm:$0xff] }
 0x3be   :  { %5447 = vmatpush1.bf16.msra.mxu0 %v5446_v18  ;;  %v2861_v18 = vld [vmem:[#allocation6 + $0xff0] sm:$0xff]  ;;  %v3741_v47 = vld [vmem:[#allocation12] sm:$0xff]  ;;  %v5560_v50 = vpack.c.bf16 %v3758_v46, %v3757_v45 }
 0x3bf   :  { %5449 = vmatprep.subr.bf16.mxu0 %v5448_v31  ;;  %v5466_v31 = vpack.c.bf16 %v3491_v56, %v3489_v16  ;;  %v5430_v3 = vpack.c.bf16 %v2861_v18, %v2857_v62  ;;  %v3760_v16 = vld [vmem:[#allocation12 + $0x98] sm:$0xff]  ;;  %v3762_v62 = vld [vmem:[#allocation12 + $0xa8] sm:$0xff]  ;;  %v5566_v18 = vpack.c.bf16 %v3744_v61, %v3743_v58 }
 0x3c0   :  { %5411 = vmatpush1.bf16.msra.mxu1 %v5410_v28  ;;  %v3495_v28 = vld [vmem:[#allocation9 + $0x130] sm:$0xff]  ;;  %v3529_v46 = vld [vmem:[#allocation9 + $0x240] sm:$0xff]  ;;  %v3538_v58 = vld [vmem:[#allocation9 + $0x288] sm:$0xff] }
 0x3c1   :  { %5413 = vmatprep.subr.bf16.mxu1 %v5412_v6  ;;  %v3500_v6 = vld [vmem:[#allocation9 + $0x158] sm:$0xff]  ;;  %v5470_v7 = vpack.c.bf16 %v3495_v28, %v3493_v1  ;;  %v3746_v1 = vld [vmem:[#allocation12 + $0x28] sm:$0xff] }
 0x3c2   :  { %5451 = vmatpush1.bf16.msra.mxu0 %v5450_v12  ;;  %v5472_v8 = vpack.c.bf16 %v3500_v6, %v3498_v4  ;;  %v3502_v12 = vld [vmem:[#allocation9 + $0x168] sm:$0xff]  ;;  %v3763_v28 = vld [vmem:[#allocation12 + $0xb0] sm:$0xff] }
 0x3c3   :  { %5453 = vmatprep.subr.bf16.mxu0 %v5452_v14  ;;  %v3504_v14 = vld [vmem:[#allocation9 + $0x178] sm:$0xff] }
 0x3c4   :  { %5415 = vmatpush1.bf16.msra.mxu1 %v5414_v21  ;;  %v5476_v20 = vpack.c.bf16 %v3504_v14, %v3502_v12  ;;  %v3501_v21 = vld [vmem:[#allocation9 + $0x160] sm:$0xff]  ;;  %v5576_v14 = vpack.c.bf16 %v3766_v11, %v3765_v10  ;;  %v3540_v61 = vld [vmem:[#allocation9 + $0x298] sm:$0xff] }
 0x3c5   :  { %5417 = vmatprep.subr.bf16.mxu1 %v5416_v13  ;;  %v3508_v13 = vld [vmem:[#allocation9 + $0x198] sm:$0xff]  ;;  %v5478_v52 = vpack.c.bf16 %v3503_v22, %v3501_v21 }
 0x3c6   :  { %5455 = vmatpush1.bf16.msra.mxu0 %v5454_v25  ;;  %v5480_v24 = vpack.c.bf16 %v3508_v13, %v3506_v23  ;;  %v3510_v25 = vld [vmem:[#allocation9 + $0x1a8] sm:$0xff]  ;;  %v3767_v21 = vld [vmem:[#allocation12 + $0xd0] sm:$0xff]  ;;  %v3768_v22 = vld [vmem:[#allocation12 + $0xd8] sm:$0xff] }
 0x3c7   :  { %5457 = vmatprep.subr.bf16.mxu0 %v5456_v26  ;;  %v3512_v26 = vld [vmem:[#allocation9 + $0x1b8] sm:$0xff]  ;;  %v5580_v13 = vpack.c.bf16 %v3768_v22, %v3767_v21 }
 0x3c8   :  { %5419 = vmatpush1.bf16.msra.mxu1 %v5418_v29  ;;  %v5484_v33 = vpack.c.bf16 %v3512_v26, %v3510_v25  ;;  %v3514_v29 = vld [vmem:[#allocation9 + $0x1c8] sm:$0xff]  ;;  %v5584_v26 = vpack.c.bf16 %v3770_v48, %v3769_v9 }
 0x3c9   :  { %5421 = vmatprep.subr.bf16.mxu1 %v5420_v0  ;;  %v5488_v0 = vpack.c.bf16 %v3516_v30, %v3514_v29 }
 0x3ca   :  { %5459 = vmatpush1.bf16.msra.mxu0 %v5458_v36  ;;  %v3520_v36 = vld [vmem:[#allocation9 + $0x1f8] sm:$0xff] }
 0x3cb   :  { %5461 = vmatprep.subr.bf16.mxu0 %v5460_v38  ;;  %v5492_v38 = vpack.c.bf16 %v3520_v36, %v3518_v35 }
 0x3cc   :  { %5423 = vmatpush1.bf16.msra.mxu1 %v5422_v42  ;;  %v5494_v42 = vpack.c.bf16 %v3519_v40, %v3517_v39  ;;  %v3525_v40 = vld [vmem:[#allocation9 + $0x220] sm:$0xff] }
 0x3cd   :  { %5425 = vmatprep.subr.bf16.mxu1 %v5424_v19  ;;  %v5496_v19 = vpack.c.bf16 %v3524_v51, %v3522_v44  ;;  %v3530_v44 = vld [vmem:[#allocation9 + $0x248] sm:$0xff]  ;;  %v3532_v51 = vld [vmem:[#allocation9 + $0x258] sm:$0xff] }
 0x3ce   :  { %5463 = vmatpush1.bf16.msra.mxu0 %v5462_v17  ;;  %v3742_v17 = vld [vmem:[#allocation12 + $0x8] sm:$0xff]  ;;  %v5504_v45 = vpack.c.bf16 %v3532_v51, %v3530_v44 }
 0x3cf   :  { %5465 = vmatprep.subr.bf16.mxu0 %v5464_v55  ;;  %v3759_v55 = vld [vmem:[#allocation12 + $0x90] sm:$0xff]  ;;  %v5562_v56 = vpack.c.bf16 %v3742_v17, %v3741_v47  ;;  %v3566_v51 = vld [vmem:[#allocation9 + $0x368] sm:$0xff] }
 0x3d0   :  { %5427 = vmatpush1.bf16.msra.mxu1 %v5426_v57  ;;  %v5564_v57 = vpack.c.bf16 %v3760_v16, %v3759_v55  ;;  %v3531_v47 = vld [vmem:[#allocation9 + $0x250] sm:$0xff]  ;;  %v3536_v17 = vld [vmem:[#allocation9 + $0x278] sm:$0xff] }
 0x3d1   :  { %5429 = vmatprep.subr.bf16.mxu1 %v5428_v53  ;;  %v3761_v53 = vld [vmem:[#allocation12 + $0xa0] sm:$0xff]  ;;  %v5506_v55 = vpack.c.bf16 %v3531_v47, %v3529_v46  ;;  %v3567_v47 = vld [vmem:[#allocation9 + $0x370] sm:$0xff] }
 0x3d2   :  { %5467 = vmatpush1.bf16.msra.mxu0 %v5466_v31  ;;  %v5568_v31 = vpack.c.bf16 %v3762_v62, %v3761_v53  ;;  %v5512_v62 = vpack.c.bf16 %v3540_v61, %v3538_v58  ;;  %v3565_v46 = vld [vmem:[#allocation9 + $0x360] sm:$0xff]  ;;  %v3574_v58 = vld [vmem:[#allocation9 + $0x3a8] sm:$0xff]  ;;  %v3576_v61 = vld [vmem:[#allocation9 + $0x3b8] sm:$0xff] }
 0x3d3   :  { %5469 = vmatprep.subr.bf16.mxu0 %v5468_v63  ;;  %v3745_v63 = vld [vmem:[#allocation12 + $0x20] sm:$0xff] }
 0x3d4   :  { %5431 = vmatpush1.bf16.msra.mxu1 %v5430_v3  ;;  %v3764_v3 = vld [vmem:[#allocation12 + $0xb8] sm:$0xff]  ;;  %v5570_v4 = vpack.c.bf16 %v3746_v1, %v3745_v63  ;;  %v3542_v63 = vld [vmem:[#allocation9 + $0x2a8] sm:$0xff] }
 0x3d5   :  { %5561 = vmatprep.subr.bf16.mxu1 %v5560_v50  ;;  %v5572_v6 = vpack.c.bf16 %v3764_v3, %v3763_v28  ;;  %v3534_v50 = vld [vmem:[#allocation9 + $0x268] sm:$0xff]  ;;  %v3544_v1 = vld [vmem:[#allocation9 + $0x2b8] sm:$0xff] }
 0x3d6   :  { %5471 = vmatpush1.bf16.msra.mxu0 %v5470_v7  ;;  %v3747_v7 = vld [vmem:[#allocation12 + $0x30] sm:$0xff]  ;;  %v5508_v16 = vpack.c.bf16 %v3536_v17, %v3534_v50  ;;  %v5516_v3 = vpack.c.bf16 %v3544_v1, %v3542_v63  ;;  %v3570_v50 = vld [vmem:[#allocation9 + $0x388] sm:$0xff] }
 0x3d7   :  { %3447 = vmatmul.mubr.f32.vlgmr.msra.gmra.mrb[6].mxu1 %v2349_v2  ;;  %5473 = vmatprep.subr.bf16.mxu0 %v5472_v8  ;;  %v3511_v2 = vld [vmem:[#allocation9 + $0x1b0] sm:$0xff]  ;;  %v3748_v8 = vld [vmem:[#allocation12 + $0x38] sm:$0xff]  ;;  %v3578_v63 = vld [vmem:[#allocation9 + $0x3c8] sm:$0xff] }
 0x3d8   :  { %v5486_v59 = vpack.c.bf16 %v3511_v2, %v3509_v5  ;;  %5563 = vmatpush3.bf16.msra.mxu1 %v5562_v56  ;;  %v5574_v12 = vpack.c.bf16 %v3748_v8, %v3747_v7  ;;  %v3533_v56 = vld [vmem:[#allocation9 + $0x260] sm:$0xff]  ;;  %v3546_v7 = vld [vmem:[#allocation9 + $0x2c8] sm:$0xff]  ;;  %v3548_v8 = vld [vmem:[#allocation9 + $0x2d8] sm:$0xff] }
 0x3d9   :  { %5565 = vmatprep.subr.bf16.mxu1 %v5564_v57  ;;  %v3535_v57 = vld [vmem:[#allocation9 + $0x270] sm:$0xff]  ;;  %v5520_v11 = vpack.c.bf16 %v3548_v8, %v3546_v7  ;;  %v3572_v17 = vld [vmem:[#allocation9 + $0x398] sm:$0xff]  ;;  %v3582_v7 = vld [vmem:[#allocation9 + $0x3e8] sm:$0xff] }
 0x3da   :  { %5475 = vmatpush1.bf16.msra.mxu0 %v5474_v15  ;;  %v3749_v15 = vld [vmem:[#allocation12 + $0x40] sm:$0xff]  ;;  %v5510_v53 = vpack.c.bf16 %v3535_v57, %v3533_v56  ;;  %v3571_v57 = vld [vmem:[#allocation9 + $0x390] sm:$0xff]  ;;  %v3580_v1 = vld [vmem:[#allocation9 + $0x3d8] sm:$0xff] }
 0x3db   :  { %5477 = vmatprep.subr.bf16.mxu0 %v5476_v20  ;;  %v3750_v20 = vld [vmem:[#allocation12 + $0x48] sm:$0xff]  ;;  %v3569_v56 = vld [vmem:[#allocation9 + $0x380] sm:$0xff]  ;;  %v3584_v8 = vld [vmem:[#allocation9 + $0x3f8] sm:$0xff] }
 0x3dc   :  { %5567 = vmatpush3.bf16.msra.mxu1 %v5566_v18  ;;  %v5578_v23 = vpack.c.bf16 %v3750_v20, %v3749_v15  ;;  %v3537_v18 = vld [vmem:[#allocation9 + $0x280] sm:$0xff]  ;;  %v3550_v15 = vld [vmem:[#allocation9 + $0x2e8] sm:$0xff]  ;;  %v3552_v20 = vld [vmem:[#allocation9 + $0x2f8] sm:$0xff] }
 0x3dd   :  { %5569 = vmatprep.subr.bf16.mxu1 %v5568_v31  ;;  %v3539_v31 = vld [vmem:[#allocation9 + $0x290] sm:$0xff]  ;;  %v5524_v22 = vpack.c.bf16 %v3552_v20, %v3550_v15 }
 0x3de   :  { %5479 = vmatpush1.bf16.msra.mxu0 %v5478_v52  ;;  %v3751_v52 = vld [vmem:[#allocation12 + $0x50] sm:$0xff]  ;;  %v5514_v28 = vpack.c.bf16 %v3539_v31, %v3537_v18  ;;  %v3573_v18 = vld [vmem:[#allocation9 + $0x3a0] sm:$0xff] }
 0x3df   :  { %5481 = vmatprep.subr.bf16.mxu0 %v5480_v24  ;;  %v3752_v24 = vld [vmem:[#allocation12 + $0x58] sm:$0xff]  ;;  %v3575_v31 = vld [vmem:[#allocation9 + $0x3b0] sm:$0xff] }
 0x3e0   :  { %5571 = vmatpush3.bf16.msra.mxu1 %v5570_v4  ;;  %v5582_v25 = vpack.c.bf16 %v3752_v24, %v3751_v52  ;;  %v3541_v4 = vld [vmem:[#allocation9 + $0x2a0] sm:$0xff]  ;;  %v3554_v52 = vld [vmem:[#allocation9 + $0x308] sm:$0xff]  ;;  %v3556_v24 = vld [vmem:[#allocation9 + $0x318] sm:$0xff] }
 0x3e1   :  { %5573 = vmatprep.subr.bf16.mxu1 %v5572_v6  ;;  %v3543_v6 = vld [vmem:[#allocation9 + $0x2b0] sm:$0xff]  ;;  %v5528_v48 = vpack.c.bf16 %v3556_v24, %v3554_v52 }
 0x3e2   :  { %5483 = vmatpush1.bf16.msra.mxu0 %v5482_v43  ;;  %v6221_v43 = vld [vmem:[#allocation7] sm:$0xf]  ;;  %v5518_v10 = vpack.c.bf16 %v3543_v6, %v3541_v4  ;;  %v3577_v4 = vld [vmem:[#allocation9 + $0x3c0] sm:$0xff]  ;;  %v3579_v6 = vld [vmem:[#allocation9 + $0x3d0] sm:$0xff] }
 0x3e3   :  { %5485 = vmatprep.subr.bf16.mxu0 %v5484_v33  ;;  %v2868_v33 = vrot.slane %v6221_v43, %v6126_v41  ;;  %v2872_v5 = vrot.slane %v6221_v43, %v6129_v49  ;;  %v3583_v15 = vld [vmem:[#allocation9 + $0x3f0] sm:$0xff] }
 0x3e4   :  { %5575 = vmatpush3.bf16.msra.mxu1 %v5574_v12  ;;  %v3545_v12 = vld [vmem:[#allocation9 + $0x2c0] sm:$0xff]  ;;  %v3771_v24 = vld [vmem:[#allocation12 + $0xf0] sm:$0xff] }
 0x3e5   :  { %5577 = vmatprep.subr.bf16.mxu1 %v5576_v14  ;;  %v3547_v14 = vld [vmem:[#allocation9 + $0x2d0] sm:$0xff] }
 0x3e6   :  { %5487 = vmatpush1.bf16.msra.mxu0 %v5486_v59  ;;  %v3521_v59 = vld [vmem:[#allocation9 + $0x200] sm:$0xff]  ;;  %v5522_v21 = vpack.c.bf16 %v3547_v14, %v3545_v12  ;;  %v5556_v12 = vpack.c.bf16 %v3584_v8, %v3582_v7 }
 0x3e7   :  { %5489 = vmatprep.subr.bf16.mxu0 %v5488_v0  ;;  %v3523_v0 = vld [vmem:[#allocation9 + $0x210] sm:$0xff]  ;;  %v3581_v14 = vld [vmem:[#allocation9 + $0x3e0] sm:$0xff] }
 0x3e8   :  { %5579 = vmatpush3.bf16.msra.mxu1 %v5578_v23  ;;  %v5498_v36 = vpack.c.bf16 %v3523_v0, %v3521_v59  ;;  %v3549_v23 = vld [vmem:[#allocation9 + $0x2e0] sm:$0xff]  ;;  %v3559_v0 = vld [vmem:[#allocation9 + $0x330] sm:$0xff]  ;;  %v5558_v20 = vpack.c.bf16 %v3583_v15, %v3581_v14 }
 0x3e9   :  { %5581 = vmatprep.subr.bf16.mxu1 %v5580_v13  ;;  %v3551_v13 = vld [vmem:[#allocation9 + $0x2f0] sm:$0xff]  ;;  %v3557_v59 = vld [vmem:[#allocation9 + $0x320] sm:$0xff] }
 0x3ea   :  { %5491 = vmatpush1.bf16.msra.mxu0 %v5490_v60  ;;  %v3528_v60 = vld [vmem:[#allocation9 + $0x238] sm:$0xff]  ;;  %v5526_v9 = vpack.c.bf16 %v3551_v13, %v3549_v23  ;;  %v3753_v23 = vld [vmem:[#allocation12 + $0x60] sm:$0xff]  ;;  %v3754_v13 = vld [vmem:[#allocation12 + $0x68] sm:$0xff] }
 0x3eb   :  { %5493 = vmatprep.subr.bf16.mxu0 %v5492_v38  ;;  %v5500_v39 = vpack.c.bf16 %v3528_v60, %v3526_v34  ;;  %v3562_v34 = vld [vmem:[#allocation9 + $0x348] sm:$0xff]  ;;  %v3564_v60 = vld [vmem:[#allocation9 + $0x358] sm:$0xff]  ;;  %v5586_v52 = vpack.c.bf16 %v3754_v13, %v3753_v23 }
 0x3ec   :  { %5583 = vmatpush3.bf16.msra.mxu1 %v5582_v25  ;;  %v3553_v25 = vld [vmem:[#allocation9 + $0x300] sm:$0xff] }
 0x3ed   :  { %5585 = vmatprep.subr.bf16.mxu1 %v5584_v26  ;;  %v3555_v26 = vld [vmem:[#allocation9 + $0x310] sm:$0xff] }
 0x3ee   :  { %5495 = vmatpush1.bf16.msra.mxu0 %v5494_v42  ;;  %v3527_v42 = vld [vmem:[#allocation9 + $0x230] sm:$0xff] }
 0x3ef   :  { %5497 = vmatprep.subr.bf16.mxu0 %v5496_v19  ;;  %v5502_v19 = vpack.c.bf16 %v3527_v42, %v3525_v40  ;;  %v3561_v40 = vld [vmem:[#allocation9 + $0x340] sm:$0xff]  ;;  %v3563_v42 = vld [vmem:[#allocation9 + $0x350] sm:$0xff] }
 0x3f0   :  { %5587 = vmatpush3.bf16.msra.mxu1 %v5586_v52 }
 0x484   :  { %v3164_v2 = vpop.f32.mrb[4].mxu0 }
 0x485   :  { %v5602_v29 = vadd.f32 %v3164_v2, %v2868_v33  ;;  %v3166_v30 = vpop.f32.mrb[5].mxu0  ;;  %v3558_v33 = vld [vmem:[#allocation9 + $0x328] sm:$0xff]  ;;  %v2880_v2 = vrot.slane %v6221_v43, %v1181_v37  ;;  %v5538_v37 = vpack.c.bf16 %v3563_v42, %v3561_v40 }
 0x486   :  { %v5603_v32 = vadd.f32 %v3166_v30, %v2872_v5  ;;  %v3560_v5 = vld [vmem:[#allocation9 + $0x338] sm:$0xff] }
 0x487   :  { %v3453_v38 = vmax.f32 %v5602_v29, 0.0  ;;  %v5530_v29 = vpack.c.bf16 %v3555_v26, %v3553_v25  ;;  %v5532_v30 = vpack.c.bf16 %v3560_v5, %v3558_v33  ;;  %v3585_v25 = vld [vmem:[#allocation10] sm:$0x3] }
 0x488   :  { %v3454_v35 = vmax.f32 %v5603_v32, 0.0  ;;  %v3590_v26 = vrot.slane %v3585_v25, %v6126_v41  ;;  %v3594_v33 = vrot.slane %v3585_v25, %v6129_v49 }
 0x48a   :  { %3661 = vmatprep.mubr.f32.mxu0 %v3454_v35 }
 0x48b   :  { %3662 = vmatmul.mubr.f32.vlgmr.msra.gmra.mrb[6].mxu0 %v3453_v38  ;;  %v5534_v38 = vpack.c.bf16 %v3559_v0, %v3557_v59 }
 0x48c   :  { %5499 = vmatpush1.bf16.msra.mxu0 %v5498_v36 }
 0x48d   :  { %5501 = vmatprep.subr.bf16.mxu0 %v5500_v39  ;;  %v5536_v39 = vpack.c.bf16 %v3564_v60, %v3562_v34  ;;  %v3860_v34 = vld [vmem:[#allocation13] ss:$0 sm:$0xff] }
 0x490   :  { %5503 = vmatpush1.bf16.msra.mxu0 %v5502_v19  ;;  %v3568_v19 = vld [vmem:[#allocation9 + $0x378] sm:$0xff] }
 0x491   :  { %5505 = vmatprep.subr.bf16.mxu0 %v5504_v45  ;;  %v5540_v45 = vpack.c.bf16 %v3568_v19, %v3566_v51 }
 0x494   :  { %5507 = vmatpush1.bf16.msra.mxu0 %v5506_v55  ;;  %v5542_v55 = vpack.c.bf16 %v3567_v47, %v3565_v46 }
 0x495   :  { %5509 = vmatprep.subr.bf16.mxu0 %v5508_v16  ;;  %v5544_v16 = vpack.c.bf16 %v3572_v17, %v3570_v50 }
 0x498   :  { %5511 = vmatpush1.bf16.msra.mxu0 %v5510_v53  ;;  %v5546_v53 = vpack.c.bf16 %v3571_v57, %v3569_v56 }
 0x499   :  { %5513 = vmatprep.subr.bf16.mxu0 %v5512_v62  ;;  %v5548_v62 = vpack.c.bf16 %v3576_v61, %v3574_v58 }
 0x49c   :  { %5515 = vmatpush1.bf16.msra.mxu0 %v5514_v28  ;;  %v5550_v28 = vpack.c.bf16 %v3575_v31, %v3573_v18 }
 0x49d   :  { %5517 = vmatprep.subr.bf16.mxu0 %v5516_v3  ;;  %v5552_v3 = vpack.c.bf16 %v3580_v1, %v3578_v63 }
 0x4a0   :  { %5519 = vmatpush1.bf16.msra.mxu0 %v5518_v10  ;;  %v5554_v10 = vpack.c.bf16 %v3579_v6, %v3577_v4 }
 0x4a1   :  { %5521 = vmatprep.subr.bf16.mxu0 %v5520_v11  ;;  %v2876_v11 = vrot.slane %v6221_v43, %v1177_v54  ;;  %v3756_v54 = vld [vmem:[#allocation12 + $0x78] sm:$0xff] }
 0x4a4   :  { %5523 = vmatpush1.bf16.msra.mxu0 %v5522_v21 }
 0x4a5   :  { %5525 = vmatprep.subr.bf16.mxu0 %v5524_v22 }
 0x4a8   :  { %5527 = vmatpush1.bf16.msra.mxu0 %v5526_v9  ;;  %v3772_v9 = vld [vmem:[#allocation12 + $0xf8] sm:$0xff] }
 0x4a9   :  { %5529 = vmatprep.subr.bf16.mxu0 %v5528_v48  ;;  %v5588_v27 = vpack.c.bf16 %v3772_v9, %v3771_v24  ;;  %v3755_v48 = vld [vmem:[#allocation12 + $0x70] sm:$0xff] }
 0x4aa   :  { %v3448_v32 = vpop.f32.mrb[6].mxu1  ;;  %v5590_v43 = vpack.c.bf16 %v3756_v54, %v3755_v48 }
 0x4ab   :  { %v3450_v35 = vpop.f32.mrb[7].mxu1  ;;  %v5604_v21 = vadd.f32 %v3448_v32, %v2876_v11  ;;  %5589 = vmatprep.subr.bf16.mxu1 %v5588_v27 }
 0x4ac   :  { %v5605_v36 = vadd.f32 %v3450_v35, %v2880_v2  ;;  %5531 = vmatpush1.bf16.msra.mxu0 %v5530_v29  ;;  %5591 = vmatpush3.bf16.msra.mxu1 %v5590_v43 }
 0x4ad   :  { %5533 = vmatprep.subr.bf16.mxu0 %v5532_v30  ;;  %v3455_v22 = vmax.f32 %v5604_v21, 0.0 }
 0x4ae   :  { %v3456_v44 = vmax.f32 %v5605_v36, 0.0 }
 0x4b0   :  { %5535 = vmatpush1.bf16.msra.mxu0 %v5534_v38  ;;  %3732 = vmatprep.mubr.f32.mxu0 %v3456_v44 }
 0x4b1   :  { %5537 = vmatprep.subr.bf16.mxu0 %v5536_v39 }
 0x4b4   :  { %5539 = vmatpush1.bf16.msra.mxu0 %v5538_v37 }
 0x4b5   :  { %5541 = vmatprep.subr.bf16.mxu0 %v5540_v45 }
 0x4b8   :  { %5543 = vmatpush1.bf16.msra.mxu0 %v5542_v55 }
 0x4b9   :  { %5545 = vmatprep.subr.bf16.mxu0 %v5544_v16 }
 0x4bc   :  { %5547 = vmatpush1.bf16.msra.mxu0 %v5546_v53 }
 0x4bd   :  { %5549 = vmatprep.subr.bf16.mxu0 %v5548_v62 }
 0x4c0   :  { %5551 = vmatpush1.bf16.msra.mxu0 %v5550_v28 }
 0x4c1   :  { %5553 = vmatprep.subr.bf16.mxu0 %v5552_v3 }
 0x4c4   :  { %5555 = vmatpush1.bf16.msra.mxu0 %v5554_v10 }
 0x4c5   :  { %5557 = vmatprep.subr.bf16.mxu0 %v5556_v12 }
 0x4c8   :  { %5559 = vmatpush1.bf16.msra.mxu0 %v5558_v20 }
 0x4cb   :  { %3733 = vmatmul.mubr.f32.vlgmr.msra.gmra.mrb[6].mxu0 %v3455_v22 }
 0x59e   :  { %v3734_v5 = vpop.f32.mrb[6].mxu0 }
 0x59f   :  { %v5606_v2 = vadd.f32 %v3734_v5, %v3590_v26  ;;  %v3736_v29 = vpop.f32.mrb[7].mxu0 }
 0x5a0   :  { %v5607_v30 = vadd.f32 %v3736_v29, %v3594_v33 }
 0x5a1   :  { %v3739_v0 = vmax.f32 %v5606_v2, 0.0 }
 0x5a2   :  { %v3740_v59 = vmax.f32 %v5607_v30, 0.0 }
 0x5a4   :  { %3844 = vmatprep.mubr.f32.mxu1 %v3740_v59 }
 0x5a5   :  { %3845 = vmatmul.mubr.f32.vlgmr.msra.gmra.mrb[8].mxu1 %v3739_v0 }
 0x678   :  { %v3893_v32 = vpop.f32.mrb[8].mxu1 }
 0x679   :  { %v3894_v60 = vpop.f32.mrb[9].mxu1 }
 0x67a   :  { %v3895_v35 = vadd.f32 %v3894_v60, %v3893_v32 }
 0x67c   :  { %v3847_v36 = vadd.f32 %v3895_v35, %v3860_v34 }
 0x67e   :  { %3850 = vst [vmem:[%s6247_s9] sm:$0xff] %v3847_v36 }
 0x67f   :  { %3855 = vsyncpa [#allocation3], 1 }
 0x680   :  { %3856 = vsyncpa [#allocation5], 1 }
 0x681   :  { %3857 = vsyncpa [#allocation8], 1 }
 0x682   :  { %3858 = vsyncpa [#allocation11], 1 }
 0x683   :  { %3859 = vsyncpa [#allocation14], 1 }

</bundles_post_ra>
